<compile_context>
chip_gen: v5e
topology: v5e:2x2
jax: 0.10.0
libtpu: 0.0.40
codegen_flags: <defaults>
</compile_context>

<pallas_src>
import jax
import jax.numpy as jnp
from jax.experimental import pallas as pl
from jax.experimental.pallas import tpu as pltpu


# ----------------------------------------------------------------------------- helpers
def _erf(x):
    # Abramowitz & Stegun 7.1.26 polynomial (|err| < 1.5e-7): exact-GELU needs erf in-kernel.
    a1, a2, a3, a4, a5 = 0.254829592, -0.284496736, 1.421413741, -1.453152027, 1.061405429
    p = 0.3275911
    s = jnp.where(x >= 0.0, 1.0, -1.0)
    ax = jnp.abs(x)
    t = 1.0 / (1.0 + p * ax)
    poly = ((((a5 * t + a4) * t + a3) * t + a2) * t + a1) * t
    return s * (1.0 - poly * jnp.exp(-ax * ax))


def _tile_dim(dim, candidates):
    for c in candidates:
        if dim % c == 0:
            return c
    return dim


# ----------------------------------------------------------------------------- conv 3x3 (MXU)
def _conv_band(wgt, W):
    """Block-banded conv weights, built once per conv call in the wrapper.

    band[kh, w*Cout + co, wp*Cin + ci] = wgt[co, ci, kh, wp - w] for 0 <= wp - w <= 2, else 0,
    so that   out[w*Cout+co, h] = sum_kh  band[kh] @ xpad_flat[:, h + kh]
    implements the 3x3 conv (freq taps kh handled by 3 hoisted lane shifts of the input).
    """
    Cout, Cin, KH, KW = wgt.shape
    shifts = jnp.stack([jnp.eye(W, W + 2, k=kw, dtype=jnp.float32) for kw in range(KW)])
    band = jnp.einsum("ocak,kwp->awopc", wgt.astype(jnp.float32), shifts)
    return band.reshape(KH, W * Cout, (W + 2) * Cin).astype(jnp.bfloat16)


def conv3x3(x, wgt, bias, relu=False, residual=None):
    """3x3 conv, stride 1, padding 1, as 3 bf16 MXU matmuls per batch element.

    x: (B, W, Cin, H=128) f32; wgt: (Cout, Cin, 3, 3); bias: (Cout,). Returns (B, W, Cout, H).
    """
    B, W, Cin, H = x.shape
    Cout = wgt.shape[0]
    MW, K = W * Cout, (W + 2) * Cin

    band = _conv_band(wgt, W)                                               # (3, MW, K) bf16
    bias_col = jnp.tile(bias.astype(jnp.float32), (W,)).reshape(MW, 1)      # row w*Cout+co -> b[co]
    xp = jnp.pad(x, ((0, 0), (1, 1), (0, 0), (1, 1))).reshape(B, K, H + 2)  # pad time + freq
    have_res = residual is not None
    args = [band, bias_col, xp]
    if have_res:
        args.append(residual.reshape(B, MW, H))

    def kernel(band_ref, bias_ref, xp_ref, *rest):
        if have_res:
            res_ref, o_ref = rest
        else:
            (o_ref,) = rest
        acc = jnp.zeros((MW, H), jnp.float32)
        for kh in range(3):                       # 3 hoisted lane shifts, each one MXU matmul
            s = xp_ref[0, :, kh:kh + H].astype(jnp.bfloat16)
            acc = acc + jnp.dot(band_ref[kh], s, preferred_element_type=jnp.float32)
        acc = acc + bias_ref[...]
        if relu:
            acc = jnp.maximum(acc, 0.0)
        if have_res:
            acc = acc + res_ref[0]
        o_ref[0] = acc

    in_specs = [
        pl.BlockSpec((3, MW, K), lambda b: (0, 0, 0)),           # banded weights (resident)
        pl.BlockSpec((MW, 1), lambda b: (0, 0)),                 # per-row bias
        pl.BlockSpec((1, K, H + 2), lambda b: (b, 0, 0)),        # padded input plane
    ]
    if have_res:
        in_specs.append(pl.BlockSpec((1, MW, H), lambda b: (b, 0, 0)))

    out = pl.pallas_call(
        kernel,
        out_shape=jax.ShapeDtypeStruct((B, MW, H), jnp.float32),
        grid=(B,),
        in_specs=in_specs,
        out_specs=pl.BlockSpec((1, MW, H), lambda b: (b, 0, 0)),
        compiler_params=pltpu.CompilerParams(dimension_semantics=("parallel",)),
    )(*args)
    return out.reshape(B, W, Cout, H)


# ----------------------------------------------------------------------------- LayerNorm + exact GELU
def layernorm_gelu(x2d, gamma, beta):
    """Row-wise LayerNorm (eps=1e-5) over the last dim followed by exact GELU."""
    N, F = x2d.shape
    if N * F * 4 <= (4 << 20):                  # whole array as one (double-buffered) block
        rb = N
    else:                                       # else large row blocks instead of (8,128) tiles
        rb = N
        for cand in (1024, 512, 256, 128, 64, 32, 16, 8):
            if N % cand == 0:
                rb = cand
                break

    def kernel(x_ref, g_ref, b_ref, o_ref):
        x = x_ref[...]
        mu = jnp.mean(x, axis=-1, keepdims=True)
        xc = x - mu
        var = jnp.mean(xc * xc, axis=-1, keepdims=True)
        y = xc * jax.lax.rsqrt(var + 1e-5) * g_ref[...] + b_ref[...]
        o_ref[...] = 0.5 * y * (1.0 + _erf(y * 0.7071067811865475))

    return pl.pallas_call(
        kernel,
        out_shape=jax.ShapeDtypeStruct((N, F), jnp.float32),
        grid=(N // rb,),
        in_specs=[pl.BlockSpec((rb, F), lambda i: (i, 0)),
                  pl.BlockSpec((1, F), lambda i: (0, 0)),
                  pl.BlockSpec((1, F), lambda i: (0, 0))],
        out_specs=pl.BlockSpec((rb, F), lambda i: (i, 0)),
        compiler_params=pltpu.CompilerParams(dimension_semantics=("parallel",)),
    )(x2d, gamma.reshape(1, F), beta.reshape(1, F))


# ----------------------------------------------------------------------------- tiled Linear (MXU)
def linear(x2d, wT, b):
    """x2d: (M, K) @ wT: (K, N) + b: (N,). bf16 MXU matmul with f32 VMEM accumulator."""
    M, K = x2d.shape
    N = wT.shape[1]
    tm = _tile_dim(M, (256, 128, 64, 32, 16, 8))
    tn = _tile_dim(N, (256, 128))
    tk = _tile_dim(K, (512, 256, 128))
    b_row = b.reshape(1, N).astype(jnp.float32)

    def kernel(x_ref, w_ref, b_ref, o_ref, acc_ref):
        @pl.when(pl.program_id(2) == 0)
        def _():
            acc_ref[...] = jnp.zeros_like(acc_ref)

        acc_ref[...] += jnp.dot(x_ref[...].astype(jnp.bfloat16),
                                w_ref[...].astype(jnp.bfloat16),
                                preferred_element_type=jnp.float32)

        @pl.when(pl.program_id(2) == pl.num_programs(2) - 1)
        def _():
            o_ref[...] = acc_ref[...] + b_ref[...]

    return pl.pallas_call(
        kernel,
        out_shape=jax.ShapeDtypeStruct((M, N), jnp.float32),
        grid=(M // tm, N // tn, K // tk),
        in_specs=[pl.BlockSpec((tm, tk), lambda i, j, k: (i, k)),
                  pl.BlockSpec((tk, tn), lambda i, j, k: (k, j)),
                  pl.BlockSpec((1, tn), lambda i, j, k: (0, j))],
        out_specs=pl.BlockSpec((tm, tn), lambda i, j, k: (i, j)),
        scratch_shapes=[pltpu.VMEM((tm, tn), jnp.float32)],
        compiler_params=pltpu.CompilerParams(
            dimension_semantics=("parallel", "parallel", "arbitrary")),
    )(x2d, wT, b_row)


# ----------------------------------------------------------------------------- bidirectional LSTM
def bilstm_layer(x, lp):
    """Bidirectional LSTM over dim 0 of x: (T, N, D) -> (T, N, 2H).

    The time-invariant input projection x @ [W_if | W_ib] + b is hoisted into one large MXU
    matmul; the Pallas recurrence kernel only computes h @ W_hh and the gate nonlinearities
    per step inside a lax.fori_loop (PyTorch gate order [i, f, g, o])."""
    T, N, D = x.shape
    H = lp["whf"].shape[0]

    gates = linear(x.reshape(T * N, D), lp["wi"], lp["b"]).reshape(T, N, 8 * H)

    def kernel(gx_ref, whf_ref, whb_ref, of_ref, ob_ref, h_scr, c_scr):
        def step(t, wh_ref, gate_off, out_ref):
            g = gx_ref[t][:, gate_off:gate_off + 4 * H] + jnp.dot(
                h_scr[...].astype(jnp.bfloat16), wh_ref[...],
                preferred_element_type=jnp.float32)
            i_g = jax.nn.sigmoid(g[:, 0:H])
            f_g = jax.nn.sigmoid(g[:, H:2 * H])
            g_g = jnp.tanh(g[:, 2 * H:3 * H])
            o_g = jax.nn.sigmoid(g[:, 3 * H:4 * H])
            c = f_g * c_scr[...] + i_g * g_g
            h = o_g * jnp.tanh(c)
            c_scr[...] = c
            h_scr[...] = h
            out_ref[t] = h

        h_scr[...] = jnp.zeros_like(h_scr)
        c_scr[...] = jnp.zeros_like(c_scr)

        def fwd(t, carry):
            step(t, whf_ref, 0, of_ref)
            return carry

        jax.lax.fori_loop(0, T, fwd, 0)

        h_scr[...] = jnp.zeros_like(h_scr)
        c_scr[...] = jnp.zeros_like(c_scr)

        def bwd(i, carry):
            step(T - 1 - i, whb_ref, 4 * H, ob_ref)
            return carry

        jax.lax.fori_loop(0, T, bwd, 0)

    # TODO(synk): for long sequences (and v7x's 64 MiB VMEM) tile the recurrence over time
    # chunks (grid axis "arbitrary", h/c carried in scratch) instead of full VMEM residency,
    # and split fwd/bwd directions across the two v7x TensorCores.
    o_f, o_b = pl.pallas_call(
        kernel,
        out_shape=(jax.ShapeDtypeStruct((T, N, H), jnp.float32),
                   jax.ShapeDtypeStruct((T, N, H), jnp.float32)),
        in_specs=[pl.BlockSpec(memory_space=pltpu.MemorySpace.VMEM)] * 3,
        out_specs=(pl.BlockSpec(memory_space=pltpu.MemorySpace.VMEM),
                   pl.BlockSpec(memory_space=pltpu.MemorySpace.VMEM)),
        scratch_shapes=[pltpu.VMEM((N, H), jnp.float32),
                        pltpu.VMEM((N, H), jnp.float32)],
    )(gates, lp["whf"], lp["whb"])
    return jnp.concatenate([o_f, o_b], axis=-1)


# ----------------------------------------------------------------------------- full forward
def acoustic_forward(x_nchw, P):
    B, _, Hf, Wt = x_nchw.shape
    assert Hf == 128, "model hardcodes LayerNorm(128) / Linear(n_feats*64): freq dim must be 128"

    # internal CNN layout: (B, W=time, C, H=freq) so the 128-bin freq axis sits in lanes.
    x = jnp.transpose(x_nchw.astype(jnp.float32), (0, 3, 1, 2))

    # cnn_layers: Conv2d(1, n_feats, 3, padding=1) + ReLU
    x = conv3x3(x, P["cnn0_w"], P["cnn0_b"], relu=True)

    # rescnn_layers
    for lp in P["rescnn"]:
        residual = x
        H_ = x.shape[-1]
        h = layernorm_gelu(x.reshape(-1, H_), lp["ln1_g"], lp["ln1_b"]).reshape(x.shape)
        h = conv3x3(h, lp["cnn1_w"], lp["cnn1_b"])
        h = layernorm_gelu(h.reshape(-1, H_), lp["ln2_g"], lp["ln2_b"]).reshape(x.shape)
        x = conv3x3(h, lp["cnn2_w"], lp["cnn2_b"], residual=residual)

    # MaxPool2d((2, 3)): 2 over freq (H), 3 over time (W), floor mode.  Done as one fused XLA
    # reduce on the (B, W, C, H) layout (lane-pair compaction has no cheap Mosaic primitive);
    # the pooled features then flatten directly to the (c, h') order the FC expects.
    B_, W_, C_, H_ = x.shape
    Wp, Hp = W_ // 3, H_ // 2
    pooled = jnp.max(x[:, :Wp * 3].reshape(B_, Wp, 3, C_, Hp, 2), axis=(2, 5))
    feat = pooled.reshape(B_ * Wp, C_ * Hp)

    # fully_connected: Linear(n_feats*64, rnn_dim)
    y = linear(feat, P["fc_wT"], P["fc_b"])
    rnn_dim = y.shape[-1]
    y = y.reshape(B_, Wp, rnn_dim)

    # BiLSTM 1 (batch_first=True): recur over the time axis
    y = jnp.transpose(y, (1, 0, 2))
    y = bilstm_layer(y, P["lstm1"])
    y = jnp.transpose(y, (1, 0, 2))

    # BiLSTM 2 & 3 (batch_first=False on a (B, T', F) tensor): PyTorch treats dim 0 (= batch)
    # as the sequence axis; reproduced as-is.
    y = bilstm_layer(y, P["lstm2"])
    y = bilstm_layer(y, P["lstm3"])

    # classifier: Linear(2*rnn_dim, n_class); weight padded to a lane-dense 128-wide output.
    B3, T3, F3 = y.shape
    ncls = P["cls_wT"].shape[1]
    npad = ((ncls + 127) // 128) * 128
    w_pad = jnp.pad(P["cls_wT"], ((0, 0), (0, npad - ncls)))
    b_pad = jnp.pad(P["cls_b"], ((0, npad - ncls),))
    out = linear(y.reshape(-1, F3), w_pad, b_pad)[:, :ncls]
    return out.reshape(B3, T3, ncls)


# ----------------------------------------------------------------------------- deterministic params
def init_params(key, n_cnn_layers, n_feats, rnn_dim, n_class):
    keys = iter(jax.random.split(key, 256))

    def nrm(shape, scale=0.1):
        return (scale * jax.random.normal(next(keys), shape)).astype(jnp.float32)

    P = {"cnn0_w": nrm((n_feats, 1, 3, 3)), "cnn0_b": nrm((n_feats,)), "rescnn": []}
    for _ in range(n_cnn_layers):
        P["rescnn"].append(dict(
            ln1_g=jnp.ones((128,), jnp.float32), ln1_b=jnp.zeros((128,), jnp.float32),
            cnn1_w=nrm((n_feats, n_feats, 3, 3)), cnn1_b=nrm((n_feats,)),
            ln2_g=jnp.ones((128,), jnp.float32), ln2_b=jnp.zeros((128,), jnp.float32),
            cnn2_w=nrm((n_feats, n_feats, 3, 3)), cnn2_b=nrm((n_feats,)),
        ))
    P["fc_wT"] = nrm((n_feats * 64, rnn_dim)).astype(jnp.bfloat16)
    P["fc_b"] = nrm((rnn_dim,))

    def lstm_params(D, H):
        # PyTorch gate order [i, f, g, o]; weights pre-transposed (D,4H)/(H,4H); combined
        # bias b_ih + b_hh; fwd/bwd input weights concatenated so the hoisted projection is
        # one big (D, 8H) matmul.
        wif, whf, bf = nrm((D, 4 * H)), nrm((H, 4 * H)), nrm((4 * H,))
        wib, whb, bb = nrm((D, 4 * H)), nrm((H, 4 * H)), nrm((4 * H,))
        return dict(
            wi=jnp.concatenate([wif, wib], axis=1).astype(jnp.bfloat16),   # (D, 8H)
            b=jnp.concatenate([bf, bb], axis=0),                           # (8H,) f32
            whf=whf.astype(jnp.bfloat16), whb=whb.astype(jnp.bfloat16))

    P["lstm1"] = lstm_params(rnn_dim, rnn_dim)
    P["lstm2"] = lstm_params(2 * rnn_dim, rnn_dim)
    P["lstm3"] = lstm_params(2 * rnn_dim, rnn_dim)
    P["cls_wT"] = nrm((2 * rnn_dim, n_class)).astype(jnp.bfloat16)
    P["cls_b"] = nrm((n_class,))
    return P


# ----------------------------------------------------------------------------- main
if __name__ == "__main__":
    # Small config consistent with the module: freq dim MUST be 128 (hardcoded LayerNorm(128),
    # Linear(n_feats*64)); small time dim; n_feats = conv channel count.
    B, H_FEATS, W_TIME = 2, 128, 12
    N_CNN_LAYERS, N_FEATS, RNN_DIM, N_CLASS = 1, 4, 32, 10

    key = jax.random.PRNGKey(0)
    kx, kp = jax.random.split(key)
    x = jax.random.normal(kx, (B, 1, H_FEATS, W_TIME), jnp.float32)   # NCHW like PyTorch
    P = init_params(kp, N_CNN_LAYERS, N_FEATS, RNN_DIM, N_CLASS)

    fwd = jax.jit(acoustic_forward)
    out = jax.block_until_ready(fwd(x, P))
    assert out.shape == (B, W_TIME // 3, N_CLASS), out.shape
    print("KERNEL_OK")
</pallas_src>

<mosaic_0001>
module attributes {stable_mosaic.version = 11 : i64} {
  func.func @kernel(%arg0: i32, %arg1: memref<3x48x14xbf16, #tpu.memory_space<vmem>>, %arg2: memref<48x1xf32, #tpu.memory_space<vmem>>, %arg3: memref<1x14x130xf32, #tpu.memory_space<vmem>>, %arg4: memref<1x48x128xf32, #tpu.memory_space<vmem>>) attributes {dimension_semantics = [#tpu.dimension_semantics<parallel>], iteration_bounds = array<i64: 2>, scalar_prefetch = 0 : i64, scratch_operands = 0 : i64, tpu.core_type = #tpu.core_type<tc>, window_params = [{pipeline_mode = #tpu.pipeline_mode<synchronous>, transform_indices = @transform_0, window_bounds = array<i64: 3, 48, 14>}, {pipeline_mode = #tpu.pipeline_mode<synchronous>, transform_indices = @transform_1, window_bounds = array<i64: 48, 1>}, {transform_indices = @transform_2, window_bounds = array<i64: 1, 14, 130>}, {transform_indices = @transform_3, window_bounds = array<i64: 1, 48, 128>}]} {
    %cst = arith.constant 0.000000e+00 : f32
    %0 = vector.broadcast %cst : f32 to vector<48x128xf32>
    %c0 = arith.constant 0 : index
    %c0_0 = arith.constant 0 : index
    %c0_1 = arith.constant 0 : index
    %1 = vector.load %arg3[%c0, %c0_0, %c0_1] : memref<1x14x130xf32, #tpu.memory_space<vmem>>, vector<1x14x128xf32>
    %2 = vector.shape_cast %1 : vector<1x14x128xf32> to vector<14x128xf32>
    %3 = arith.truncf %2 : vector<14x128xf32> to vector<14x128xbf16>
    %c0_2 = arith.constant 0 : index
    %c0_3 = arith.constant 0 : index
    %c0_4 = arith.constant 0 : index
    %4 = vector.load %arg1[%c0_2, %c0_3, %c0_4] : memref<3x48x14xbf16, #tpu.memory_space<vmem>>, vector<1x48x14xbf16>
    %5 = vector.shape_cast %4 : vector<1x48x14xbf16> to vector<48x14xbf16>
    %cst_5 = arith.constant dense<0.000000e+00> : vector<48x128xf32>
    %6 = tpu.matmul %5, %3, %cst_5 {dimension_numbers = #tpu.dot_dimension_numbers<[1], [0], [0], [1], [0, 0, 1, 1], [], []>} : vector<48x14xbf16>, vector<14x128xbf16>, vector<48x128xf32> -> vector<48x128xf32>
    %7 = arith.addf %0, %6 : vector<48x128xf32>
    %c0_6 = arith.constant 0 : index
    %c0_7 = arith.constant 0 : index
    %c1 = arith.constant 1 : index
    %8 = vector.load %arg3[%c0_6, %c0_7, %c1] : memref<1x14x130xf32, #tpu.memory_space<vmem>>, vector<1x14x128xf32>
    %9 = vector.shape_cast %8 : vector<1x14x128xf32> to vector<14x128xf32>
    %10 = arith.truncf %9 : vector<14x128xf32> to vector<14x128xbf16>
    %c1_8 = arith.constant 1 : index
    %c0_9 = arith.constant 0 : index
    %c0_10 = arith.constant 0 : index
    %11 = vector.load %arg1[%c1_8, %c0_9, %c0_10] : memref<3x48x14xbf16, #tpu.memory_space<vmem>>, vector<1x48x14xbf16>
    %12 = vector.shape_cast %11 : vector<1x48x14xbf16> to vector<48x14xbf16>
    %cst_11 = arith.constant dense<0.000000e+00> : vector<48x128xf32>
    %13 = tpu.matmul %12, %10, %cst_11 {dimension_numbers = #tpu.dot_dimension_numbers<[1], [0], [0], [1], [0, 0, 1, 1], [], []>} : vector<48x14xbf16>, vector<14x128xbf16>, vector<48x128xf32> -> vector<48x128xf32>
    %14 = arith.addf %7, %13 : vector<48x128xf32>
    %c0_12 = arith.constant 0 : index
    %c0_13 = arith.constant 0 : index
    %c2 = arith.constant 2 : index
    %15 = vector.load %arg3[%c0_12, %c0_13, %c2] : memref<1x14x130xf32, #tpu.memory_space<vmem>>, vector<1x14x128xf32>
    %16 = vector.shape_cast %15 : vector<1x14x128xf32> to vector<14x128xf32>
    %17 = arith.truncf %16 : vector<14x128xf32> to vector<14x128xbf16>
    %c2_14 = arith.constant 2 : index
    %c0_15 = arith.constant 0 : index
    %c0_16 = arith.constant 0 : index
    %18 = vector.load %arg1[%c2_14, %c0_15, %c0_16] : memref<3x48x14xbf16, #tpu.memory_space<vmem>>, vector<1x48x14xbf16>
    %19 = vector.shape_cast %18 : vector<1x48x14xbf16> to vector<48x14xbf16>
    %cst_17 = arith.constant dense<0.000000e+00> : vector<48x128xf32>
    %20 = tpu.matmul %19, %17, %cst_17 {dimension_numbers = #tpu.dot_dimension_numbers<[1], [0], [0], [1], [0, 0, 1, 1], [], []>} : vector<48x14xbf16>, vector<14x128xbf16>, vector<48x128xf32> -> vector<48x128xf32>
    %21 = arith.addf %14, %20 : vector<48x128xf32>
    %c0_18 = arith.constant 0 : index
    %c0_19 = arith.constant 0 : index
    %22 = vector.load %arg2[%c0_18, %c0_19] : memref<48x1xf32, #tpu.memory_space<vmem>>, vector<48x1xf32>
    %23 = vector.broadcast %22 : vector<48x1xf32> to vector<48x128xf32>
    %24 = arith.addf %21, %23 : vector<48x128xf32>
    %cst_20 = arith.constant 0.000000e+00 : f32
    %25 = vector.broadcast %cst_20 : f32 to vector<48x128xf32>
    %26 = arith.maximumf %24, %25 : vector<48x128xf32>
    %c0_21 = arith.constant 0 : index
    %c0_22 = arith.constant 0 : index
    %c0_23 = arith.constant 0 : index
    %27 = vector.load %arg4[%c0_21, %c0_22, %c0_23] : memref<1x48x128xf32, #tpu.memory_space<vmem>>, vector<1x48x128xf32>
    %28 = vector.shape_cast %27 : vector<1x48x128xf32> to vector<48x128xf32>
    %29 = vector.shape_cast %26 : vector<48x128xf32> to vector<1x48x128xf32>
    tpu.vector_store %arg4[%c0_21, %c0_22, %c0_23], %29 {strides = array<i32>} : memref<1x48x128xf32, #tpu.memory_space<vmem>>, vector<1x48x128xf32>,
    return
  }
  func.func @transform_0(%arg0: i32) -> (i32, i32, i32) {
    %c0_i32 = arith.constant 0 : i32
    %c0_i32_0 = arith.constant 0 : i32
    %c0_i32_1 = arith.constant 0 : i32
    %c0_i32_2 = arith.constant 0 : i32
    return %c0_i32, %c0_i32_0, %c0_i32_1 : i32, i32, i32
  }
  func.func @transform_1(%arg0: i32) -> (i32, i32) {
    %c0_i32 = arith.constant 0 : i32
    %c0_i32_0 = arith.constant 0 : i32
    %c0_i32_1 = arith.constant 0 : i32
    return %c0_i32, %c0_i32_0 : i32, i32
  }
  func.func @transform_2(%arg0: i32) -> (i32, i32, i32) {
    %c0_i32 = arith.constant 0 : i32
    %c0_i32_0 = arith.constant 0 : i32
    %c0_i32_1 = arith.constant 0 : i32
    return %arg0, %c0_i32, %c0_i32_0 : i32, i32, i32
  }
  func.func @transform_3(%arg0: i32) -> (i32, i32, i32) {
    %c0_i32 = arith.constant 0 : i32
    %c0_i32_0 = arith.constant 0 : i32
    %c0_i32_1 = arith.constant 0 : i32
    return %arg0, %c0_i32, %c0_i32_0 : i32, i32, i32
  }
}

module attributes {stable_mosaic.version = 11 : i64} {
  func.func @kernel(%arg0: i32, %arg1: memref<96x128xf32, #tpu.memory_space<vmem>>, %arg2: memref<1x128xf32, #tpu.memory_space<vmem>>, %arg3: memref<1x128xf32, #tpu.memory_space<vmem>>, %arg4: memref<96x128xf32, #tpu.memory_space<vmem>>) attributes {dimension_semantics = [#tpu.dimension_semantics<parallel>], iteration_bounds = array<i64: 1>, scalar_prefetch = 0 : i64, scratch_operands = 0 : i64, tpu.core_type = #tpu.core_type<tc>, window_params = [{transform_indices = @transform_0, window_bounds = array<i64: 96, 128>}, {pipeline_mode = #tpu.pipeline_mode<synchronous>, transform_indices = @transform_1, window_bounds = array<i64: 1, 128>}, {pipeline_mode = #tpu.pipeline_mode<synchronous>, transform_indices = @transform_2, window_bounds = array<i64: 1, 128>}, {transform_indices = @transform_3, window_bounds = array<i64: 96, 128>}]} {
    %c0 = arith.constant 0 : index
    %c0_0 = arith.constant 0 : index
    %0 = vector.load %arg1[%c0, %c0_0] : memref<96x128xf32, #tpu.memory_space<vmem>>, vector<96x128xf32>
    %cst = arith.constant dense<0.000000e+00> : vector<96xf32>
    %1 = vector.multi_reduction <add>, %0, %cst [1] : vector<96x128xf32> to vector<96xf32>
    %2 = vector.shape_cast %1 : vector<96xf32> to vector<96x1xf32>
    %cst_1 = arith.constant 1.280000e+02 : f32
    %3 = vector.broadcast %cst_1 : f32 to vector<96x1xf32>
    %4 = arith.divf %2, %3 : vector<96x1xf32>
    %5 = vector.broadcast %4 : vector<96x1xf32> to vector<96x128xf32>
    %6 = arith.subf %0, %5 : vector<96x128xf32>
    %7 = arith.mulf %6, %6 : vector<96x128xf32>
    %cst_2 = arith.constant dense<0.000000e+00> : vector<96xf32>
    %8 = vector.multi_reduction <add>, %7, %cst_2 [1] : vector<96x128xf32> to vector<96xf32>
    %9 = vector.shape_cast %8 : vector<96xf32> to vector<96x1xf32>
    %cst_3 = arith.constant 1.280000e+02 : f32
    %10 = vector.broadcast %cst_3 : f32 to vector<96x1xf32>
    %11 = arith.divf %9, %10 : vector<96x1xf32>
    %cst_4 = arith.constant 9.99999974E-6 : f32
    %12 = vector.broadcast %cst_4 : f32 to vector<96x1xf32>
    %13 = arith.addf %11, %12 : vector<96x1xf32>
    %14 = math.rsqrt %13 : vector<96x1xf32>
    %15 = vector.broadcast %14 : vector<96x1xf32> to vector<96x128xf32>
    %16 = arith.mulf %6, %15 : vector<96x128xf32>
    %c0_5 = arith.constant 0 : index
    %c0_6 = arith.constant 0 : index
    %17 = vector.load %arg2[%c0_5, %c0_6] : memref<1x128xf32, #tpu.memory_space<vmem>>, vector<1x128xf32>
    %18 = vector.broadcast %17 : vector<1x128xf32> to vector<96x128xf32>
    %19 = arith.mulf %16, %18 : vector<96x128xf32>
    %c0_7 = arith.constant 0 : index
    %c0_8 = arith.constant 0 : index
    %20 = vector.load %arg3[%c0_7, %c0_8] : memref<1x128xf32, #tpu.memory_space<vmem>>, vector<1x128xf32>
    %21 = vector.broadcast %20 : vector<1x128xf32> to vector<96x128xf32>
    %22 = arith.addf %19, %21 : vector<96x128xf32>
    %cst_9 = arith.constant 5.000000e-01 : f32
    %23 = vector.broadcast %cst_9 : f32 to vector<96x128xf32>
    %24 = arith.mulf %23, %22 : vector<96x128xf32>
    %cst_10 = arith.constant 0.707106769 : f32
    %25 = vector.broadcast %cst_10 : f32 to vector<96x128xf32>
    %26 = arith.mulf %22, %25 : vector<96x128xf32>
    %cst_11 = arith.constant 0.000000e+00 : f32
    %27 = vector.broadcast %cst_11 : f32 to vector<96x128xf32>
    %28 = arith.cmpf oge, %26, %27 : vector<96x128xf32>
    %cst_12 = arith.constant 1.000000e+00 : f32
    %cst_13 = arith.constant -1.000000e+00 : f32
    %29 = vector.broadcast %cst_12 : f32 to vector<96x128xf32>
    %30 = vector.broadcast %cst_13 : f32 to vector<96x128xf32>
    %31 = arith.select %28, %29, %30 : vector<96x128xi1>, vector<96x128xf32>
    %32 = math.absf %26 : vector<96x128xf32>
    %cst_14 = arith.constant 0.327591091 : f32
    %33 = vector.broadcast %cst_14 : f32 to vector<96x128xf32>
    %34 = arith.mulf %33, %32 : vector<96x128xf32>
    %cst_15 = arith.constant 1.000000e+00 : f32
    %35 = vector.broadcast %cst_15 : f32 to vector<96x128xf32>
    %36 = arith.addf %35, %34 : vector<96x128xf32>
    %cst_16 = arith.constant 1.000000e+00 : f32
    %37 = vector.broadcast %cst_16 : f32 to vector<96x128xf32>
    %38 = arith.divf %37, %36 : vector<96x128xf32>
    %cst_17 = arith.constant 1.06140542 : f32
    %39 = vector.broadcast %cst_17 : f32 to vector<96x128xf32>
    %40 = arith.mulf %39, %38 : vector<96x128xf32>
    %cst_18 = arith.constant -1.45315206 : f32
    %41 = vector.broadcast %cst_18 : f32 to vector<96x128xf32>
    %42 = arith.addf %40, %41 : vector<96x128xf32>
    %43 = arith.mulf %42, %38 : vector<96x128xf32>
    %cst_19 = arith.constant 1.42141378 : f32
    %44 = vector.broadcast %cst_19 : f32 to vector<96x128xf32>
    %45 = arith.addf %43, %44 : vector<96x128xf32>
    %46 = arith.mulf %45, %38 : vector<96x128xf32>
    %cst_20 = arith.constant -0.284496725 : f32
    %47 = vector.broadcast %cst_20 : f32 to vector<96x128xf32>
    %48 = arith.addf %46, %47 : vector<96x128xf32>
    %49 = arith.mulf %48, %38 : vector<96x128xf32>
    %cst_21 = arith.constant 0.254829586 : f32
    %50 = vector.broadcast %cst_21 : f32 to vector<96x128xf32>
    %51 = arith.addf %49, %50 : vector<96x128xf32>
    %52 = arith.mulf %51, %38 : vector<96x128xf32>
    %cst_22 = arith.constant 0.000000e+00 : f32
    %53 = vector.broadcast %cst_22 : f32 to vector<96x128xf32>
    %54 = arith.subf %53, %32 : vector<96x128xf32>
    %55 = arith.mulf %54, %32 : vector<96x128xf32>
    %56 = math.exp %55 : vector<96x128xf32>
    %57 = arith.mulf %52, %56 : vector<96x128xf32>
    %cst_23 = arith.constant 1.000000e+00 : f32
    %58 = vector.broadcast %cst_23 : f32 to vector<96x128xf32>
    %59 = arith.subf %58, %57 : vector<96x128xf32>
    %60 = arith.mulf %31, %59 : vector<96x128xf32>
    %cst_24 = arith.constant 1.000000e+00 : f32
    %61 = vector.broadcast %cst_24 : f32 to vector<96x128xf32>
    %62 = arith.addf %61, %60 : vector<96x128xf32>
    %63 = arith.mulf %24, %62 : vector<96x128xf32>
    %c0_25 = arith.constant 0 : index
    %c0_26 = arith.constant 0 : index
    %64 = vector.load %arg4[%c0_25, %c0_26] : memref<96x128xf32, #tpu.memory_space<vmem>>, vector<96x128xf32>
    tpu.vector_store %arg4[%c0_25, %c0_26], %63 {strides = array<i32>} : memref<96x128xf32, #tpu.memory_space<vmem>>, vector<96x128xf32>,
    return
  }
  func.func @transform_0(%arg0: i32) -> (i32, i32) {
    %c0_i32 = arith.constant 0 : i32
    %c0_i32_0 = arith.constant 0 : i32
    return %arg0, %c0_i32 : i32, i32
  }
  func.func @transform_1(%arg0: i32) -> (i32, i32) {
    %c0_i32 = arith.constant 0 : i32
    %c0_i32_0 = arith.constant 0 : i32
    %c0_i32_1 = arith.constant 0 : i32
    return %c0_i32, %c0_i32_0 : i32, i32
  }
  func.func @transform_2(%arg0: i32) -> (i32, i32) {
    %c0_i32 = arith.constant 0 : i32
    %c0_i32_0 = arith.constant 0 : i32
    %c0_i32_1 = arith.constant 0 : i32
    return %c0_i32, %c0_i32_0 : i32, i32
  }
  func.func @transform_3(%arg0: i32) -> (i32, i32) {
    %c0_i32 = arith.constant 0 : i32
    %c0_i32_0 = arith.constant 0 : i32
    return %arg0, %c0_i32 : i32, i32
  }
}

module attributes {stable_mosaic.version = 11 : i64} {
  func.func @kernel(%arg0: i32, %arg1: memref<3x48x56xbf16, #tpu.memory_space<vmem>>, %arg2: memref<48x1xf32, #tpu.memory_space<vmem>>, %arg3: memref<1x56x130xf32, #tpu.memory_space<vmem>>, %arg4: memref<1x48x128xf32, #tpu.memory_space<vmem>>) attributes {dimension_semantics = [#tpu.dimension_semantics<parallel>], iteration_bounds = array<i64: 2>, scalar_prefetch = 0 : i64, scratch_operands = 0 : i64, tpu.core_type = #tpu.core_type<tc>, window_params = [{pipeline_mode = #tpu.pipeline_mode<synchronous>, transform_indices = @transform_0, window_bounds = array<i64: 3, 48, 56>}, {pipeline_mode = #tpu.pipeline_mode<synchronous>, transform_indices = @transform_1, window_bounds = array<i64: 48, 1>}, {transform_indices = @transform_2, window_bounds = array<i64: 1, 56, 130>}, {transform_indices = @transform_3, window_bounds = array<i64: 1, 48, 128>}]} {
    %cst = arith.constant 0.000000e+00 : f32
    %0 = vector.broadcast %cst : f32 to vector<48x128xf32>
    %c0 = arith.constant 0 : index
    %c0_0 = arith.constant 0 : index
    %c0_1 = arith.constant 0 : index
    %1 = vector.load %arg3[%c0, %c0_0, %c0_1] : memref<1x56x130xf32, #tpu.memory_space<vmem>>, vector<1x56x128xf32>
    %2 = vector.shape_cast %1 : vector<1x56x128xf32> to vector<56x128xf32>
    %3 = arith.truncf %2 : vector<56x128xf32> to vector<56x128xbf16>
    %c0_2 = arith.constant 0 : index
    %c0_3 = arith.constant 0 : index
    %c0_4 = arith.constant 0 : index
    %4 = vector.load %arg1[%c0_2, %c0_3, %c0_4] : memref<3x48x56xbf16, #tpu.memory_space<vmem>>, vector<1x48x56xbf16>
    %5 = vector.shape_cast %4 : vector<1x48x56xbf16> to vector<48x56xbf16>
    %cst_5 = arith.constant dense<0.000000e+00> : vector<48x128xf32>
    %6 = tpu.matmul %5, %3, %cst_5 {dimension_numbers = #tpu.dot_dimension_numbers<[1], [0], [0], [1], [0, 0, 1, 1], [], []>} : vector<48x56xbf16>, vector<56x128xbf16>, vector<48x128xf32> -> vector<48x128xf32>
    %7 = arith.addf %0, %6 : vector<48x128xf32>
    %c0_6 = arith.constant 0 : index
    %c0_7 = arith.constant 0 : index
    %c1 = arith.constant 1 : index
    %8 = vector.load %arg3[%c0_6, %c0_7, %c1] : memref<1x56x130xf32, #tpu.memory_space<vmem>>, vector<1x56x128xf32>
    %9 = vector.shape_cast %8 : vector<1x56x128xf32> to vector<56x128xf32>
    %10 = arith.truncf %9 : vector<56x128xf32> to vector<56x128xbf16>
    %c1_8 = arith.constant 1 : index
    %c0_9 = arith.constant 0 : index
    %c0_10 = arith.constant 0 : index
    %11 = vector.load %arg1[%c1_8, %c0_9, %c0_10] : memref<3x48x56xbf16, #tpu.memory_space<vmem>>, vector<1x48x56xbf16>
    %12 = vector.shape_cast %11 : vector<1x48x56xbf16> to vector<48x56xbf16>
    %cst_11 = arith.constant dense<0.000000e+00> : vector<48x128xf32>
    %13 = tpu.matmul %12, %10, %cst_11 {dimension_numbers = #tpu.dot_dimension_numbers<[1], [0], [0], [1], [0, 0, 1, 1], [], []>} : vector<48x56xbf16>, vector<56x128xbf16>, vector<48x128xf32> -> vector<48x128xf32>
    %14 = arith.addf %7, %13 : vector<48x128xf32>
    %c0_12 = arith.constant 0 : index
    %c0_13 = arith.constant 0 : index
    %c2 = arith.constant 2 : index
    %15 = vector.load %arg3[%c0_12, %c0_13, %c2] : memref<1x56x130xf32, #tpu.memory_space<vmem>>, vector<1x56x128xf32>
    %16 = vector.shape_cast %15 : vector<1x56x128xf32> to vector<56x128xf32>
    %17 = arith.truncf %16 : vector<56x128xf32> to vector<56x128xbf16>
    %c2_14 = arith.constant 2 : index
    %c0_15 = arith.constant 0 : index
    %c0_16 = arith.constant 0 : index
    %18 = vector.load %arg1[%c2_14, %c0_15, %c0_16] : memref<3x48x56xbf16, #tpu.memory_space<vmem>>, vector<1x48x56xbf16>
    %19 = vector.shape_cast %18 : vector<1x48x56xbf16> to vector<48x56xbf16>
    %cst_17 = arith.constant dense<0.000000e+00> : vector<48x128xf32>
    %20 = tpu.matmul %19, %17, %cst_17 {dimension_numbers = #tpu.dot_dimension_numbers<[1], [0], [0], [1], [0, 0, 1, 1], [], []>} : vector<48x56xbf16>, vector<56x128xbf16>, vector<48x128xf32> -> vector<48x128xf32>
    %21 = arith.addf %14, %20 : vector<48x128xf32>
    %c0_18 = arith.constant 0 : index
    %c0_19 = arith.constant 0 : index
    %22 = vector.load %arg2[%c0_18, %c0_19] : memref<48x1xf32, #tpu.memory_space<vmem>>, vector<48x1xf32>
    %23 = vector.broadcast %22 : vector<48x1xf32> to vector<48x128xf32>
    %24 = arith.addf %21, %23 : vector<48x128xf32>
    %c0_20 = arith.constant 0 : index
    %c0_21 = arith.constant 0 : index
    %c0_22 = arith.constant 0 : index
    %25 = vector.load %arg4[%c0_20, %c0_21, %c0_22] : memref<1x48x128xf32, #tpu.memory_space<vmem>>, vector<1x48x128xf32>
    %26 = vector.shape_cast %25 : vector<1x48x128xf32> to vector<48x128xf32>
    %27 = vector.shape_cast %24 : vector<48x128xf32> to vector<1x48x128xf32>
    tpu.vector_store %arg4[%c0_20, %c0_21, %c0_22], %27 {strides = array<i32>} : memref<1x48x128xf32, #tpu.memory_space<vmem>>, vector<1x48x128xf32>,
    return
  }
  func.func @transform_0(%arg0: i32) -> (i32, i32, i32) {
    %c0_i32 = arith.constant 0 : i32
    %c0_i32_0 = arith.constant 0 : i32
    %c0_i32_1 = arith.constant 0 : i32
    %c0_i32_2 = arith.constant 0 : i32
    return %c0_i32, %c0_i32_0, %c0_i32_1 : i32, i32, i32
  }
  func.func @transform_1(%arg0: i32) -> (i32, i32) {
    %c0_i32 = arith.constant 0 : i32
    %c0_i32_0 = arith.constant 0 : i32
    %c0_i32_1 = arith.constant 0 : i32
    return %c0_i32, %c0_i32_0 : i32, i32
  }
  func.func @transform_2(%arg0: i32) -> (i32, i32, i32) {
    %c0_i32 = arith.constant 0 : i32
    %c0_i32_0 = arith.constant 0 : i32
    %c0_i32_1 = arith.constant 0 : i32
    return %arg0, %c0_i32, %c0_i32_0 : i32, i32, i32
  }
  func.func @transform_3(%arg0: i32) -> (i32, i32, i32) {
    %c0_i32 = arith.constant 0 : i32
    %c0_i32_0 = arith.constant 0 : i32
    %c0_i32_1 = arith.constant 0 : i32
    return %arg0, %c0_i32, %c0_i32_0 : i32, i32, i32
  }
}

module attributes {stable_mosaic.version = 11 : i64} {
  func.func @kernel(%arg0: i32, %arg1: memref<96x128xf32, #tpu.memory_space<vmem>>, %arg2: memref<1x128xf32, #tpu.memory_space<vmem>>, %arg3: memref<1x128xf32, #tpu.memory_space<vmem>>, %arg4: memref<96x128xf32, #tpu.memory_space<vmem>>) attributes {dimension_semantics = [#tpu.dimension_semantics<parallel>], iteration_bounds = array<i64: 1>, scalar_prefetch = 0 : i64, scratch_operands = 0 : i64, tpu.core_type = #tpu.core_type<tc>, window_params = [{transform_indices = @transform_0, window_bounds = array<i64: 96, 128>}, {pipeline_mode = #tpu.pipeline_mode<synchronous>, transform_indices = @transform_1, window_bounds = array<i64: 1, 128>}, {pipeline_mode = #tpu.pipeline_mode<synchronous>, transform_indices = @transform_2, window_bounds = array<i64: 1, 128>}, {transform_indices = @transform_3, window_bounds = array<i64: 96, 128>}]} {
    %c0 = arith.constant 0 : index
    %c0_0 = arith.constant 0 : index
    %0 = vector.load %arg1[%c0, %c0_0] : memref<96x128xf32, #tpu.memory_space<vmem>>, vector<96x128xf32>
    %cst = arith.constant dense<0.000000e+00> : vector<96xf32>
    %1 = vector.multi_reduction <add>, %0, %cst [1] : vector<96x128xf32> to vector<96xf32>
    %2 = vector.shape_cast %1 : vector<96xf32> to vector<96x1xf32>
    %cst_1 = arith.constant 1.280000e+02 : f32
    %3 = vector.broadcast %cst_1 : f32 to vector<96x1xf32>
    %4 = arith.divf %2, %3 : vector<96x1xf32>
    %5 = vector.broadcast %4 : vector<96x1xf32> to vector<96x128xf32>
    %6 = arith.subf %0, %5 : vector<96x128xf32>
    %7 = arith.mulf %6, %6 : vector<96x128xf32>
    %cst_2 = arith.constant dense<0.000000e+00> : vector<96xf32>
    %8 = vector.multi_reduction <add>, %7, %cst_2 [1] : vector<96x128xf32> to vector<96xf32>
    %9 = vector.shape_cast %8 : vector<96xf32> to vector<96x1xf32>
    %cst_3 = arith.constant 1.280000e+02 : f32
    %10 = vector.broadcast %cst_3 : f32 to vector<96x1xf32>
    %11 = arith.divf %9, %10 : vector<96x1xf32>
    %cst_4 = arith.constant 9.99999974E-6 : f32
    %12 = vector.broadcast %cst_4 : f32 to vector<96x1xf32>
    %13 = arith.addf %11, %12 : vector<96x1xf32>
    %14 = math.rsqrt %13 : vector<96x1xf32>
    %15 = vector.broadcast %14 : vector<96x1xf32> to vector<96x128xf32>
    %16 = arith.mulf %6, %15 : vector<96x128xf32>
    %c0_5 = arith.constant 0 : index
    %c0_6 = arith.constant 0 : index
    %17 = vector.load %arg2[%c0_5, %c0_6] : memref<1x128xf32, #tpu.memory_space<vmem>>, vector<1x128xf32>
    %18 = vector.broadcast %17 : vector<1x128xf32> to vector<96x128xf32>
    %19 = arith.mulf %16, %18 : vector<96x128xf32>
    %c0_7 = arith.constant 0 : index
    %c0_8 = arith.constant 0 : index
    %20 = vector.load %arg3[%c0_7, %c0_8] : memref<1x128xf32, #tpu.memory_space<vmem>>, vector<1x128xf32>
    %21 = vector.broadcast %20 : vector<1x128xf32> to vector<96x128xf32>
    %22 = arith.addf %19, %21 : vector<96x128xf32>
    %cst_9 = arith.constant 5.000000e-01 : f32
    %23 = vector.broadcast %cst_9 : f32 to vector<96x128xf32>
    %24 = arith.mulf %23, %22 : vector<96x128xf32>
    %cst_10 = arith.constant 0.707106769 : f32
    %25 = vector.broadcast %cst_10 : f32 to vector<96x128xf32>
    %26 = arith.mulf %22, %25 : vector<96x128xf32>
    %cst_11 = arith.constant 0.000000e+00 : f32
    %27 = vector.broadcast %cst_11 : f32 to vector<96x128xf32>
    %28 = arith.cmpf oge, %26, %27 : vector<96x128xf32>
    %cst_12 = arith.constant 1.000000e+00 : f32
    %cst_13 = arith.constant -1.000000e+00 : f32
    %29 = vector.broadcast %cst_12 : f32 to vector<96x128xf32>
    %30 = vector.broadcast %cst_13 : f32 to vector<96x128xf32>
    %31 = arith.select %28, %29, %30 : vector<96x128xi1>, vector<96x128xf32>
    %32 = math.absf %26 : vector<96x128xf32>
    %cst_14 = arith.constant 0.327591091 : f32
    %33 = vector.broadcast %cst_14 : f32 to vector<96x128xf32>
    %34 = arith.mulf %33, %32 : vector<96x128xf32>
    %cst_15 = arith.constant 1.000000e+00 : f32
    %35 = vector.broadcast %cst_15 : f32 to vector<96x128xf32>
    %36 = arith.addf %35, %34 : vector<96x128xf32>
    %cst_16 = arith.constant 1.000000e+00 : f32
    %37 = vector.broadcast %cst_16 : f32 to vector<96x128xf32>
    %38 = arith.divf %37, %36 : vector<96x128xf32>
    %cst_17 = arith.constant 1.06140542 : f32
    %39 = vector.broadcast %cst_17 : f32 to vector<96x128xf32>
    %40 = arith.mulf %39, %38 : vector<96x128xf32>
    %cst_18 = arith.constant -1.45315206 : f32
    %41 = vector.broadcast %cst_18 : f32 to vector<96x128xf32>
    %42 = arith.addf %40, %41 : vector<96x128xf32>
    %43 = arith.mulf %42, %38 : vector<96x128xf32>
    %cst_19 = arith.constant 1.42141378 : f32
    %44 = vector.broadcast %cst_19 : f32 to vector<96x128xf32>
    %45 = arith.addf %43, %44 : vector<96x128xf32>
    %46 = arith.mulf %45, %38 : vector<96x128xf32>
    %cst_20 = arith.constant -0.284496725 : f32
    %47 = vector.broadcast %cst_20 : f32 to vector<96x128xf32>
    %48 = arith.addf %46, %47 : vector<96x128xf32>
    %49 = arith.mulf %48, %38 : vector<96x128xf32>
    %cst_21 = arith.constant 0.254829586 : f32
    %50 = vector.broadcast %cst_21 : f32 to vector<96x128xf32>
    %51 = arith.addf %49, %50 : vector<96x128xf32>
    %52 = arith.mulf %51, %38 : vector<96x128xf32>
    %cst_22 = arith.constant 0.000000e+00 : f32
    %53 = vector.broadcast %cst_22 : f32 to vector<96x128xf32>
    %54 = arith.subf %53, %32 : vector<96x128xf32>
    %55 = arith.mulf %54, %32 : vector<96x128xf32>
    %56 = math.exp %55 : vector<96x128xf32>
    %57 = arith.mulf %52, %56 : vector<96x128xf32>
    %cst_23 = arith.constant 1.000000e+00 : f32
    %58 = vector.broadcast %cst_23 : f32 to vector<96x128xf32>
    %59 = arith.subf %58, %57 : vector<96x128xf32>
    %60 = arith.mulf %31, %59 : vector<96x128xf32>
    %cst_24 = arith.constant 1.000000e+00 : f32
    %61 = vector.broadcast %cst_24 : f32 to vector<96x128xf32>
    %62 = arith.addf %61, %60 : vector<96x128xf32>
    %63 = arith.mulf %24, %62 : vector<96x128xf32>
    %c0_25 = arith.constant 0 : index
    %c0_26 = arith.constant 0 : index
    %64 = vector.load %arg4[%c0_25, %c0_26] : memref<96x128xf32, #tpu.memory_space<vmem>>, vector<96x128xf32>
    tpu.vector_store %arg4[%c0_25, %c0_26], %63 {strides = array<i32>} : memref<96x128xf32, #tpu.memory_space<vmem>>, vector<96x128xf32>,
    return
  }
  func.func @transform_0(%arg0: i32) -> (i32, i32) {
    %c0_i32 = arith.constant 0 : i32
    %c0_i32_0 = arith.constant 0 : i32
    return %arg0, %c0_i32 : i32, i32
  }
  func.func @transform_1(%arg0: i32) -> (i32, i32) {
    %c0_i32 = arith.constant 0 : i32
    %c0_i32_0 = arith.constant 0 : i32
    %c0_i32_1 = arith.constant 0 : i32
    return %c0_i32, %c0_i32_0 : i32, i32
  }
  func.func @transform_2(%arg0: i32) -> (i32, i32) {
    %c0_i32 = arith.constant 0 : i32
    %c0_i32_0 = arith.constant 0 : i32
    %c0_i32_1 = arith.constant 0 : i32
    return %c0_i32, %c0_i32_0 : i32, i32
  }
  func.func @transform_3(%arg0: i32) -> (i32, i32) {
    %c0_i32 = arith.constant 0 : i32
    %c0_i32_0 = arith.constant 0 : i32
    return %arg0, %c0_i32 : i32, i32
  }
}

module attributes {stable_mosaic.version = 11 : i64} {
  func.func @kernel(%arg0: i32, %arg1: memref<3x48x56xbf16, #tpu.memory_space<vmem>>, %arg2: memref<48x1xf32, #tpu.memory_space<vmem>>, %arg3: memref<1x56x130xf32, #tpu.memory_space<vmem>>, %arg4: memref<1x48x128xf32, #tpu.memory_space<vmem>>, %arg5: memref<1x48x128xf32, #tpu.memory_space<vmem>>) attributes {dimension_semantics = [#tpu.dimension_semantics<parallel>], iteration_bounds = array<i64: 2>, scalar_prefetch = 0 : i64, scratch_operands = 0 : i64, tpu.core_type = #tpu.core_type<tc>, window_params = [{pipeline_mode = #tpu.pipeline_mode<synchronous>, transform_indices = @transform_0, window_bounds = array<i64: 3, 48, 56>}, {pipeline_mode = #tpu.pipeline_mode<synchronous>, transform_indices = @transform_1, window_bounds = array<i64: 48, 1>}, {transform_indices = @transform_2, window_bounds = array<i64: 1, 56, 130>}, {transform_indices = @transform_3, window_bounds = array<i64: 1, 48, 128>}, {transform_indices = @transform_4, window_bounds = array<i64: 1, 48, 128>}]} {
    %cst = arith.constant 0.000000e+00 : f32
    %0 = vector.broadcast %cst : f32 to vector<48x128xf32>
    %c0 = arith.constant 0 : index
    %c0_0 = arith.constant 0 : index
    %c0_1 = arith.constant 0 : index
    %1 = vector.load %arg3[%c0, %c0_0, %c0_1] : memref<1x56x130xf32, #tpu.memory_space<vmem>>, vector<1x56x128xf32>
    %2 = vector.shape_cast %1 : vector<1x56x128xf32> to vector<56x128xf32>
    %3 = arith.truncf %2 : vector<56x128xf32> to vector<56x128xbf16>
    %c0_2 = arith.constant 0 : index
    %c0_3 = arith.constant 0 : index
    %c0_4 = arith.constant 0 : index
    %4 = vector.load %arg1[%c0_2, %c0_3, %c0_4] : memref<3x48x56xbf16, #tpu.memory_space<vmem>>, vector<1x48x56xbf16>
    %5 = vector.shape_cast %4 : vector<1x48x56xbf16> to vector<48x56xbf16>
    %cst_5 = arith.constant dense<0.000000e+00> : vector<48x128xf32>
    %6 = tpu.matmul %5, %3, %cst_5 {dimension_numbers = #tpu.dot_dimension_numbers<[1], [0], [0], [1], [0, 0, 1, 1], [], []>} : vector<48x56xbf16>, vector<56x128xbf16>, vector<48x128xf32> -> vector<48x128xf32>
    %7 = arith.addf %0, %6 : vector<48x128xf32>
    %c0_6 = arith.constant 0 : index
    %c0_7 = arith.constant 0 : index
    %c1 = arith.constant 1 : index
    %8 = vector.load %arg3[%c0_6, %c0_7, %c1] : memref<1x56x130xf32, #tpu.memory_space<vmem>>, vector<1x56x128xf32>
    %9 = vector.shape_cast %8 : vector<1x56x128xf32> to vector<56x128xf32>
    %10 = arith.truncf %9 : vector<56x128xf32> to vector<56x128xbf16>
    %c1_8 = arith.constant 1 : index
    %c0_9 = arith.constant 0 : index
    %c0_10 = arith.constant 0 : index
    %11 = vector.load %arg1[%c1_8, %c0_9, %c0_10] : memref<3x48x56xbf16, #tpu.memory_space<vmem>>, vector<1x48x56xbf16>
    %12 = vector.shape_cast %11 : vector<1x48x56xbf16> to vector<48x56xbf16>
    %cst_11 = arith.constant dense<0.000000e+00> : vector<48x128xf32>
    %13 = tpu.matmul %12, %10, %cst_11 {dimension_numbers = #tpu.dot_dimension_numbers<[1], [0], [0], [1], [0, 0, 1, 1], [], []>} : vector<48x56xbf16>, vector<56x128xbf16>, vector<48x128xf32> -> vector<48x128xf32>
    %14 = arith.addf %7, %13 : vector<48x128xf32>
    %c0_12 = arith.constant 0 : index
    %c0_13 = arith.constant 0 : index
    %c2 = arith.constant 2 : index
    %15 = vector.load %arg3[%c0_12, %c0_13, %c2] : memref<1x56x130xf32, #tpu.memory_space<vmem>>, vector<1x56x128xf32>
    %16 = vector.shape_cast %15 : vector<1x56x128xf32> to vector<56x128xf32>
    %17 = arith.truncf %16 : vector<56x128xf32> to vector<56x128xbf16>
    %c2_14 = arith.constant 2 : index
    %c0_15 = arith.constant 0 : index
    %c0_16 = arith.constant 0 : index
    %18 = vector.load %arg1[%c2_14, %c0_15, %c0_16] : memref<3x48x56xbf16, #tpu.memory_space<vmem>>, vector<1x48x56xbf16>
    %19 = vector.shape_cast %18 : vector<1x48x56xbf16> to vector<48x56xbf16>
    %cst_17 = arith.constant dense<0.000000e+00> : vector<48x128xf32>
    %20 = tpu.matmul %19, %17, %cst_17 {dimension_numbers = #tpu.dot_dimension_numbers<[1], [0], [0], [1], [0, 0, 1, 1], [], []>} : vector<48x56xbf16>, vector<56x128xbf16>, vector<48x128xf32> -> vector<48x128xf32>
    %21 = arith.addf %14, %20 : vector<48x128xf32>
    %c0_18 = arith.constant 0 : index
    %c0_19 = arith.constant 0 : index
    %22 = vector.load %arg2[%c0_18, %c0_19] : memref<48x1xf32, #tpu.memory_space<vmem>>, vector<48x1xf32>
    %23 = vector.broadcast %22 : vector<48x1xf32> to vector<48x128xf32>
    %24 = arith.addf %21, %23 : vector<48x128xf32>
    %c0_20 = arith.constant 0 : index
    %c0_21 = arith.constant 0 : index
    %c0_22 = arith.constant 0 : index
    %25 = vector.load %arg4[%c0_20, %c0_21, %c0_22] : memref<1x48x128xf32, #tpu.memory_space<vmem>>, vector<1x48x128xf32>
    %26 = vector.shape_cast %25 : vector<1x48x128xf32> to vector<48x128xf32>
    %27 = arith.addf %24, %26 : vector<48x128xf32>
    %c0_23 = arith.constant 0 : index
    %c0_24 = arith.constant 0 : index
    %c0_25 = arith.constant 0 : index
    %28 = vector.load %arg5[%c0_23, %c0_24, %c0_25] : memref<1x48x128xf32, #tpu.memory_space<vmem>>, vector<1x48x128xf32>
    %29 = vector.shape_cast %28 : vector<1x48x128xf32> to vector<48x128xf32>
    %30 = vector.shape_cast %27 : vector<48x128xf32> to vector<1x48x128xf32>
    tpu.vector_store %arg5[%c0_23, %c0_24, %c0_25], %30 {strides = array<i32>} : memref<1x48x128xf32, #tpu.memory_space<vmem>>, vector<1x48x128xf32>,
    return
  }
  func.func @transform_0(%arg0: i32) -> (i32, i32, i32) {
    %c0_i32 = arith.constant 0 : i32
    %c0_i32_0 = arith.constant 0 : i32
    %c0_i32_1 = arith.constant 0 : i32
    %c0_i32_2 = arith.constant 0 : i32
    return %c0_i32, %c0_i32_0, %c0_i32_1 : i32, i32, i32
  }
  func.func @transform_1(%arg0: i32) -> (i32, i32) {
    %c0_i32 = arith.constant 0 : i32
    %c0_i32_0 = arith.constant 0 : i32
    %c0_i32_1 = arith.constant 0 : i32
    return %c0_i32, %c0_i32_0 : i32, i32
  }
  func.func @transform_2(%arg0: i32) -> (i32, i32, i32) {
    %c0_i32 = arith.constant 0 : i32
    %c0_i32_0 = arith.constant 0 : i32
    %c0_i32_1 = arith.constant 0 : i32
    return %arg0, %c0_i32, %c0_i32_0 : i32, i32, i32
  }
  func.func @transform_3(%arg0: i32) -> (i32, i32, i32) {
    %c0_i32 = arith.constant 0 : i32
    %c0_i32_0 = arith.constant 0 : i32
    %c0_i32_1 = arith.constant 0 : i32
    return %arg0, %c0_i32, %c0_i32_0 : i32, i32, i32
  }
  func.func @transform_4(%arg0: i32) -> (i32, i32, i32) {
    %c0_i32 = arith.constant 0 : i32
    %c0_i32_0 = arith.constant 0 : i32
    %c0_i32_1 = arith.constant 0 : i32
    return %arg0, %c0_i32, %c0_i32_0 : i32, i32, i32
  }
}

module attributes {stable_mosaic.version = 11 : i64} {
  func.func @kernel(%arg0: i32, %arg1: i32, %arg2: i32, %arg3: memref<8x32xf32, #tpu.memory_space<vmem>>, %arg4: memref<32x256xbf16, #tpu.memory_space<vmem>>, %arg5: memref<1x256xf32, #tpu.memory_space<vmem>>, %arg6: memref<8x256xf32, #tpu.memory_space<vmem>>, %arg7: memref<8x256xf32, #tpu.memory_space<vmem>>) attributes {dimension_semantics = [#tpu.dimension_semantics<parallel>, #tpu.dimension_semantics<parallel>, #tpu.dimension_semantics<arbitrary>], iteration_bounds = array<i64: 1, 1, 1>, scalar_prefetch = 0 : i64, scratch_operands = 1 : i64, tpu.core_type = #tpu.core_type<tc>, window_params = [{transform_indices = @transform_0, window_bounds = array<i64: 8, 32>}, {transform_indices = @transform_1, window_bounds = array<i64: 32, 256>}, {transform_indices = @transform_2, window_bounds = array<i64: 1, 256>}, {transform_indices = @transform_3, window_bounds = array<i64: 8, 256>}]} {
    %c0_i32 = arith.constant 0 : i32
    %0 = arith.cmpi eq, %arg2, %c0_i32 : i32
    %1 = arith.extui %0 : i1 to i32
    %c0_i32_0 = arith.constant 0 : i32
    %2 = arith.cmpi ne, %1, %c0_i32_0 : i32
    scf.if %2 {
      %cst_10 = arith.constant 0.000000e+00 : f32
      %13 = vector.broadcast %cst_10 : f32 to vector<8x256xf32>
      %c0_11 = arith.constant 0 : index
      %c0_12 = arith.constant 0 : index
      %14 = vector.load %arg7[%c0_11, %c0_12] : memref<8x256xf32, #tpu.memory_space<vmem>>, vector<8x256xf32>
      tpu.vector_store %arg7[%c0_11, %c0_12], %13 {strides = array<i32>} : memref<8x256xf32, #tpu.memory_space<vmem>>, vector<8x256xf32>,
    } else {
    }
    %c0 = arith.constant 0 : index
    %c0_1 = arith.constant 0 : index
    %3 = vector.load %arg7[%c0, %c0_1] : memref<8x256xf32, #tpu.memory_space<vmem>>, vector<8x256xf32>
    %c0_2 = arith.constant 0 : index
    %c0_3 = arith.constant 0 : index
    %4 = vector.load %arg3[%c0_2, %c0_3] : memref<8x32xf32, #tpu.memory_space<vmem>>, vector<8x32xf32>
    %5 = arith.truncf %4 : vector<8x32xf32> to vector<8x32xbf16>
    %c0_4 = arith.constant 0 : index
    %c0_5 = arith.constant 0 : index
    %6 = vector.load %arg4[%c0_4, %c0_5] : memref<32x256xbf16, #tpu.memory_space<vmem>>, vector<32x256xbf16>
    %cst = arith.constant dense<0.000000e+00> : vector<8x256xf32>
    %7 = tpu.matmul %5, %6, %cst {dimension_numbers = #tpu.dot_dimension_numbers<[1], [0], [0], [1], [0, 0, 1, 1], [], []>} : vector<8x32xbf16>, vector<32x256xbf16>, vector<8x256xf32> -> vector<8x256xf32>
    %8 = arith.addf %3, %7 : vector<8x256xf32>
    %c0_6 = arith.constant 0 : index
    %c0_7 = arith.constant 0 : index
    %9 = vector.load %arg7[%c0_6, %c0_7] : memref<8x256xf32, #tpu.memory_space<vmem>>, vector<8x256xf32>
    tpu.vector_store %arg7[%c0_6, %c0_7], %8 {strides = array<i32>} : memref<8x256xf32, #tpu.memory_space<vmem>>, vector<8x256xf32>,
    %c0_i32_8 = arith.constant 0 : i32
    %10 = arith.cmpi eq, %arg2, %c0_i32_8 : i32
    %11 = arith.extui %10 : i1 to i32
    %c0_i32_9 = arith.constant 0 : i32
    %12 = arith.cmpi ne, %11, %c0_i32_9 : i32
    scf.if %12 {
      %c0_10 = arith.constant 0 : index
      %c0_11 = arith.constant 0 : index
      %13 = vector.load %arg7[%c0_10, %c0_11] : memref<8x256xf32, #tpu.memory_space<vmem>>, vector<8x256xf32>
      %c0_12 = arith.constant 0 : index
      %c0_13 = arith.constant 0 : index
      %14 = vector.load %arg5[%c0_12, %c0_13] : memref<1x256xf32, #tpu.memory_space<vmem>>, vector<1x256xf32>
      %15 = vector.broadcast %14 : vector<1x256xf32> to vector<8x256xf32>
      %16 = arith.addf %13, %15 : vector<8x256xf32>
      %c0_14 = arith.constant 0 : index
      %c0_15 = arith.constant 0 : index
      %17 = vector.load %arg6[%c0_14, %c0_15] : memref<8x256xf32, #tpu.memory_space<vmem>>, vector<8x256xf32>
      tpu.vector_store %arg6[%c0_14, %c0_15], %16 {strides = array<i32>} : memref<8x256xf32, #tpu.memory_space<vmem>>, vector<8x256xf32>,
    } else {
    }
    return
  }
  func.func @transform_0(%arg0: i32, %arg1: i32, %arg2: i32) -> (i32, i32) {
    %c0_i32 = arith.constant 0 : i32
    return %arg0, %arg2 : i32, i32
  }
  func.func @transform_1(%arg0: i32, %arg1: i32, %arg2: i32) -> (i32, i32) {
    %c0_i32 = arith.constant 0 : i32
    return %arg2, %arg1 : i32, i32
  }
  func.func @transform_2(%arg0: i32, %arg1: i32, %arg2: i32) -> (i32, i32) {
    %c0_i32 = arith.constant 0 : i32
    %c0_i32_0 = arith.constant 0 : i32
    return %c0_i32, %arg1 : i32, i32
  }
  func.func @transform_3(%arg0: i32, %arg1: i32, %arg2: i32) -> (i32, i32) {
    %c0_i32 = arith.constant 0 : i32
    return %arg0, %arg1 : i32, i32
  }
}

module attributes {stable_mosaic.version = 11 : i64} {
  func.func @kernel(%arg0: i32, %arg1: i32, %arg2: i32, %arg3: memref<8x256xf32, #tpu.memory_space<vmem>>, %arg4: memref<256x32xbf16, #tpu.memory_space<vmem>>, %arg5: memref<1x32xf32, #tpu.memory_space<vmem>>, %arg6: memref<8x32xf32, #tpu.memory_space<vmem>>, %arg7: memref<8x32xf32, #tpu.memory_space<vmem>>) attributes {dimension_semantics = [#tpu.dimension_semantics<parallel>, #tpu.dimension_semantics<parallel>, #tpu.dimension_semantics<arbitrary>], iteration_bounds = array<i64: 1, 1, 1>, scalar_prefetch = 0 : i64, scratch_operands = 1 : i64, tpu.core_type = #tpu.core_type<tc>, window_params = [{transform_indices = @transform_0, window_bounds = array<i64: 8, 256>}, {transform_indices = @transform_1, window_bounds = array<i64: 256, 32>}, {transform_indices = @transform_2, window_bounds = array<i64: 1, 32>}, {transform_indices = @transform_3, window_bounds = array<i64: 8, 32>}]} {
    %c0_i32 = arith.constant 0 : i32
    %0 = arith.cmpi eq, %arg2, %c0_i32 : i32
    %1 = arith.extui %0 : i1 to i32
    %c0_i32_0 = arith.constant 0 : i32
    %2 = arith.cmpi ne, %1, %c0_i32_0 : i32
    scf.if %2 {
      %cst_10 = arith.constant 0.000000e+00 : f32
      %13 = vector.broadcast %cst_10 : f32 to vector<8x32xf32>
      %c0_11 = arith.constant 0 : index
      %c0_12 = arith.constant 0 : index
      %14 = vector.load %arg7[%c0_11, %c0_12] : memref<8x32xf32, #tpu.memory_space<vmem>>, vector<8x32xf32>
      tpu.vector_store %arg7[%c0_11, %c0_12], %13 {strides = array<i32>} : memref<8x32xf32, #tpu.memory_space<vmem>>, vector<8x32xf32>,
    } else {
    }
    %c0 = arith.constant 0 : index
    %c0_1 = arith.constant 0 : index
    %3 = vector.load %arg7[%c0, %c0_1] : memref<8x32xf32, #tpu.memory_space<vmem>>, vector<8x32xf32>
    %c0_2 = arith.constant 0 : index
    %c0_3 = arith.constant 0 : index
    %4 = vector.load %arg3[%c0_2, %c0_3] : memref<8x256xf32, #tpu.memory_space<vmem>>, vector<8x256xf32>
    %5 = arith.truncf %4 : vector<8x256xf32> to vector<8x256xbf16>
    %c0_4 = arith.constant 0 : index
    %c0_5 = arith.constant 0 : index
    %6 = vector.load %arg4[%c0_4, %c0_5] : memref<256x32xbf16, #tpu.memory_space<vmem>>, vector<256x32xbf16>
    %cst = arith.constant dense<0.000000e+00> : vector<8x32xf32>
    %7 = tpu.matmul %5, %6, %cst {dimension_numbers = #tpu.dot_dimension_numbers<[1], [0], [0], [1], [0, 0, 1, 1], [], []>} : vector<8x256xbf16>, vector<256x32xbf16>, vector<8x32xf32> -> vector<8x32xf32>
    %8 = arith.addf %3, %7 : vector<8x32xf32>
    %c0_6 = arith.constant 0 : index
    %c0_7 = arith.constant 0 : index
    %9 = vector.load %arg7[%c0_6, %c0_7] : memref<8x32xf32, #tpu.memory_space<vmem>>, vector<8x32xf32>
    tpu.vector_store %arg7[%c0_6, %c0_7], %8 {strides = array<i32>} : memref<8x32xf32, #tpu.memory_space<vmem>>, vector<8x32xf32>,
    %c0_i32_8 = arith.constant 0 : i32
    %10 = arith.cmpi eq, %arg2, %c0_i32_8 : i32
    %11 = arith.extui %10 : i1 to i32
    %c0_i32_9 = arith.constant 0 : i32
    %12 = arith.cmpi ne, %11, %c0_i32_9 : i32
    scf.if %12 {
      %c0_10 = arith.constant 0 : index
      %c0_11 = arith.constant 0 : index
      %13 = vector.load %arg7[%c0_10, %c0_11] : memref<8x32xf32, #tpu.memory_space<vmem>>, vector<8x32xf32>
      %c0_12 = arith.constant 0 : index
      %c0_13 = arith.constant 0 : index
      %14 = vector.load %arg5[%c0_12, %c0_13] : memref<1x32xf32, #tpu.memory_space<vmem>>, vector<1x32xf32>
      %15 = vector.broadcast %14 : vector<1x32xf32> to vector<8x32xf32>
      %16 = arith.addf %13, %15 : vector<8x32xf32>
      %c0_14 = arith.constant 0 : index
      %c0_15 = arith.constant 0 : index
      %17 = vector.load %arg6[%c0_14, %c0_15] : memref<8x32xf32, #tpu.memory_space<vmem>>, vector<8x32xf32>
      tpu.vector_store %arg6[%c0_14, %c0_15], %16 {strides = array<i32>} : memref<8x32xf32, #tpu.memory_space<vmem>>, vector<8x32xf32>,
    } else {
    }
    return
  }
  func.func @transform_0(%arg0: i32, %arg1: i32, %arg2: i32) -> (i32, i32) {
    %c0_i32 = arith.constant 0 : i32
    return %arg0, %arg2 : i32, i32
  }
  func.func @transform_1(%arg0: i32, %arg1: i32, %arg2: i32) -> (i32, i32) {
    %c0_i32 = arith.constant 0 : i32
    return %arg2, %arg1 : i32, i32
  }
  func.func @transform_2(%arg0: i32, %arg1: i32, %arg2: i32) -> (i32, i32) {
    %c0_i32 = arith.constant 0 : i32
    %c0_i32_0 = arith.constant 0 : i32
    return %c0_i32, %arg1 : i32, i32
  }
  func.func @transform_3(%arg0: i32, %arg1: i32, %arg2: i32) -> (i32, i32) {
    %c0_i32 = arith.constant 0 : i32
    return %arg0, %arg1 : i32, i32
  }
}

module attributes {stable_mosaic.version = 11 : i64} {
  func.func @kernel(%arg0: memref<4x2x256xf32, #tpu.memory_space<vmem>>, %arg1: memref<32x128xbf16, #tpu.memory_space<vmem>>, %arg2: memref<32x128xbf16, #tpu.memory_space<vmem>>, %arg3: memref<4x2x32xf32, #tpu.memory_space<vmem>>, %arg4: memref<4x2x32xf32, #tpu.memory_space<vmem>>, %arg5: memref<2x32xf32, #tpu.memory_space<vmem>>, %arg6: memref<2x32xf32, #tpu.memory_space<vmem>>) attributes {dimension_semantics = [], scalar_prefetch = 0 : i64, scratch_operands = 2 : i64, tpu.core_type = #tpu.core_type<tc>} {
    %cst = arith.constant 0.000000e+00 : f32
    %0 = vector.broadcast %cst : f32 to vector<2x32xf32>
    %c0 = arith.constant 0 : index
    %c0_0 = arith.constant 0 : index
    %1 = vector.load %arg5[%c0, %c0_0] : memref<2x32xf32, #tpu.memory_space<vmem>>, vector<2x32xf32>
    tpu.vector_store %arg5[%c0, %c0_0], %0 {strides = array<i32>} : memref<2x32xf32, #tpu.memory_space<vmem>>, vector<2x32xf32>,
    %cst_1 = arith.constant 0.000000e+00 : f32
    %2 = vector.broadcast %cst_1 : f32 to vector<2x32xf32>
    %c0_2 = arith.constant 0 : index
    %c0_3 = arith.constant 0 : index
    %3 = vector.load %arg6[%c0_2, %c0_3] : memref<2x32xf32, #tpu.memory_space<vmem>>, vector<2x32xf32>
    tpu.vector_store %arg6[%c0_2, %c0_3], %2 {strides = array<i32>} : memref<2x32xf32, #tpu.memory_space<vmem>>, vector<2x32xf32>,
    %c0_i32 = arith.constant 0 : i32
    %c4_i32 = arith.constant 4 : i32
    %4 = arith.addi %c0_i32, %c4_i32 : i32
    %c1_i32 = arith.constant 1 : i32
    scf.for %arg7 = %c0_i32 to %4 step %c1_i32  : i32 {
      %10 = arith.index_cast %arg7 : i32 to index
      %c0_15 = arith.constant 0 : index
      %c0_16 = arith.constant 0 : index
      %11 = vector.load %arg0[%10, %c0_15, %c0_16] : memref<4x2x256xf32, #tpu.memory_space<vmem>>, vector<1x2x256xf32>
      %12 = vector.shape_cast %11 : vector<1x2x256xf32> to vector<2x256xf32>
      %13 = vector.extract_strided_slice %12 {offsets = [0, 0], sizes = [2, 128], strides = [1, 1]} : vector<2x256xf32> to vector<2x128xf32>
      %c0_17 = arith.constant 0 : index
      %c0_18 = arith.constant 0 : index
      %14 = vector.load %arg5[%c0_17, %c0_18] : memref<2x32xf32, #tpu.memory_space<vmem>>, vector<2x32xf32>
      %15 = arith.truncf %14 : vector<2x32xf32> to vector<2x32xbf16>
      %c0_19 = arith.constant 0 : index
      %c0_20 = arith.constant 0 : index
      %16 = vector.load %arg1[%c0_19, %c0_20] : memref<32x128xbf16, #tpu.memory_space<vmem>>, vector<32x128xbf16>
      %cst_21 = arith.constant dense<0.000000e+00> : vector<2x128xf32>
      %17 = tpu.matmul %15, %16, %cst_21 {dimension_numbers = #tpu.dot_dimension_numbers<[1], [0], [0], [1], [0, 0, 1, 1], [], []>} : vector<2x32xbf16>, vector<32x128xbf16>, vector<2x128xf32> -> vector<2x128xf32>
      %18 = arith.addf %13, %17 : vector<2x128xf32>
      %19 = vector.extract_strided_slice %18 {offsets = [0, 0], sizes = [2, 32], strides = [1, 1]} : vector<2x128xf32> to vector<2x32xf32>
      %20 = arith.negf %19 : vector<2x32xf32>
      %21 = math.exp %20 : vector<2x32xf32>
      %cst_22 = arith.constant 1.000000e+00 : f32
      %22 = vector.broadcast %cst_22 : f32 to vector<2x32xf32>
      %23 = arith.addf %22, %21 : vector<2x32xf32>
      %24 = arith.divf %22, %23 : vector<2x32xf32>
      %25 = vector.extract_strided_slice %18 {offsets = [0, 32], sizes = [2, 32], strides = [1, 1]} : vector<2x128xf32> to vector<2x32xf32>
      %26 = arith.negf %25 : vector<2x32xf32>
      %27 = math.exp %26 : vector<2x32xf32>
      %cst_23 = arith.constant 1.000000e+00 : f32
      %28 = vector.broadcast %cst_23 : f32 to vector<2x32xf32>
      %29 = arith.addf %28, %27 : vector<2x32xf32>
      %30 = arith.divf %28, %29 : vector<2x32xf32>
      %31 = vector.extract_strided_slice %18 {offsets = [0, 64], sizes = [2, 32], strides = [1, 1]} : vector<2x128xf32> to vector<2x32xf32>
      %32 = math.tanh %31 : vector<2x32xf32>
      %33 = vector.extract_strided_slice %18 {offsets = [0, 96], sizes = [2, 32], strides = [1, 1]} : vector<2x128xf32> to vector<2x32xf32>
      %34 = arith.negf %33 : vector<2x32xf32>
      %35 = math.exp %34 : vector<2x32xf32>
      %cst_24 = arith.constant 1.000000e+00 : f32
      %36 = vector.broadcast %cst_24 : f32 to vector<2x32xf32>
      %37 = arith.addf %36, %35 : vector<2x32xf32>
      %38 = arith.divf %36, %37 : vector<2x32xf32>
      %c0_25 = arith.constant 0 : index
      %c0_26 = arith.constant 0 : index
      %39 = vector.load %arg6[%c0_25, %c0_26] : memref<2x32xf32, #tpu.memory_space<vmem>>, vector<2x32xf32>
      %40 = arith.mulf %30, %39 : vector<2x32xf32>
      %41 = arith.mulf %24, %32 : vector<2x32xf32>
      %42 = arith.addf %40, %41 : vector<2x32xf32>
      %43 = math.tanh %42 : vector<2x32xf32>
      %44 = arith.mulf %38, %43 : vector<2x32xf32>
      %c0_27 = arith.constant 0 : index
      %c0_28 = arith.constant 0 : index
      %45 = vector.load %arg6[%c0_27, %c0_28] : memref<2x32xf32, #tpu.memory_space<vmem>>, vector<2x32xf32>
      tpu.vector_store %arg6[%c0_27, %c0_28], %42 {strides = array<i32>} : memref<2x32xf32, #tpu.memory_space<vmem>>, vector<2x32xf32>,
      %c0_29 = arith.constant 0 : index
      %c0_30 = arith.constant 0 : index
      %46 = vector.load %arg5[%c0_29, %c0_30] : memref<2x32xf32, #tpu.memory_space<vmem>>, vector<2x32xf32>
      tpu.vector_store %arg5[%c0_29, %c0_30], %44 {strides = array<i32>} : memref<2x32xf32, #tpu.memory_space<vmem>>, vector<2x32xf32>,
      %47 = arith.index_cast %arg7 : i32 to index
      %c0_31 = arith.constant 0 : index
      %c0_32 = arith.constant 0 : index
      %48 = vector.load %arg3[%47, %c0_31, %c0_32] : memref<4x2x32xf32, #tpu.memory_space<vmem>>, vector<1x2x32xf32>
      %49 = vector.shape_cast %48 : vector<1x2x32xf32> to vector<2x32xf32>
      %50 = vector.shape_cast %44 : vector<2x32xf32> to vector<1x2x32xf32>
      tpu.vector_store %arg3[%47, %c0_31, %c0_32], %50 {strides = array<i32>} : memref<4x2x32xf32, #tpu.memory_space<vmem>>, vector<1x2x32xf32>,
    }
    %c4_i32_4 = arith.constant 4 : i32
    %cst_5 = arith.constant 0.000000e+00 : f32
    %5 = vector.broadcast %cst_5 : f32 to vector<2x32xf32>
    %c0_6 = arith.constant 0 : index
    %c0_7 = arith.constant 0 : index
    %6 = vector.load %arg5[%c0_6, %c0_7] : memref<2x32xf32, #tpu.memory_space<vmem>>, vector<2x32xf32>
    tpu.vector_store %arg5[%c0_6, %c0_7], %5 {strides = array<i32>} : memref<2x32xf32, #tpu.memory_space<vmem>>, vector<2x32xf32>,
    %cst_8 = arith.constant 0.000000e+00 : f32
    %7 = vector.broadcast %cst_8 : f32 to vector<2x32xf32>
    %c0_9 = arith.constant 0 : index
    %c0_10 = arith.constant 0 : index
    %8 = vector.load %arg6[%c0_9, %c0_10] : memref<2x32xf32, #tpu.memory_space<vmem>>, vector<2x32xf32>
    tpu.vector_store %arg6[%c0_9, %c0_10], %7 {strides = array<i32>} : memref<2x32xf32, #tpu.memory_space<vmem>>, vector<2x32xf32>,
    %c0_i32_11 = arith.constant 0 : i32
    %c4_i32_12 = arith.constant 4 : i32
    %9 = arith.addi %c0_i32_11, %c4_i32_12 : i32
    %c1_i32_13 = arith.constant 1 : i32
    scf.for %arg7 = %c0_i32_11 to %9 step %c1_i32_13  : i32 {
      %c3_i32 = arith.constant 3 : i32
      %10 = arith.subi %c3_i32, %arg7 : i32
      %11 = arith.index_cast %10 : i32 to index
      %c0_15 = arith.constant 0 : index
      %c0_16 = arith.constant 0 : index
      %12 = vector.load %arg0[%11, %c0_15, %c0_16] : memref<4x2x256xf32, #tpu.memory_space<vmem>>, vector<1x2x256xf32>
      %13 = vector.shape_cast %12 : vector<1x2x256xf32> to vector<2x256xf32>
      %14 = vector.extract_strided_slice %13 {offsets = [0, 128], sizes = [2, 128], strides = [1, 1]} : vector<2x256xf32> to vector<2x128xf32>
      %c0_17 = arith.constant 0 : index
      %c0_18 = arith.constant 0 : index
      %15 = vector.load %arg5[%c0_17, %c0_18] : memref<2x32xf32, #tpu.memory_space<vmem>>, vector<2x32xf32>
      %16 = arith.truncf %15 : vector<2x32xf32> to vector<2x32xbf16>
      %c0_19 = arith.constant 0 : index
      %c0_20 = arith.constant 0 : index
      %17 = vector.load %arg2[%c0_19, %c0_20] : memref<32x128xbf16, #tpu.memory_space<vmem>>, vector<32x128xbf16>
      %cst_21 = arith.constant dense<0.000000e+00> : vector<2x128xf32>
      %18 = tpu.matmul %16, %17, %cst_21 {dimension_numbers = #tpu.dot_dimension_numbers<[1], [0], [0], [1], [0, 0, 1, 1], [], []>} : vector<2x32xbf16>, vector<32x128xbf16>, vector<2x128xf32> -> vector<2x128xf32>
      %19 = arith.addf %14, %18 : vector<2x128xf32>
      %20 = vector.extract_strided_slice %19 {offsets = [0, 0], sizes = [2, 32], strides = [1, 1]} : vector<2x128xf32> to vector<2x32xf32>
      %21 = arith.negf %20 : vector<2x32xf32>
      %22 = math.exp %21 : vector<2x32xf32>
      %cst_22 = arith.constant 1.000000e+00 : f32
      %23 = vector.broadcast %cst_22 : f32 to vector<2x32xf32>
      %24 = arith.addf %23, %22 : vector<2x32xf32>
      %25 = arith.divf %23, %24 : vector<2x32xf32>
      %26 = vector.extract_strided_slice %19 {offsets = [0, 32], sizes = [2, 32], strides = [1, 1]} : vector<2x128xf32> to vector<2x32xf32>
      %27 = arith.negf %26 : vector<2x32xf32>
      %28 = math.exp %27 : vector<2x32xf32>
      %cst_23 = arith.constant 1.000000e+00 : f32
      %29 = vector.broadcast %cst_23 : f32 to vector<2x32xf32>
      %30 = arith.addf %29, %28 : vector<2x32xf32>
      %31 = arith.divf %29, %30 : vector<2x32xf32>
      %32 = vector.extract_strided_slice %19 {offsets = [0, 64], sizes = [2, 32], strides = [1, 1]} : vector<2x128xf32> to vector<2x32xf32>
      %33 = math.tanh %32 : vector<2x32xf32>
      %34 = vector.extract_strided_slice %19 {offsets = [0, 96], sizes = [2, 32], strides = [1, 1]} : vector<2x128xf32> to vector<2x32xf32>
      %35 = arith.negf %34 : vector<2x32xf32>
      %36 = math.exp %35 : vector<2x32xf32>
      %cst_24 = arith.constant 1.000000e+00 : f32
      %37 = vector.broadcast %cst_24 : f32 to vector<2x32xf32>
      %38 = arith.addf %37, %36 : vector<2x32xf32>
      %39 = arith.divf %37, %38 : vector<2x32xf32>
      %c0_25 = arith.constant 0 : index
      %c0_26 = arith.constant 0 : index
      %40 = vector.load %arg6[%c0_25, %c0_26] : memref<2x32xf32, #tpu.memory_space<vmem>>, vector<2x32xf32>
      %41 = arith.mulf %31, %40 : vector<2x32xf32>
      %42 = arith.mulf %25, %33 : vector<2x32xf32>
      %43 = arith.addf %41, %42 : vector<2x32xf32>
      %44 = math.tanh %43 : vector<2x32xf32>
      %45 = arith.mulf %39, %44 : vector<2x32xf32>
      %c0_27 = arith.constant 0 : index
      %c0_28 = arith.constant 0 : index
      %46 = vector.load %arg6[%c0_27, %c0_28] : memref<2x32xf32, #tpu.memory_space<vmem>>, vector<2x32xf32>
      tpu.vector_store %arg6[%c0_27, %c0_28], %43 {strides = array<i32>} : memref<2x32xf32, #tpu.memory_space<vmem>>, vector<2x32xf32>,
      %c0_29 = arith.constant 0 : index
      %c0_30 = arith.constant 0 : index
      %47 = vector.load %arg5[%c0_29, %c0_30] : memref<2x32xf32, #tpu.memory_space<vmem>>, vector<2x32xf32>
      tpu.vector_store %arg5[%c0_29, %c0_30], %45 {strides = array<i32>} : memref<2x32xf32, #tpu.memory_space<vmem>>, vector<2x32xf32>,
      %48 = arith.index_cast %10 : i32 to index
      %c0_31 = arith.constant 0 : index
      %c0_32 = arith.constant 0 : index
      %49 = vector.load %arg4[%48, %c0_31, %c0_32] : memref<4x2x32xf32, #tpu.memory_space<vmem>>, vector<1x2x32xf32>
      %50 = vector.shape_cast %49 : vector<1x2x32xf32> to vector<2x32xf32>
      %51 = vector.shape_cast %45 : vector<2x32xf32> to vector<1x2x32xf32>
      tpu.vector_store %arg4[%48, %c0_31, %c0_32], %51 {strides = array<i32>} : memref<4x2x32xf32, #tpu.memory_space<vmem>>, vector<1x2x32xf32>,
    }
    %c4_i32_14 = arith.constant 4 : i32
    return
  }
}

module attributes {stable_mosaic.version = 11 : i64} {
  func.func @kernel(%arg0: i32, %arg1: i32, %arg2: i32, %arg3: memref<8x64xf32, #tpu.memory_space<vmem>>, %arg4: memref<64x256xbf16, #tpu.memory_space<vmem>>, %arg5: memref<1x256xf32, #tpu.memory_space<vmem>>, %arg6: memref<8x256xf32, #tpu.memory_space<vmem>>, %arg7: memref<8x256xf32, #tpu.memory_space<vmem>>) attributes {dimension_semantics = [#tpu.dimension_semantics<parallel>, #tpu.dimension_semantics<parallel>, #tpu.dimension_semantics<arbitrary>], iteration_bounds = array<i64: 1, 1, 1>, scalar_prefetch = 0 : i64, scratch_operands = 1 : i64, tpu.core_type = #tpu.core_type<tc>, window_params = [{transform_indices = @transform_0, window_bounds = array<i64: 8, 64>}, {transform_indices = @transform_1, window_bounds = array<i64: 64, 256>}, {transform_indices = @transform_2, window_bounds = array<i64: 1, 256>}, {transform_indices = @transform_3, window_bounds = array<i64: 8, 256>}]} {
    %c0_i32 = arith.constant 0 : i32
    %0 = arith.cmpi eq, %arg2, %c0_i32 : i32
    %1 = arith.extui %0 : i1 to i32
    %c0_i32_0 = arith.constant 0 : i32
    %2 = arith.cmpi ne, %1, %c0_i32_0 : i32
    scf.if %2 {
      %cst_10 = arith.constant 0.000000e+00 : f32
      %13 = vector.broadcast %cst_10 : f32 to vector<8x256xf32>
      %c0_11 = arith.constant 0 : index
      %c0_12 = arith.constant 0 : index
      %14 = vector.load %arg7[%c0_11, %c0_12] : memref<8x256xf32, #tpu.memory_space<vmem>>, vector<8x256xf32>
      tpu.vector_store %arg7[%c0_11, %c0_12], %13 {strides = array<i32>} : memref<8x256xf32, #tpu.memory_space<vmem>>, vector<8x256xf32>,
    } else {
    }
    %c0 = arith.constant 0 : index
    %c0_1 = arith.constant 0 : index
    %3 = vector.load %arg7[%c0, %c0_1] : memref<8x256xf32, #tpu.memory_space<vmem>>, vector<8x256xf32>
    %c0_2 = arith.constant 0 : index
    %c0_3 = arith.constant 0 : index
    %4 = vector.load %arg3[%c0_2, %c0_3] : memref<8x64xf32, #tpu.memory_space<vmem>>, vector<8x64xf32>
    %5 = arith.truncf %4 : vector<8x64xf32> to vector<8x64xbf16>
    %c0_4 = arith.constant 0 : index
    %c0_5 = arith.constant 0 : index
    %6 = vector.load %arg4[%c0_4, %c0_5] : memref<64x256xbf16, #tpu.memory_space<vmem>>, vector<64x256xbf16>
    %cst = arith.constant dense<0.000000e+00> : vector<8x256xf32>
    %7 = tpu.matmul %5, %6, %cst {dimension_numbers = #tpu.dot_dimension_numbers<[1], [0], [0], [1], [0, 0, 1, 1], [], []>} : vector<8x64xbf16>, vector<64x256xbf16>, vector<8x256xf32> -> vector<8x256xf32>
    %8 = arith.addf %3, %7 : vector<8x256xf32>
    %c0_6 = arith.constant 0 : index
    %c0_7 = arith.constant 0 : index
    %9 = vector.load %arg7[%c0_6, %c0_7] : memref<8x256xf32, #tpu.memory_space<vmem>>, vector<8x256xf32>
    tpu.vector_store %arg7[%c0_6, %c0_7], %8 {strides = array<i32>} : memref<8x256xf32, #tpu.memory_space<vmem>>, vector<8x256xf32>,
    %c0_i32_8 = arith.constant 0 : i32
    %10 = arith.cmpi eq, %arg2, %c0_i32_8 : i32
    %11 = arith.extui %10 : i1 to i32
    %c0_i32_9 = arith.constant 0 : i32
    %12 = arith.cmpi ne, %11, %c0_i32_9 : i32
    scf.if %12 {
      %c0_10 = arith.constant 0 : index
      %c0_11 = arith.constant 0 : index
      %13 = vector.load %arg7[%c0_10, %c0_11] : memref<8x256xf32, #tpu.memory_space<vmem>>, vector<8x256xf32>
      %c0_12 = arith.constant 0 : index
      %c0_13 = arith.constant 0 : index
      %14 = vector.load %arg5[%c0_12, %c0_13] : memref<1x256xf32, #tpu.memory_space<vmem>>, vector<1x256xf32>
      %15 = vector.broadcast %14 : vector<1x256xf32> to vector<8x256xf32>
      %16 = arith.addf %13, %15 : vector<8x256xf32>
      %c0_14 = arith.constant 0 : index
      %c0_15 = arith.constant 0 : index
      %17 = vector.load %arg6[%c0_14, %c0_15] : memref<8x256xf32, #tpu.memory_space<vmem>>, vector<8x256xf32>
      tpu.vector_store %arg6[%c0_14, %c0_15], %16 {strides = array<i32>} : memref<8x256xf32, #tpu.memory_space<vmem>>, vector<8x256xf32>,
    } else {
    }
    return
  }
  func.func @transform_0(%arg0: i32, %arg1: i32, %arg2: i32) -> (i32, i32) {
    %c0_i32 = arith.constant 0 : i32
    return %arg0, %arg2 : i32, i32
  }
  func.func @transform_1(%arg0: i32, %arg1: i32, %arg2: i32) -> (i32, i32) {
    %c0_i32 = arith.constant 0 : i32
    return %arg2, %arg1 : i32, i32
  }
  func.func @transform_2(%arg0: i32, %arg1: i32, %arg2: i32) -> (i32, i32) {
    %c0_i32 = arith.constant 0 : i32
    %c0_i32_0 = arith.constant 0 : i32
    return %c0_i32, %arg1 : i32, i32
  }
  func.func @transform_3(%arg0: i32, %arg1: i32, %arg2: i32) -> (i32, i32) {
    %c0_i32 = arith.constant 0 : i32
    return %arg0, %arg1 : i32, i32
  }
}

module attributes {stable_mosaic.version = 11 : i64} {
  func.func @kernel(%arg0: i32, %arg1: i32, %arg2: i32, %arg3: memref<8x64xf32, #tpu.memory_space<vmem>>, %arg4: memref<64x128xbf16, #tpu.memory_space<vmem>>, %arg5: memref<1x128xf32, #tpu.memory_space<vmem>>, %arg6: memref<8x128xf32, #tpu.memory_space<vmem>>, %arg7: memref<8x128xf32, #tpu.memory_space<vmem>>) attributes {dimension_semantics = [#tpu.dimension_semantics<parallel>, #tpu.dimension_semantics<parallel>, #tpu.dimension_semantics<arbitrary>], iteration_bounds = array<i64: 1, 1, 1>, scalar_prefetch = 0 : i64, scratch_operands = 1 : i64, tpu.core_type = #tpu.core_type<tc>, window_params = [{transform_indices = @transform_0, window_bounds = array<i64: 8, 64>}, {transform_indices = @transform_1, window_bounds = array<i64: 64, 128>}, {transform_indices = @transform_2, window_bounds = array<i64: 1, 128>}, {transform_indices = @transform_3, window_bounds = array<i64: 8, 128>}]} {
    %c0_i32 = arith.constant 0 : i32
    %0 = arith.cmpi eq, %arg2, %c0_i32 : i32
    %1 = arith.extui %0 : i1 to i32
    %c0_i32_0 = arith.constant 0 : i32
    %2 = arith.cmpi ne, %1, %c0_i32_0 : i32
    scf.if %2 {
      %cst_10 = arith.constant 0.000000e+00 : f32
      %13 = vector.broadcast %cst_10 : f32 to vector<8x128xf32>
      %c0_11 = arith.constant 0 : index
      %c0_12 = arith.constant 0 : index
      %14 = vector.load %arg7[%c0_11, %c0_12] : memref<8x128xf32, #tpu.memory_space<vmem>>, vector<8x128xf32>
      tpu.vector_store %arg7[%c0_11, %c0_12], %13 {strides = array<i32>} : memref<8x128xf32, #tpu.memory_space<vmem>>, vector<8x128xf32>,
    } else {
    }
    %c0 = arith.constant 0 : index
    %c0_1 = arith.constant 0 : index
    %3 = vector.load %arg7[%c0, %c0_1] : memref<8x128xf32, #tpu.memory_space<vmem>>, vector<8x128xf32>
    %c0_2 = arith.constant 0 : index
    %c0_3 = arith.constant 0 : index
    %4 = vector.load %arg3[%c0_2, %c0_3] : memref<8x64xf32, #tpu.memory_space<vmem>>, vector<8x64xf32>
    %5 = arith.truncf %4 : vector<8x64xf32> to vector<8x64xbf16>
    %c0_4 = arith.constant 0 : index
    %c0_5 = arith.constant 0 : index
    %6 = vector.load %arg4[%c0_4, %c0_5] : memref<64x128xbf16, #tpu.memory_space<vmem>>, vector<64x128xbf16>
    %cst = arith.constant dense<0.000000e+00> : vector<8x128xf32>
    %7 = tpu.matmul %5, %6, %cst {dimension_numbers = #tpu.dot_dimension_numbers<[1], [0], [0], [1], [0, 0, 1, 1], [], []>} : vector<8x64xbf16>, vector<64x128xbf16>, vector<8x128xf32> -> vector<8x128xf32>
    %8 = arith.addf %3, %7 : vector<8x128xf32>
    %c0_6 = arith.constant 0 : index
    %c0_7 = arith.constant 0 : index
    %9 = vector.load %arg7[%c0_6, %c0_7] : memref<8x128xf32, #tpu.memory_space<vmem>>, vector<8x128xf32>
    tpu.vector_store %arg7[%c0_6, %c0_7], %8 {strides = array<i32>} : memref<8x128xf32, #tpu.memory_space<vmem>>, vector<8x128xf32>,
    %c0_i32_8 = arith.constant 0 : i32
    %10 = arith.cmpi eq, %arg2, %c0_i32_8 : i32
    %11 = arith.extui %10 : i1 to i32
    %c0_i32_9 = arith.constant 0 : i32
    %12 = arith.cmpi ne, %11, %c0_i32_9 : i32
    scf.if %12 {
      %c0_10 = arith.constant 0 : index
      %c0_11 = arith.constant 0 : index
      %13 = vector.load %arg7[%c0_10, %c0_11] : memref<8x128xf32, #tpu.memory_space<vmem>>, vector<8x128xf32>
      %c0_12 = arith.constant 0 : index
      %c0_13 = arith.constant 0 : index
      %14 = vector.load %arg5[%c0_12, %c0_13] : memref<1x128xf32, #tpu.memory_space<vmem>>, vector<1x128xf32>
      %15 = vector.broadcast %14 : vector<1x128xf32> to vector<8x128xf32>
      %16 = arith.addf %13, %15 : vector<8x128xf32>
      %c0_14 = arith.constant 0 : index
      %c0_15 = arith.constant 0 : index
      %17 = vector.load %arg6[%c0_14, %c0_15] : memref<8x128xf32, #tpu.memory_space<vmem>>, vector<8x128xf32>
      tpu.vector_store %arg6[%c0_14, %c0_15], %16 {strides = array<i32>} : memref<8x128xf32, #tpu.memory_space<vmem>>, vector<8x128xf32>,
    } else {
    }
    return
  }
  func.func @transform_0(%arg0: i32, %arg1: i32, %arg2: i32) -> (i32, i32) {
    %c0_i32 = arith.constant 0 : i32
    return %arg0, %arg2 : i32, i32
  }
  func.func @transform_1(%arg0: i32, %arg1: i32, %arg2: i32) -> (i32, i32) {
    %c0_i32 = arith.constant 0 : i32
    return %arg2, %arg1 : i32, i32
  }
  func.func @transform_2(%arg0: i32, %arg1: i32, %arg2: i32) -> (i32, i32) {
    %c0_i32 = arith.constant 0 : i32
    %c0_i32_0 = arith.constant 0 : i32
    return %c0_i32, %arg1 : i32, i32
  }
  func.func @transform_3(%arg0: i32, %arg1: i32, %arg2: i32) -> (i32, i32) {
    %c0_i32 = arith.constant 0 : i32
    return %arg0, %arg1 : i32, i32
  }
}

module attributes {stable_mosaic.version = 11 : i64} {
  func.func @kernel(%arg0: memref<2x4x256xf32, #tpu.memory_space<vmem>>, %arg1: memref<32x128xbf16, #tpu.memory_space<vmem>>, %arg2: memref<32x128xbf16, #tpu.memory_space<vmem>>, %arg3: memref<2x4x32xf32, #tpu.memory_space<vmem>>, %arg4: memref<2x4x32xf32, #tpu.memory_space<vmem>>, %arg5: memref<4x32xf32, #tpu.memory_space<vmem>>, %arg6: memref<4x32xf32, #tpu.memory_space<vmem>>) attributes {dimension_semantics = [], scalar_prefetch = 0 : i64, scratch_operands = 2 : i64, tpu.core_type = #tpu.core_type<tc>} {
    %cst = arith.constant 0.000000e+00 : f32
    %0 = vector.broadcast %cst : f32 to vector<4x32xf32>
    %c0 = arith.constant 0 : index
    %c0_0 = arith.constant 0 : index
    %1 = vector.load %arg5[%c0, %c0_0] : memref<4x32xf32, #tpu.memory_space<vmem>>, vector<4x32xf32>
    tpu.vector_store %arg5[%c0, %c0_0], %0 {strides = array<i32>} : memref<4x32xf32, #tpu.memory_space<vmem>>, vector<4x32xf32>,
    %cst_1 = arith.constant 0.000000e+00 : f32
    %2 = vector.broadcast %cst_1 : f32 to vector<4x32xf32>
    %c0_2 = arith.constant 0 : index
    %c0_3 = arith.constant 0 : index
    %3 = vector.load %arg6[%c0_2, %c0_3] : memref<4x32xf32, #tpu.memory_space<vmem>>, vector<4x32xf32>
    tpu.vector_store %arg6[%c0_2, %c0_3], %2 {strides = array<i32>} : memref<4x32xf32, #tpu.memory_space<vmem>>, vector<4x32xf32>,
    %c0_i32 = arith.constant 0 : i32
    %c2_i32 = arith.constant 2 : i32
    %4 = arith.addi %c0_i32, %c2_i32 : i32
    %c1_i32 = arith.constant 1 : i32
    scf.for %arg7 = %c0_i32 to %4 step %c1_i32  : i32 {
      %10 = arith.index_cast %arg7 : i32 to index
      %c0_15 = arith.constant 0 : index
      %c0_16 = arith.constant 0 : index
      %11 = vector.load %arg0[%10, %c0_15, %c0_16] : memref<2x4x256xf32, #tpu.memory_space<vmem>>, vector<1x4x256xf32>
      %12 = vector.shape_cast %11 : vector<1x4x256xf32> to vector<4x256xf32>
      %13 = vector.extract_strided_slice %12 {offsets = [0, 0], sizes = [4, 128], strides = [1, 1]} : vector<4x256xf32> to vector<4x128xf32>
      %c0_17 = arith.constant 0 : index
      %c0_18 = arith.constant 0 : index
      %14 = vector.load %arg5[%c0_17, %c0_18] : memref<4x32xf32, #tpu.memory_space<vmem>>, vector<4x32xf32>
      %15 = arith.truncf %14 : vector<4x32xf32> to vector<4x32xbf16>
      %c0_19 = arith.constant 0 : index
      %c0_20 = arith.constant 0 : index
      %16 = vector.load %arg1[%c0_19, %c0_20] : memref<32x128xbf16, #tpu.memory_space<vmem>>, vector<32x128xbf16>
      %cst_21 = arith.constant dense<0.000000e+00> : vector<4x128xf32>
      %17 = tpu.matmul %15, %16, %cst_21 {dimension_numbers = #tpu.dot_dimension_numbers<[1], [0], [0], [1], [0, 0, 1, 1], [], []>} : vector<4x32xbf16>, vector<32x128xbf16>, vector<4x128xf32> -> vector<4x128xf32>
      %18 = arith.addf %13, %17 : vector<4x128xf32>
      %19 = vector.extract_strided_slice %18 {offsets = [0, 0], sizes = [4, 32], strides = [1, 1]} : vector<4x128xf32> to vector<4x32xf32>
      %20 = arith.negf %19 : vector<4x32xf32>
      %21 = math.exp %20 : vector<4x32xf32>
      %cst_22 = arith.constant 1.000000e+00 : f32
      %22 = vector.broadcast %cst_22 : f32 to vector<4x32xf32>
      %23 = arith.addf %22, %21 : vector<4x32xf32>
      %24 = arith.divf %22, %23 : vector<4x32xf32>
      %25 = vector.extract_strided_slice %18 {offsets = [0, 32], sizes = [4, 32], strides = [1, 1]} : vector<4x128xf32> to vector<4x32xf32>
      %26 = arith.negf %25 : vector<4x32xf32>
      %27 = math.exp %26 : vector<4x32xf32>
      %cst_23 = arith.constant 1.000000e+00 : f32
      %28 = vector.broadcast %cst_23 : f32 to vector<4x32xf32>
      %29 = arith.addf %28, %27 : vector<4x32xf32>
      %30 = arith.divf %28, %29 : vector<4x32xf32>
      %31 = vector.extract_strided_slice %18 {offsets = [0, 64], sizes = [4, 32], strides = [1, 1]} : vector<4x128xf32> to vector<4x32xf32>
      %32 = math.tanh %31 : vector<4x32xf32>
      %33 = vector.extract_strided_slice %18 {offsets = [0, 96], sizes = [4, 32], strides = [1, 1]} : vector<4x128xf32> to vector<4x32xf32>
      %34 = arith.negf %33 : vector<4x32xf32>
      %35 = math.exp %34 : vector<4x32xf32>
      %cst_24 = arith.constant 1.000000e+00 : f32
      %36 = vector.broadcast %cst_24 : f32 to vector<4x32xf32>
      %37 = arith.addf %36, %35 : vector<4x32xf32>
      %38 = arith.divf %36, %37 : vector<4x32xf32>
      %c0_25 = arith.constant 0 : index
      %c0_26 = arith.constant 0 : index
      %39 = vector.load %arg6[%c0_25, %c0_26] : memref<4x32xf32, #tpu.memory_space<vmem>>, vector<4x32xf32>
      %40 = arith.mulf %30, %39 : vector<4x32xf32>
      %41 = arith.mulf %24, %32 : vector<4x32xf32>
      %42 = arith.addf %40, %41 : vector<4x32xf32>
      %43 = math.tanh %42 : vector<4x32xf32>
      %44 = arith.mulf %38, %43 : vector<4x32xf32>
      %c0_27 = arith.constant 0 : index
      %c0_28 = arith.constant 0 : index
      %45 = vector.load %arg6[%c0_27, %c0_28] : memref<4x32xf32, #tpu.memory_space<vmem>>, vector<4x32xf32>
      tpu.vector_store %arg6[%c0_27, %c0_28], %42 {strides = array<i32>} : memref<4x32xf32, #tpu.memory_space<vmem>>, vector<4x32xf32>,
      %c0_29 = arith.constant 0 : index
      %c0_30 = arith.constant 0 : index
      %46 = vector.load %arg5[%c0_29, %c0_30] : memref<4x32xf32, #tpu.memory_space<vmem>>, vector<4x32xf32>
      tpu.vector_store %arg5[%c0_29, %c0_30], %44 {strides = array<i32>} : memref<4x32xf32, #tpu.memory_space<vmem>>, vector<4x32xf32>,
      %47 = arith.index_cast %arg7 : i32 to index
      %c0_31 = arith.constant 0 : index
      %c0_32 = arith.constant 0 : index
      %48 = vector.load %arg3[%47, %c0_31, %c0_32] : memref<2x4x32xf32, #tpu.memory_space<vmem>>, vector<1x4x32xf32>
      %49 = vector.shape_cast %48 : vector<1x4x32xf32> to vector<4x32xf32>
      %50 = vector.shape_cast %44 : vector<4x32xf32> to vector<1x4x32xf32>
      tpu.vector_store %arg3[%47, %c0_31, %c0_32], %50 {strides = array<i32>} : memref<2x4x32xf32, #tpu.memory_space<vmem>>, vector<1x4x32xf32>,
    }
    %c2_i32_4 = arith.constant 2 : i32
    %cst_5 = arith.constant 0.000000e+00 : f32
    %5 = vector.broadcast %cst_5 : f32 to vector<4x32xf32>
    %c0_6 = arith.constant 0 : index
    %c0_7 = arith.constant 0 : index
    %6 = vector.load %arg5[%c0_6, %c0_7] : memref<4x32xf32, #tpu.memory_space<vmem>>, vector<4x32xf32>
    tpu.vector_store %arg5[%c0_6, %c0_7], %5 {strides = array<i32>} : memref<4x32xf32, #tpu.memory_space<vmem>>, vector<4x32xf32>,
    %cst_8 = arith.constant 0.000000e+00 : f32
    %7 = vector.broadcast %cst_8 : f32 to vector<4x32xf32>
    %c0_9 = arith.constant 0 : index
    %c0_10 = arith.constant 0 : index
    %8 = vector.load %arg6[%c0_9, %c0_10] : memref<4x32xf32, #tpu.memory_space<vmem>>, vector<4x32xf32>
    tpu.vector_store %arg6[%c0_9, %c0_10], %7 {strides = array<i32>} : memref<4x32xf32, #tpu.memory_space<vmem>>, vector<4x32xf32>,
    %c0_i32_11 = arith.constant 0 : i32
    %c2_i32_12 = arith.constant 2 : i32
    %9 = arith.addi %c0_i32_11, %c2_i32_12 : i32
    %c1_i32_13 = arith.constant 1 : i32
    scf.for %arg7 = %c0_i32_11 to %9 step %c1_i32_13  : i32 {
      %c1_i32_15 = arith.constant 1 : i32
      %10 = arith.subi %c1_i32_15, %arg7 : i32
      %11 = arith.index_cast %10 : i32 to index
      %c0_16 = arith.constant 0 : index
      %c0_17 = arith.constant 0 : index
      %12 = vector.load %arg0[%11, %c0_16, %c0_17] : memref<2x4x256xf32, #tpu.memory_space<vmem>>, vector<1x4x256xf32>
      %13 = vector.shape_cast %12 : vector<1x4x256xf32> to vector<4x256xf32>
      %14 = vector.extract_strided_slice %13 {offsets = [0, 128], sizes = [4, 128], strides = [1, 1]} : vector<4x256xf32> to vector<4x128xf32>
      %c0_18 = arith.constant 0 : index
      %c0_19 = arith.constant 0 : index
      %15 = vector.load %arg5[%c0_18, %c0_19] : memref<4x32xf32, #tpu.memory_space<vmem>>, vector<4x32xf32>
      %16 = arith.truncf %15 : vector<4x32xf32> to vector<4x32xbf16>
      %c0_20 = arith.constant 0 : index
      %c0_21 = arith.constant 0 : index
      %17 = vector.load %arg2[%c0_20, %c0_21] : memref<32x128xbf16, #tpu.memory_space<vmem>>, vector<32x128xbf16>
      %cst_22 = arith.constant dense<0.000000e+00> : vector<4x128xf32>
      %18 = tpu.matmul %16, %17, %cst_22 {dimension_numbers = #tpu.dot_dimension_numbers<[1], [0], [0], [1], [0, 0, 1, 1], [], []>} : vector<4x32xbf16>, vector<32x128xbf16>, vector<4x128xf32> -> vector<4x128xf32>
      %19 = arith.addf %14, %18 : vector<4x128xf32>
      %20 = vector.extract_strided_slice %19 {offsets = [0, 0], sizes = [4, 32], strides = [1, 1]} : vector<4x128xf32> to vector<4x32xf32>
      %21 = arith.negf %20 : vector<4x32xf32>
      %22 = math.exp %21 : vector<4x32xf32>
      %cst_23 = arith.constant 1.000000e+00 : f32
      %23 = vector.broadcast %cst_23 : f32 to vector<4x32xf32>
      %24 = arith.addf %23, %22 : vector<4x32xf32>
      %25 = arith.divf %23, %24 : vector<4x32xf32>
      %26 = vector.extract_strided_slice %19 {offsets = [0, 32], sizes = [4, 32], strides = [1, 1]} : vector<4x128xf32> to vector<4x32xf32>
      %27 = arith.negf %26 : vector<4x32xf32>
      %28 = math.exp %27 : vector<4x32xf32>
      %cst_24 = arith.constant 1.000000e+00 : f32
      %29 = vector.broadcast %cst_24 : f32 to vector<4x32xf32>
      %30 = arith.addf %29, %28 : vector<4x32xf32>
      %31 = arith.divf %29, %30 : vector<4x32xf32>
      %32 = vector.extract_strided_slice %19 {offsets = [0, 64], sizes = [4, 32], strides = [1, 1]} : vector<4x128xf32> to vector<4x32xf32>
      %33 = math.tanh %32 : vector<4x32xf32>
      %34 = vector.extract_strided_slice %19 {offsets = [0, 96], sizes = [4, 32], strides = [1, 1]} : vector<4x128xf32> to vector<4x32xf32>
      %35 = arith.negf %34 : vector<4x32xf32>
      %36 = math.exp %35 : vector<4x32xf32>
      %cst_25 = arith.constant 1.000000e+00 : f32
      %37 = vector.broadcast %cst_25 : f32 to vector<4x32xf32>
      %38 = arith.addf %37, %36 : vector<4x32xf32>
      %39 = arith.divf %37, %38 : vector<4x32xf32>
      %c0_26 = arith.constant 0 : index
      %c0_27 = arith.constant 0 : index
      %40 = vector.load %arg6[%c0_26, %c0_27] : memref<4x32xf32, #tpu.memory_space<vmem>>, vector<4x32xf32>
      %41 = arith.mulf %31, %40 : vector<4x32xf32>
      %42 = arith.mulf %25, %33 : vector<4x32xf32>
      %43 = arith.addf %41, %42 : vector<4x32xf32>
      %44 = math.tanh %43 : vector<4x32xf32>
      %45 = arith.mulf %39, %44 : vector<4x32xf32>
      %c0_28 = arith.constant 0 : index
      %c0_29 = arith.constant 0 : index
      %46 = vector.load %arg6[%c0_28, %c0_29] : memref<4x32xf32, #tpu.memory_space<vmem>>, vector<4x32xf32>
      tpu.vector_store %arg6[%c0_28, %c0_29], %43 {strides = array<i32>} : memref<4x32xf32, #tpu.memory_space<vmem>>, vector<4x32xf32>,
      %c0_30 = arith.constant 0 : index
      %c0_31 = arith.constant 0 : index
      %47 = vector.load %arg5[%c0_30, %c0_31] : memref<4x32xf32, #tpu.memory_space<vmem>>, vector<4x32xf32>
      tpu.vector_store %arg5[%c0_30, %c0_31], %45 {strides = array<i32>} : memref<4x32xf32, #tpu.memory_space<vmem>>, vector<4x32xf32>,
      %48 = arith.index_cast %10 : i32 to index
      %c0_32 = arith.constant 0 : index
      %c0_33 = arith.constant 0 : index
      %49 = vector.load %arg4[%48, %c0_32, %c0_33] : memref<2x4x32xf32, #tpu.memory_space<vmem>>, vector<1x4x32xf32>
      %50 = vector.shape_cast %49 : vector<1x4x32xf32> to vector<4x32xf32>
      %51 = vector.shape_cast %45 : vector<4x32xf32> to vector<1x4x32xf32>
      tpu.vector_store %arg4[%48, %c0_32, %c0_33], %51 {strides = array<i32>} : memref<2x4x32xf32, #tpu.memory_space<vmem>>, vector<1x4x32xf32>,
    }
    %c2_i32_14 = arith.constant 2 : i32
    return
  }
}

</mosaic_0001>

<bundles_post_ra>
// kernel: tile.18
= control target key start
LH: loop header
LB: loop body
LE: loop exit
PB: predicated region body
PF: predicated region fallthrough
CT: control target
= control target key end

     0   :  { %2 = vsyncpa [#allocation1], 0  ;;  %s51_s8 = smov [#allocation0]   ;;  %s71_s0 = inlined_call_operand.hbm [shape: f32[4], index: 0, kind: input, shape index: {}]   ;;  %s72_s1 = inlined_call_operand.vmem [shape: f32[12,4], index: 1, kind: output, shape index: {}]  }
   0x1   :  { %s8_s0 = sshll.u32 %s71_s0, 4  ;;  %s10_s9 = sshll.u32 %s51_s8, 4  ;;  %s9_s0 = int_to_ptr.hbm [resolvable:$true] %s8_s0  ;;  %s11_s9 = int_to_ptr.vmem [resolvable:$true] %s10_s9 }
   0x2   :  { %13 = dma.hbm_to_vmem [thread:$0]  %s9_s0, 16, %s11_s9, [#allocation1]  }
   0x3   :  { %49 = dma.done.wait [#allocation1], 16  }
   0x4   :  { %50 = vsyncadd [#allocation1], 4294967280  ;;  %v18_v0 = vld [vmem:[#allocation0] ss:$0 sm:$0xff] }
   0x5   :  { %19 = vst [vmem:[%s72_s1] sm:$0xff] %v18_v0 }
   0x6   :  { %23 = vst [vmem:[%s72_s1 + $0x8] sm:$0xff] %v18_v0 }
   0x7   :  { %22 = vsyncpa [#allocation1], 1 }

// kernel: tile.2
= control target key start
LH: loop header
LB: loop body
LE: loop exit
PB: predicated region body
PF: predicated region fallthrough
CT: control target
= control target key end

     0   :  { %s63_s8 = smov 126   ;;  %s64_s9 = smov 127   ;;  %vm3_vm0 = vcmask 7168   ;;  %s123_s0 = inlined_call_operand.vmem [shape: f32[12,4], index: 0, kind: input, shape index: {}]   ;;  %s124_s1 = inlined_call_operand.vmem [shape: f32[48,1], index: 1, kind: output, shape index: {}]  }
   0x1   :  { %v23_v0 = vld [vmem:[%s123_s0] sm:$0xff]   ;;  %v49_v1 = vld [vmem:[%s123_s0 + $0x8] sm:$0xf]   ;;  %s65_s12 = smov 125  }
   0x2   :  { %24 = vrot.lane.b32.xlu1 %v23_v0, %s63_s8  ;;  %11 = vrot.lane.b32.xlu0 %v23_v0, %s64_s9  ;;  %4 = vst.msk [vmem:[%s124_s1] ss:$4 sm:$0xff] %vm3_vm0, %v23_v0   ;;  %v55_v2 = vld [vmem:[%s123_s0 + $0x8] sm:$0xf]  }
   0x3   :  { %37 = vrot.lane.b32.xlu2 %v23_v0, %s65_s12  ;;  %50 = vst.msk [vmem:[%s124_s1 + $0x20] ss:$4 sm:$0xf] %vm3_vm0, %v49_v1   ;;  %v52_v3 = vld [vmem:[%s123_s0 + $0x8] sm:$0xf]  }
   0x4   :  { %v58_v4 = vld [vmem:[%s123_s0 + $0x8] sm:$0xf]  }
   0xa   :  { %31 = vrot.lane.b32.xlu1 %v55_v2, %s63_s8  ;;  %18 = vrot.lane.b32.xlu0 %v52_v3, %s64_s9 }
   0xb   :  { %44 = vrot.lane.b32.xlu2 %v58_v4, %s65_s12 }
  0x5d   :  { %v38_v5 = vpop.permute.xlu2 %37  }
  0x5e   :  { %57 = vst.msk [vmem:[%s124_s1 + $0x3] ss:$4 sm:$0xff] %vm3_vm0, %v38_v5  }
  0x65   :  { %v45_v6 = vpop.permute.xlu2 %44  }
  0x66   :  { %59 = vst.msk [vmem:[%s124_s1 + $0x23] ss:$4 sm:$0xf] %vm3_vm0, %v45_v6  }
  0x74   :  { %v25_v7 = vpop.permute.xlu1 %24   ;;  %v12_v8 = vpop.permute.xlu0 %11  }
  0x75   :  { %54 = vst.msk [vmem:[%s124_s1 + $0x2] ss:$4 sm:$0xff] %vm3_vm0, %v25_v7  }
  0x76   :  { %51 = vst.msk [vmem:[%s124_s1 + $0x1] ss:$4 sm:$0xff] %vm3_vm0, %v12_v8  }
  0x7c   :  { %v32_v9 = vpop.permute.xlu1 %31   ;;  %v19_v10 = vpop.permute.xlu0 %18  }
  0x7d   :  { %56 = vst.msk [vmem:[%s124_s1 + $0x22] ss:$4 sm:$0xf] %vm3_vm0, %v32_v9  }
  0x7e   :  { %53 = vst.msk [vmem:[%s124_s1 + $0x21] ss:$4 sm:$0xf] %vm3_vm0, %v19_v10  }

// kernel: acoustic_forward.13
= control target key start
LH: loop header
LB: loop body
LE: loop exit
PB: predicated region body
PF: predicated region fallthrough
CT: control target
= control target key end

     0   :  { %s606_s12 = smov 0   ;;  %s692_s0 = inlined_call_operand.vmem [shape: bf16[3,48,14], index: 0, kind: input, shape index: {}]   ;;  %s693_s1 = inlined_call_operand.vmem [shape: f32[48,1], index: 1, kind: input, shape index: {}]   ;;  %s694_s2 = inlined_call_operand.vmem [shape: f32[2,14,130], index: 2, kind: input, shape index: {}]   ;;  %s695_s3 = inlined_call_operand.vmem [shape: f32[2,48,128], index: 3, kind: output, shape index: {}]  }
   0x1 LB: > { %s482_s13 = sadd.s32 4294967295, %s581_s12   ;;  %p486_p0 = scmp.ge.s32.totalorder %s581_s12, 1  ;;  %s581_s12 = sphi %s606_s12, %s13_s12  }
   0x2   : > { %p137_p1 = scmp.lt.s32.totalorder %s581_s12, 3 }
   0x4   : > { %p138_p2 = pnand %p486_p0, %p137_p1 }
   0x5   : > { %p161_p3 = scmp.lt.s32.totalorder (!%p138_p2), %s482_s13, 1  ;;  %s583_s18 = smov (!%p138_p2), 127  }
   0x6   : > { %141 = sbr.rel (%p138_p2) target bundleno = 324 (0x144), region = 32  ;;  %s584_s19 = smov (!%p138_p2), 126  }
   0xb   : > { %s697_s13 = smov (!%p161_p3, %s482_s13), 1  ;;  %vm224_vm0 = vcmask 1046528   ;;  %v550_v7 = vld [vmem:[%s692_s0] sm:$0xff]  ;;  %vm214_vm1 = vcmask 113664   ;;  %v551_v8 = vld [vmem:[%s692_s0 + $0x8] sm:$0xff]  ;;  %vm212_vm2 = vcmask 1039360  }
   0xc   : > { %s549_s14 = sshll.u32 %s697_s13, 5  ;;  %vm329_vm3 = vcmask 1031168   ;;  %v552_v11 = vld [vmem:[%s692_s0 + $0x10] sm:$0xff]  ;;  %v553_v18 = vld [vmem:[%s692_s0 + $0x18] sm:$0xff]  ;;  %v554_v20 = vld [vmem:[%s692_s0 + $0x20] sm:$0xff]  ;;  %v585_v23 = vmov 0  }
   0xd   : > { %s165_s17 = scalar_lea.vmem %s694_s2, %s549_s14  ;;  %v556_v19 = vld [vmem:[%s692_s0 + $0x30] sm:$0xff]  ;;  %v376_v22 = vld [vmem:[%s693_s1 + $0x18] sm:$0xff]  ;;  %573 = vset.pattern.permute.xlu0 %v585_v23  ;;  %v373_v24 = vld [vmem:[%s693_s1] sm:$0xff]  ;;  %574 = vset.pattern.permute.xlu1 %v585_v23  ;;  %s560_s25 = smul.u32 48, %s697_s13 }
   0xe   : > { %v172_v0 = vld [vmem:[%s165_s17] sm:$0xff]  ;;  %v173_v1 = vld [vmem:[%s165_s17 + $0x10] sm:$0x3f]  ;;  %v181_v3 = vld [vmem:[%s165_s17 + $0x8] sm:$0xff]  ;;  %572 = vset.pattern.permute.xlu2 %v585_v23 }
   0xf   : > { %v174_v2 = vpack.c.bf16 %v173_v1, %v172_v0  ;;  %v182_v4 = vld [vmem:[%s165_s17 + $0x18] sm:$0x3f]  ;;  %v375_v21 = vld [vmem:[%s693_s1 + $0x10] sm:$0xff]  ;;  %381 = vperm.xlu2 %572, %v373_v24   ;;  %v378_v25 = vld [vmem:[%s693_s1 + $0x28] sm:$0xff]  ;;  %s681_s28 = scalar_lea.vmem %s695_s3, %s560_s25 }
  0x10   : > { %v183_v5 = vpack.c.bf16 %v182_v4, %v181_v3  ;;  %v374_v26 = vld [vmem:[%s693_s1 + $0x8] sm:$0xff]  ;;  %v557_v27 = vld [vmem:[%s692_s0 + $0x38] sm:$0xff]  ;;  %v377_v29 = vld [vmem:[%s693_s1 + $0x20] sm:$0xff] }
  0x11   : > { %208 = vrot.lane.b32.xlu1 %v174_v2, %s583_s18  ;;  %325 = vrot.lane.b32.xlu0 %v174_v2, %s584_s19  ;;  %v277_v6 = vsel %vm224_vm0, %v174_v2, 0  ;;  %v555_v28 = vld [vmem:[%s692_s0 + $0x28] sm:$0xff]  ;;  %v558_v30 = vld [vmem:[%s692_s0 + $0x40] sm:$0xff] }
  0x12   : > { %286 = vmatpush.bf16.msra.mxu1 %v277_v6 }
  0x15   : > { %523 = vmatmul.msk.bf16.vlgmr.msra.gmra.mxu1 %vm214_vm1, %v550_v7 }
  0x17   : > { %386 = vperm.xlu2 %572, %v374_v26  }
  0x19   : > { %210 = vrot.lane.b32.xlu1 %v183_v5, %s583_s18  ;;  %327 = vrot.lane.b32.xlu0 %v183_v5, %s584_s19 }
  0x1f   : > { %401 = vperm.xlu2 %572, %v377_v29  }
  0x21   : > { %391 = vperm.xlu0 %573, %v375_v21   ;;  %396 = vperm.xlu1 %574, %v376_v22  }
  0x25   : > { %524 = vmatmul.msk.bf16.gmra.mxu1 %vm214_vm1, %v551_v8 }
  0x29   : > { %406 = vperm.xlu1 %574, %v378_v25  }
  0x35   : > { %525 = vmatmul.msk.bf16.gmra.mxu1 %vm214_vm1, %v552_v11 }
  0x69   : > { %v382_v35 = vpop.permute.xlu2 %381 }
  0x71   : > { %v387_v45 = vpop.permute.xlu2 %386 }
  0x79   : > { %v402_v4 = vpop.permute.xlu2 %401 }
  0x83   : > { %v209_v9 = vpop.permute.xlu1 %208  ;;  %v326_v10 = vpop.permute.xlu0 %325 }
  0x8b   : > { %v211_v12 = vpop.permute.xlu1 %210  ;;  %v328_v13 = vpop.permute.xlu0 %327 }
  0x8c   : > { %v213_v14 = vsel %vm212_vm2, %v209_v9, %v211_v12  ;;  %v330_v15 = vsel %vm329_vm3, %v326_v10, %v328_v13 }
  0x8d   : > { %v226_v16 = vsel %vm224_vm0, %v213_v14, 0  ;;  %v341_v17 = vsel %vm224_vm0, %v330_v15, 0 }
  0x8e   : > { %235 = vmatpush.bf16.msra.mxu0 %v226_v16  ;;  %350 = vmatpush.bf16.msra.mxu2 %v341_v17 }
  0x8f   : > { %559 = vmatpush.bf16.msra.mxu3 %v226_v16 }
  0x91   : > { %508 = vmatmul.msk.bf16.vlgmr.msra.gmra.mxu0 %vm214_vm1, %v553_v18  ;;  %544 = vmatmul.msk.bf16.vlgmr.msra.gmra.mxu2 %vm214_vm1, %v556_v19 }
  0x92   : > { %509 = vmatmul.msk.bf16.vlgmr.msra.gmra.mxu3 %vm214_vm1, %v554_v20  ;;  %v288_v31 = vpop.f32.mrf.mxu1 }
  0x93   : > { %v392_v51 = vpop.permute.xlu0 %391  ;;  %v397_v59 = vpop.permute.xlu1 %396 }
  0x9a   : > { %v290_v33 = vpop.f32.mrf.mxu1 }
  0x9b   : > { %v407_v12 = vpop.permute.xlu1 %406 }
  0xa1   : > { %545 = vmatmul.msk.bf16.gmra.mxu2 %vm214_vm1, %v557_v27 }
  0xa2   : > { %510 = vmatmul.msk.bf16.gmra.mxu3 %vm214_vm1, %v555_v28  ;;  %v293_v41 = vpop.f32.mrf.mxu1 }
  0xaa   : > { %v295_v50 = vpop.f32.mrf.mxu1 }
  0xb1   : > { %546 = vmatmul.msk.bf16.gmra.mxu2 %vm214_vm1, %v558_v30 }
  0xb2   : > { %v298_v62 = vpop.f32.mrf.mxu1 }
  0xba   : > { %v300_v7 = vpop.f32.mrf.mxu1 }
 0x10e   : > { %v237_v32 = vpop.f32.mrf.mxu0 }
 0x10f   : > { %v289_v34 = vadd.f32 %v288_v31, %v237_v32 }
 0x114   : > { %v352_v36 = vpop.f32.mrf.mxu2 }
 0x115   : > { %v367_v37 = vadd.f32 %v352_v36, %v289_v34  ;;  %v242_v42 = vpop.f32.mrf.mxu3 }
 0x116   : > { %v239_v39 = vpop.f32.mrf.mxu0  ;;  %v294_v48 = vadd.f32 %v293_v41, %v242_v42 }
 0x117   : > { %v409_v38 = vadd.f32 %v382_v35, %v367_v37  ;;  %v291_v43 = vadd.f32 %v290_v33, %v239_v39 }
 0x119   : > { %v415_v40 = vmax.f32 %v409_v38, 0.0 }
 0x11b   : > { %421 = vst [vmem:[%s681_s28] sm:$0xff] %v415_v40 }
 0x11c   : > { %v354_v44 = vpop.f32.mrf.mxu2 }
 0x11d   : > { %v368_v46 = vadd.f32 %v354_v44, %v291_v43  ;;  %v244_v52 = vpop.f32.mrf.mxu3 }
 0x11e   : > { %v296_v57 = vadd.f32 %v295_v50, %v244_v52 }
 0x11f   : > { %v410_v47 = vadd.f32 %v387_v45, %v368_v46 }
 0x121   : > { %v416_v49 = vmax.f32 %v410_v47, 0.0 }
 0x123   : > { %422 = vst [vmem:[%s681_s28 + $0x8] sm:$0xff] %v416_v49 }
 0x124   : > { %v357_v53 = vpop.f32.mrf.mxu2 }
 0x125   : > { %v369_v54 = vadd.f32 %v357_v53, %v294_v48  ;;  %v247_v61 = vpop.f32.mrf.mxu3 }
 0x126   : > { %v299_v0 = vadd.f32 %v298_v62, %v247_v61 }
 0x127   : > { %v411_v55 = vadd.f32 %v392_v51, %v369_v54 }
 0x129   : > { %v417_v56 = vmax.f32 %v411_v55, 0.0 }
 0x12b   : > { %423 = vst [vmem:[%s681_s28 + $0x10] sm:$0xff] %v417_v56 }
 0x12c   : > { %v359_v58 = vpop.f32.mrf.mxu2 }
 0x12d   : > { %v370_v60 = vadd.f32 %v359_v58, %v296_v57  ;;  %v249_v6 = vpop.f32.mrf.mxu3 }
 0x12e   : > { %v301_v9 = vadd.f32 %v300_v7, %v249_v6 }
 0x12f   : > { %v412_v63 = vadd.f32 %v397_v59, %v370_v60 }
 0x131   : > { %v418_v1 = vmax.f32 %v412_v63, 0.0 }
 0x133   : > { %424 = vst [vmem:[%s681_s28 + $0x18] sm:$0xff] %v418_v1 }
 0x134   : > { %v362_v2 = vpop.f32.mrf.mxu2 }
 0x135   : > { %v371_v3 = vadd.f32 %v362_v2, %v299_v0 }
 0x137   : > { %v413_v5 = vadd.f32 %v402_v4, %v371_v3 }
 0x139   : > { %v419_v8 = vmax.f32 %v413_v5, 0.0 }
 0x13b   : > { %425 = vst [vmem:[%s681_s28 + $0x20] sm:$0xff] %v419_v8 }
 0x13c   : > { %v364_v10 = vpop.f32.mrf.mxu2 }
 0x13d   : > { %v372_v11 = vadd.f32 %v364_v10, %v301_v9 }
 0x13f   : > { %v414_v13 = vadd.f32 %v407_v12, %v372_v11 }
 0x141   : > { %v420_v14 = vmax.f32 %v414_v13, 0.0 }
 0x143   : > { %426 = vst [vmem:[%s681_s28 + $0x28] sm:$0xff] %v420_v14 }
 0x144 PF: > { %s13_s12 = sadd.s32 1, %s581_s12  }
 0x145   : > { %p10_p4 = scmp.ge.s32.totalorder %s13_s12, 4  }
 0x147   :  { %12 = sbr.rel (!%p10_p4) target bundleno = 1 (0x1), region = 64 }

// kernel: acoustic_forward.14
= control target key start
LH: loop header
LB: loop body
LE: loop exit
PB: predicated region body
PF: predicated region fallthrough
CT: control target
= control target key end

     0   :  { %8 = vsyncpa [#allocation3], 0  ;;  %s1656_s0 = inlined_call_operand.vmem [shape: f32[96,128], index: 0, kind: input, shape index: {}]   ;;  %s1657_s1 = inlined_call_operand.hbm [shape: f32[1,128], index: 1, kind: input, shape index: {}]   ;;  %s1658_s2 = inlined_call_operand.hbm [shape: f32[1,128], index: 2, kind: input, shape index: {}]   ;;  %s1659_s3 = inlined_call_operand.vmem [shape: f32[96,128], index: 3, kind: output, shape index: {}]  }
   0x1   :  { %s17_s14 = sshll.u32 %s1657_s1, 4  ;;  %s18_s14 = int_to_ptr.hbm [resolvable:$true] %s17_s14 }
   0x2   :  { %9 = vsyncpa [#allocation5], 0  ;;  %s965_s15 = smov [#allocation2]   ;;  %s28_s19 = sshll.u32 %s1658_s2, 4  ;;  %s29_s19 = int_to_ptr.hbm [resolvable:$true] %s28_s19 }
   0x3   :  { %s19_s16 = sshll.u32 %s965_s15, 4  ;;  %s966_s20 = smov [#allocation4]   ;;  %s20_s16 = int_to_ptr.vmem [resolvable:$true] %s19_s16 }
   0x4   :  { %22 = dma.hbm_to_vmem [thread:$0]  %s18_s14, 16, %s20_s16, [#allocation3]  }
   0x5   :  { %s30_s21 = sshll.u32 %s966_s20, 4  ;;  %s31_s21 = int_to_ptr.vmem [resolvable:$true] %s30_s21 }
   0x6   :  { %33 = dma.hbm_to_vmem [thread:$0]  %s29_s19, 16, %s31_s21, [#allocation5]  }
   0x7   :  { %961 = dma.done.wait [#allocation3], 16  }
   0x8   :  { %962 = vsyncadd [#allocation3], 4294967280 }
   0x9   :  { %963 = dma.done.wait [#allocation5], 16  }
   0xa   :  { %964 = vsyncadd [#allocation5], 4294967280  ;;  %v998_v0 = vld [vmem:[%s1656_s0 + $0x20] sm:$0xff]  ;;  %v44_v1 = vld [vmem:[%s1656_s0 + $0x10] sm:$0xff]  ;;  %v967_v12 = vmov 128.0  }
   0xb   :  { %v42_v2 = vld [vmem:[%s1656_s0] sm:$0xff]  ;;  %62 = vadd.xlane.f32.xlu2 %v998_v0  ;;  %58 = vadd.xlane.f32.xlu1 %v44_v1  ;;  %v47_v3 = vld [vmem:[%s1656_s0 + $0x28] sm:$0xff]  ;;  %v45_v4 = vld [vmem:[%s1656_s0 + $0x18] sm:$0xff]  ;;  %837 = vrcp.f32 %v967_v12 }
   0xc   :  { %54 = vadd.xlane.f32.xlu0 %v42_v2  ;;  %v43_v5 = vld [vmem:[%s1656_s0 + $0x8] sm:$0xff]  ;;  %v50_v6 = vld [vmem:[%s1656_s0 + $0x40] sm:$0xff]  ;;  %v1022_v7 = vld [vmem:[%s1656_s0 + $0x38] sm:$0xff] }
   0xd   :  { %v48_v8 = vld [vmem:[%s1656_s0 + $0x30] sm:$0xff]  ;;  %v1031_v9 = vld [vmem:[%s1656_s0 + $0x58] sm:$0xff]  ;;  %v51_v11 = vld [vmem:[%s1656_s0 + $0x48] sm:$0xff] }
   0xe   :  { %v1036_v10 = vld [vmem:[%s1656_s0 + $0x50] sm:$0xff] }
  0x11   :  { %v838_v13 = vpop.eup %837 }
  0x12   :  { %v79_v14 = vmul.f32 128.0, %v838_v13  ;;  %vm83_vm0 = vweird.f32 %v838_v13 }
  0x13   :  { %64 = vadd.xlane.f32.xlu2 %v47_v3  ;;  %60 = vadd.xlane.f32.xlu1 %v45_v4 }
  0x14   :  { %56 = vadd.xlane.f32.xlu0 %v43_v5  ;;  %v80_v15 = vsub.f32 1.0, %v79_v14 }
  0x16   :  { %v81_v16 = vmul.f32 %v838_v13, %v80_v15 }
  0x18   :  { %v82_v17 = vadd.f32 %v838_v13, %v81_v16 }
  0x1a   :  { %v1043_v18 = vsel %vm83_vm0, %v838_v13, %v82_v17 }
  0x1b   :  { %70 = vadd.xlane.f32.xlu2 %v50_v6  ;;  %68 = vadd.xlane.f32.xlu1 %v1022_v7 }
  0x1c   :  { %66 = vadd.xlane.f32.xlu0 %v48_v8 }
  0x23   :  { %76 = vadd.xlane.f32.xlu2 %v1031_v9  ;;  %74 = vadd.xlane.f32.xlu1 %v1036_v10 }
  0x24   :  { %72 = vadd.xlane.f32.xlu0 %v51_v11 }
  0x7e   :  { %v63_v19 = vpop.xlane.xlu2 %62  ;;  %v59_v20 = vpop.xlane.xlu1 %58 }
  0x7f   :  { %v87_v21 = vmul.f32 %v1043_v18, %v59_v20  ;;  %v55_v22 = vpop.xlane.xlu0 %54  ;;  %v89_v39 = vmul.f32 %v1043_v18, %v63_v19 }
  0x80   :  { %v85_v23 = vmul.f32 %v1043_v18, %v55_v22 }
  0x81   :  { %v1047_v24 = vsub.f32 %v44_v1, %v87_v21  ;;  %v1073_v45 = vsub.f32 %v998_v0, %v89_v39 }
  0x82   :  { %v1049_v25 = vsub.f32 %v42_v2, %v85_v23 }
  0x83   :  { %v111_v26 = vmul.f32 %v1047_v24, %v1047_v24  ;;  %v113_v51 = vmul.f32 %v1073_v45, %v1073_v45 }
  0x84   :  { %v109_v27 = vmul.f32 %v1049_v25, %v1049_v25 }
  0x85   :  { %125 = vadd.xlane.f32.xlu2 %v111_v26 }
  0x86   :  { %121 = vadd.xlane.f32.xlu0 %v109_v27  ;;  %v65_v28 = vpop.xlane.xlu2 %64  ;;  %v61_v29 = vpop.xlane.xlu1 %60 }
  0x87   :  { %v90_v30 = vmul.f32 %v1043_v18, %v65_v28  ;;  %v88_v31 = vmul.f32 %v1043_v18, %v61_v29  ;;  %v57_v32 = vpop.xlane.xlu0 %56 }
  0x88   :  { %v86_v33 = vmul.f32 %v1043_v18, %v57_v32 }
  0x89   :  { %v1058_v34 = vsub.f32 %v47_v3, %v90_v30  ;;  %v1060_v35 = vsub.f32 %v45_v4, %v88_v31 }
  0x8a   :  { %v1062_v36 = vsub.f32 %v43_v5, %v86_v33 }
  0x8b   :  { %v114_v37 = vmul.f32 %v1058_v34, %v1058_v34  ;;  %v112_v38 = vmul.f32 %v1060_v35, %v1060_v35 }
  0x8c   :  { %v110_v40 = vmul.f32 %v1062_v36, %v1062_v36 }
  0x8d   :  { %131 = vadd.xlane.f32.xlu2 %v114_v37 }
  0x8e   :  { %127 = vadd.xlane.f32.xlu0 %v112_v38  ;;  %123 = vadd.xlane.f32.xlu1 %v110_v40  ;;  %v71_v41 = vpop.xlane.xlu2 %70  ;;  %v69_v42 = vpop.xlane.xlu1 %68 }
  0x8f   :  { %v93_v43 = vmul.f32 %v1043_v18, %v71_v41  ;;  %v67_v44 = vpop.xlane.xlu0 %66  ;;  %v92_v49 = vmul.f32 %v1043_v18, %v69_v42  ;;  %v1120_v41 = vld [vmem:[#allocation2] ss:$0 sm:$0xff] }
  0x90   :  { %v91_v46 = vmul.f32 %v1043_v18, %v67_v44 }
  0x91   :  { %v1076_v47 = vsub.f32 %v50_v6, %v93_v43  ;;  %v1088_v54 = vsub.f32 %v1022_v7, %v92_v49 }
  0x92   :  { %v1078_v48 = vsub.f32 %v48_v8, %v91_v46 }
  0x93   :  { %v117_v50 = vmul.f32 %v1076_v47, %v1076_v47  ;;  %v116_v61 = vmul.f32 %v1088_v54, %v1088_v54 }
  0x94   :  { %v115_v52 = vmul.f32 %v1078_v48, %v1078_v48 }
  0x95   :  { %137 = vadd.xlane.f32.xlu2 %v117_v50  ;;  %v1124_v50 = vld [vmem:[#allocation4] ss:$0 sm:$0xff] }
  0x96   :  { %129 = vadd.xlane.f32.xlu1 %v113_v51  ;;  %133 = vadd.xlane.f32.xlu0 %v115_v52  ;;  %v77_v53 = vpop.xlane.xlu2 %76  ;;  %v75_v57 = vpop.xlane.xlu1 %74 }
  0x97   :  { %v96_v55 = vmul.f32 %v1043_v18, %v77_v53  ;;  %v73_v56 = vpop.xlane.xlu0 %72  ;;  %v95_v62 = vmul.f32 %v1043_v18, %v75_v57 }
  0x98   :  { %v94_v58 = vmul.f32 %v1043_v18, %v73_v56 }
  0x99   :  { %v1093_v59 = vsub.f32 %v1031_v9, %v96_v55  ;;  %v1105_v1 = vsub.f32 %v1036_v10, %v95_v62 }
  0x9a   :  { %v1095_v60 = vsub.f32 %v51_v11, %v94_v58 }
  0x9b   :  { %v120_v63 = vmul.f32 %v1093_v59, %v1093_v59  ;;  %v119_v2 = vmul.f32 %v1105_v1, %v1105_v1 }
  0x9c   :  { %v118_v0 = vmul.f32 %v1095_v60, %v1095_v60 }
  0x9d   :  { %143 = vadd.xlane.f32.xlu2 %v120_v63 }
  0x9e   :  { %135 = vadd.xlane.f32.xlu1 %v116_v61  ;;  %139 = vadd.xlane.f32.xlu0 %v118_v0 }
  0xa6   :  { %141 = vadd.xlane.f32.xlu1 %v119_v2 }
  0xf8   :  { %v126_v3 = vpop.xlane.xlu2 %125 }
  0xf9   :  { %v147_v4 = vmul.f32 %v126_v3, %v1043_v18  ;;  %v122_v5 = vpop.xlane.xlu0 %121 }
  0xfa   :  { %v145_v6 = vmul.f32 %v122_v5, %v1043_v18 }
  0xfb   :  { %v159_v7 = vadd.f32 1e-05, %v147_v4 }
  0xfc   :  { %v157_v8 = vadd.f32 1e-05, %v145_v6 }
  0xfd   :  { %839 = vrsqrt.f32 %v159_v7  ;;  %vm195_vm1 = vweird.f32 %v159_v7 }
  0xfe   :  { %841 = vrsqrt.f32 %v157_v8  ;;  %vm175_vm5 = vweird.f32 %v157_v8 }
 0x100   :  { %v132_v9 = vpop.xlane.xlu2 %131 }
 0x101   :  { %v150_v11 = vmul.f32 %v132_v9, %v1043_v18  ;;  %v124_v12 = vpop.xlane.xlu1 %123  ;;  %v128_v10 = vpop.xlane.xlu0 %127 }
 0x102   :  { %v146_v13 = vmul.f32 %v124_v12, %v1043_v18  ;;  %v148_v14 = vmul.f32 %v128_v10, %v1043_v18 }
 0x103   :  { %v840_v15 = vpop.eup %839  ;;  %v162_v16 = vadd.f32 1e-05, %v150_v11 }
 0x104   :  { %v842_v17 = vpop.eup %841  ;;  %v190_v19 = vmul.f32 %v840_v15, %v159_v7  ;;  %v158_v20 = vadd.f32 1e-05, %v146_v13  ;;  %v1114_v21 = vadd.f32 1e-05, %v148_v14  ;;  %vm196_vm2 = vweird.f32 %v840_v15 }
 0x105   :  { %v170_v22 = vmul.f32 %v842_v17, %v157_v8  ;;  %843 = vrsqrt.f32 %v162_v16  ;;  %vm176_vm3 = vweird.f32 %v842_v17  ;;  %vm197_vm4 = vmor %vm195_vm1, %vm196_vm2  ;;  %vm225_vm7 = vweird.f32 %v162_v16 }
 0x106   :  { %v191_v23 = vmul.f32 %v840_v15, %v190_v19  ;;  %845 = vrsqrt.f32 %v158_v20  ;;  %vm177_vm6 = vmor %vm175_vm5, %vm176_vm3  ;;  %vm185_vm11 = vweird.f32 %v158_v20  ;;  %vm205_vm13 = vweird.f32 %v1114_v21 }
 0x107   :  { %v171_v26 = vmul.f32 %v842_v17, %v170_v22  ;;  %847 = vrsqrt.f32 %v1114_v21 }
 0x108   :  { %v192_v27 = vmul.f32 0.5, %v191_v23  ;;  %v138_v29 = vpop.xlane.xlu2 %137 }
 0x109   :  { %v172_v28 = vmul.f32 0.5, %v171_v26  ;;  %v153_v39 = vmul.f32 %v138_v29, %v1043_v18  ;;  %v130_v5 = vpop.xlane.xlu1 %129 }
 0x10a   :  { %v193_v30 = vsub.f32 1.5, %v192_v27  ;;  %v149_v14 = vmul.f32 %v130_v5, %v1043_v18 }
 0x10b   :  { %v844_v31 = vpop.eup %843  ;;  %v173_v32 = vsub.f32 1.5, %v172_v28  ;;  %v1129_v58 = vadd.f32 1e-05, %v153_v39 }
 0x10c   :  { %v846_v33 = vpop.eup %845  ;;  %v194_v37 = vmul.f32 %v840_v15, %v193_v30  ;;  %v220_v38 = vmul.f32 %v844_v31, %v162_v16  ;;  %vm226_vm8 = vweird.f32 %v844_v31  ;;  %v1148_v28 = vadd.f32 1e-05, %v149_v14 }
 0x10d   :  { %v1118_v40 = vpop.eup %847  ;;  %v174_v42 = vmul.f32 %v842_v17, %v173_v32  ;;  %v180_v43 = vmul.f32 %v846_v33, %v158_v20  ;;  %vm186_vm9 = vweird.f32 %v846_v33  ;;  %849 = vrsqrt.f32 %v1129_v58  ;;  %vm227_vm10 = vmor %vm225_vm7, %vm226_vm8 }
 0x10e   :  { %v198_v44 = vsel %vm197_vm4, %v840_v15, %v194_v37  ;;  %v221_v46 = vmul.f32 %v844_v31, %v220_v38  ;;  %v200_v49 = vmul.f32 %v1118_v40, %v1114_v21  ;;  %vm187_vm12 = vmor %vm185_vm11, %vm186_vm9  ;;  %vm206_vm14 = vweird.f32 %v1118_v40 }
 0x10f   :  { %v291_v51 = vmul.f32 %v198_v44, %v1047_v24  ;;  %v178_v52 = vsel %vm177_vm6, %v842_v17, %v174_v42  ;;  %v181_v53 = vmul.f32 %v846_v33, %v180_v43  ;;  %vm1157_vm0 = vmor %vm205_vm13, %vm206_vm14  ;;  %vm255_vm5 = vweird.f32 %v1129_v58 }
 0x110   :  { %v289_v55 = vmul.f32 %v178_v52, %v1049_v25  ;;  %v222_v56 = vmul.f32 0.5, %v221_v46  ;;  %v201_v57 = vmul.f32 %v1118_v40, %v200_v49  ;;  %v968_v46 = vmov -1.0  }
 0x111   :  { %v307_v61 = vmul.f32 %v1120_v41, %v291_v51  ;;  %v182_v62 = vmul.f32 0.5, %v181_v53 }
 0x112   :  { %v305_v63 = vmul.f32 %v1120_v41, %v289_v55  ;;  %v223_v0 = vsub.f32 1.5, %v222_v56  ;;  %v202_v2 = vmul.f32 0.5, %v201_v57 }
 0x113   :  { %v323_v24 = vadd.f32 %v1124_v50, %v307_v61  ;;  %v183_v3 = vsub.f32 1.5, %v182_v62  ;;  %v1141_v22 = vpop.eup %849 }
 0x114   :  { %v321_v25 = vadd.f32 %v1124_v50, %v305_v63  ;;  %v224_v4 = vmul.f32 %v844_v31, %v223_v0  ;;  %v203_v11 = vsub.f32 1.5, %v202_v2  ;;  %vm256_vm6 = vweird.f32 %v1141_v22 }
 0x115   :  { %v347_v6 = vmul.f32 0.70710677, %v323_v24  ;;  %v184_v7 = vmul.f32 %v846_v33, %v183_v3  ;;  %v1167_v37 = vmul.f32 0.5, %v323_v24 }
 0x116   :  { %v345_v8 = vmul.f32 0.70710677, %v321_v25  ;;  %v228_v9 = vsel %vm227_vm10, %v844_v31, %v224_v4  ;;  %v204_v26 = vmul.f32 %v1118_v40, %v203_v11  ;;  %v250_v31 = vmul.f32 %v1141_v22, %v1129_v58 }
 0x117   :  { %v383_v12 = vand.u32 2147483647, %v347_v6  ;;  %v294_v10 = vmul.f32 %v228_v9, %v1058_v34  ;;  %v188_v13 = vsel %vm187_vm12, %v846_v33, %v184_v7  ;;  %vm359_vm15 = vcmp.ge.f32.partialorder %v347_v6, 0.0 }
 0x118   :  { %v381_v15 = vand.u32 2147483647, %v345_v8  ;;  %v290_v16 = vmul.f32 %v188_v13, %v1062_v36  ;;  %vm357_vm1 = vcmp.ge.f32.partialorder %v345_v8, 0.0  ;;  %v208_v33 = vsel %vm1157_vm0, %v1118_v40, %v204_v26  ;;  %vm257_vm0 = vmor %vm255_vm5, %vm256_vm6 }
 0x119   :  { %v395_v17 = vmul.f32 0.3275911, %v383_v12  ;;  %v310_v19 = vmul.f32 %v1120_v41, %v294_v10  ;;  %v707_v27 = vsub.f32 0.0, %v383_v12  ;;  %v1172_v43 = vmul.f32 0.5, %v321_v25 }
 0x11a   :  { %v393_v20 = vmul.f32 0.3275911, %v381_v15  ;;  %v306_v23 = vmul.f32 %v1120_v41, %v290_v16  ;;  %v705_v32 = vsub.f32 0.0, %v381_v15  ;;  %v1178_v49 = vsel %vm359_vm15, 1.0, %v968_v46 }
 0x11b   :  { %v1146_v34 = vadd.f32 1.0, %v395_v17  ;;  %v326_v29 = vadd.f32 %v1124_v50, %v310_v19  ;;  %v719_v38 = vmul.f32 %v707_v27, %v383_v12  ;;  %v1181_v40 = vsel %vm357_vm1, 1.0, %v968_v46 }
 0x11c   :  { %v1150_v36 = vadd.f32 1.0, %v393_v20  ;;  %v1155_v21 = vadd.f32 %v1124_v50, %v306_v23  ;;  %v292_v52 = vmul.f32 %v208_v33, %v1060_v35  ;;  %v717_v53 = vmul.f32 %v705_v32, %v381_v15 }
 0x11d   :  { %851 = vrcp.f32 %v1146_v34  ;;  %v456_v39 = vand.u32 2147483647, %v1146_v34  ;;  %v458_v42 = vand.u32 2147483648, %v1146_v34  ;;  %v1174_v44 = vmul.f32 0.70710677, %v326_v29 }
 0x11e   :  { %853 = vrcp.f32 %v1150_v36  ;;  %v1184_v51 = vmul.f32 0.70710677, %v1155_v21  ;;  %vm452_vm2 = vweird.f32 %v1146_v34  ;;  %v251_v56 = vmul.f32 %v1141_v22, %v250_v31 }
 0x11f   :  { %855 = vrsqrt.f32 %v1148_v28  ;;  %v386_v55 = vand.u32 2147483647, %v1174_v44  ;;  %v733_v61 = vmul.f32 1.442695, %v719_v38  ;;  %vm422_vm3 = vweird.f32 %v1150_v36 }
 0x120   :  { %v426_v62 = vand.u32 2147483647, %v1150_v36  ;;  %v1193_v63 = vand.u32 2147483647, %v1184_v51  ;;  %vm1196_vm4 = vcmp.eq.f32.partialorder %v456_v39, 8.507059e+37  ;;  %v459_v24 = vor.u32 1.1754944e-38, %v458_v42 }
 0x121   :  { %v398_v3 = vmul.f32 0.3275911, %v386_v55  ;;  %v428_v5 = vand.u32 2147483648, %v1150_v36  ;;  %v308_v7 = vmul.f32 %v1120_v41, %v292_v52  ;;  %v710_v11 = vsub.f32 0.0, %v386_v55 }
 0x122   :  { %v394_v6 = vmul.f32 0.3275911, %v1193_v63  ;;  %v252_v12 = vmul.f32 0.5, %v251_v56  ;;  %857 = vpow2.f32 %v733_v61  ;;  %v729_v13 = vmul.f32 1.442695, %v717_v53 }
 0x123   :  { %v852_v57 = vpop.eup %851  ;;  %v1206_v9 = vadd.f32 1.0, %v398_v3  ;;  %vm1212_vm8 = vcmp.eq.f32.partialorder %v426_v62, 8.507059e+37  ;;  %v1219_v19 = vadd.f32 %v1124_v50, %v308_v7  ;;  %v1221_v23 = vmul.f32 0.5, %v326_v29 }
 0x124   :  { %v854_v0 = vpop.eup %853  ;;  %v448_v2 = vmul.f32 %v852_v57, %v1146_v34  ;;  %v1210_v14 = vadd.f32 1.0, %v394_v6  ;;  %vm453_vm7 = vweird.f32 %v852_v57  ;;  %v722_v26 = vmul.f32 %v710_v11, %v386_v55 }
 0x125   :  { %v1200_v25 = vpop.eup %855  ;;  %v418_v4 = vmul.f32 %v854_v0, %v1150_v36  ;;  %859 = vrcp.f32 %v1206_v9  ;;  %vm423_vm9 = vweird.f32 %v854_v0  ;;  %v253_v27 = vsub.f32 1.5, %v252_v12  ;;  %vm454_vm10 = vmor %vm452_vm2, %vm453_vm7 }
 0x126   :  { %v449_v8 = vsub.f32 1.0, %v448_v2  ;;  %861 = vrcp.f32 %v1210_v14  ;;  %v429_v31 = vor.u32 1.1754944e-38, %v428_v5  ;;  %v501_v32 = vand.u32 2147483647, %v1206_v9  ;;  %vm424_vm11 = vmor %vm422_vm3, %vm423_vm9 }
 0x127   :  { %v419_v10 = vsub.f32 1.0, %v418_v4  ;;  %863 = vpow2.f32 %v729_v13  ;;  %v503_v38 = vand.u32 2147483648, %v1206_v9  ;;  %v706_v39 = vsub.f32 0.0, %v1193_v63 }
 0x128   :  { %v450_v15 = vmul.f32 %v852_v57, %v449_v8  ;;  %v210_v29 = vmul.f32 %v1200_v25, %v1148_v28  ;;  %v1232_v42 = vpop.eup %857  ;;  %vm497_vm12 = vweird.f32 %v1206_v9  ;;  %v1240_v53 = vmul.f32 0.70710677, %v1219_v19 }
 0x129   :  { %v420_v17 = vmul.f32 %v854_v0, %v419_v10  ;;  %v254_v61 = vmul.f32 %v1141_v22, %v253_v27  ;;  %vm1250_vm13 = vcmp.eq.f32.partialorder %v501_v32, 8.507059e+37  ;;  %vm437_vm14 = vweird.f32 %v1210_v14 }
 0x12a   :  { %v451_v20 = vadd.f32 %v852_v57, %v450_v15  ;;  %v504_v3 = vor.u32 1.1754944e-38, %v503_v38  ;;  %v441_v5 = vand.u32 2147483647, %v1210_v14  ;;  %vm362_vm15 = vcmp.ge.f32.partialorder %v1174_v44, 0.0 }
 0x12b   :  { %v421_v30 = vadd.f32 %v854_v0, %v420_v17  ;;  %v860_v36 = vpop.eup %859  ;;  %v443_v11 = vand.u32 2147483648, %v1210_v14  ;;  %v384_v12 = vand.u32 2147483647, %v1240_v53  ;;  %v718_v15 = vmul.f32 %v706_v39, %v1193_v63 }
 0x12c   :  { %v455_v33 = vsel %vm454_vm10, %v852_v57, %v451_v20  ;;  %v739_v57 = vmul.f32 1.442695, %v722_v26  ;;  %v862_v62 = vpop.eup %861  ;;  %v258_v16 = vsel %vm257_vm0, %v1141_v22, %v254_v61  ;;  %vm498_vm1 = vweird.f32 %v860_v36 }
 0x12d   :  { %v1236_v34 = vsel %vm1196_vm4, %v459_v24, %v455_v33  ;;  %v425_v52 = vsel %vm424_vm11, %v854_v0, %v421_v30  ;;  %v493_v0 = vmul.f32 %v860_v36, %v1206_v9  ;;  %v433_v4 = vmul.f32 %v862_v62, %v1210_v14  ;;  %v1257_v6 = vpop.eup %863  ;;  %vm499_vm3 = vmor %vm497_vm12, %vm498_vm1 }
 0x12e   :  { %v599_v55 = vmul.f32 1.0614054, %v1236_v34  ;;  %v1245_v56 = vsel %vm1212_vm8, %v429_v31, %v425_v52  ;;  %v396_v26 = vmul.f32 0.3275911, %v384_v12  ;;  %vm438_vm2 = vweird.f32 %v862_v62 }
 0x12f   :  { %v597_v2 = vmul.f32 1.0614054, %v1245_v56  ;;  %v494_v8 = vsub.f32 1.0, %v493_v0  ;;  %v434_v13 = vsub.f32 1.0, %v433_v4  ;;  %v297_v31 = vmul.f32 %v258_v16, %v1076_v47  ;;  %vm439_vm5 = vmor %vm437_vm14, %vm438_vm2 }
 0x130   :  { %v611_v24 = vadd.f32 -1.4531521, %v599_v55  ;;  %v1271_v33 = vadd.f32 1.0, %v396_v26  ;;  %v211_v38 = vmul.f32 %v1200_v25, %v210_v29  ;;  %vm442_vm4 = vcmp.eq.f32.partialorder %v441_v5, 8.507059e+37 }
 0x131   :  { %v609_v7 = vadd.f32 -1.4531521, %v597_v2  ;;  %v495_v20 = vmul.f32 %v860_v36, %v494_v8  ;;  %v435_v30 = vmul.f32 %v862_v62, %v434_v13  ;;  %v444_v39 = vor.u32 1.1754944e-38, %v443_v11 }
 0x132   :  { %v623_v10 = vmul.f32 %v611_v24, %v1236_v34  ;;  %865 = vrcp.f32 %v1271_v33  ;;  %v313_v47 = vmul.f32 %v1120_v41, %v297_v31  ;;  %v731_v2 = vmul.f32 1.442695, %v718_v15 }
 0x133   :  { %v621_v17 = vmul.f32 %v609_v7, %v1245_v56  ;;  %v496_v58 = vadd.f32 %v860_v36, %v495_v20  ;;  %v436_v22 = vadd.f32 %v862_v62, %v435_v30  ;;  %v1291_v5 = vmul.f32 0.5, %v1155_v21 }
 0x134   :  { %v635_v27 = vadd.f32 1.4214138, %v623_v10  ;;  %v708_v8 = vsub.f32 0.0, %v384_v12  ;;  %867 = vpow2.f32 %v739_v57  ;;  %v1301_v10 = vsel %vm362_vm15, 1.0, %v968_v46 }
 0x135   :  { %v633_v32 = vadd.f32 1.4214138, %v621_v17  ;;  %v500_v55 = vsel %vm499_vm3, %v860_v36, %v496_v58  ;;  %v440_v9 = vsel %vm439_vm5, %v862_v62, %v436_v22  ;;  %v212_v36 = vmul.f32 0.5, %v211_v38 }
 0x136   :  { %v647_v63 = vmul.f32 %v635_v27, %v1236_v34  ;;  %v1284_v29 = vsel %vm1250_vm13, %v504_v3, %v500_v55  ;;  %v1287_v4 = vsel %vm442_vm4, %v444_v39, %v440_v9  ;;  %v1296_v62 = vadd.f32 %v1124_v50, %v313_v47 }
 0x137   :  { %v645_v52 = vmul.f32 %v633_v32, %v1245_v56  ;;  %v602_v24 = vmul.f32 1.0614054, %v1284_v29  ;;  %v598_v7 = vmul.f32 1.0614054, %v1287_v4  ;;  %869 = vpow2.f32 %v731_v2 }
 0x138   :  { %v659_v61 = vadd.f32 -0.28449672, %v647_v63  ;;  %v866_v21 = vpop.eup %865  ;;  %vm358_vm6 = vcmp.ge.f32.partialorder %v1184_v51, 0.0  ;;  %v1306_v17 = vmul.f32 0.70710677, %v1296_v62  ;;  %v213_v57 = vsub.f32 1.5, %v212_v36 }
 0x139   :  { %v657_v0 = vadd.f32 -0.28449672, %v645_v52  ;;  %v614_v3 = vadd.f32 -1.4531521, %v602_v24  ;;  %v610_v13 = vadd.f32 -1.4531521, %v598_v7  ;;  %vm215_vm7 = vweird.f32 %v1148_v28 }
 0x13a   :  { %v671_v14 = vmul.f32 %v659_v61, %v1236_v34  ;;  %v463_v26 = vmul.f32 %v866_v21, %v1271_v33  ;;  %v720_v27 = vmul.f32 %v708_v8, %v384_v12  ;;  %v471_v32 = vand.u32 2147483647, %v1271_v33 }
 0x13b   :  { %v669_v35 = vmul.f32 %v657_v0, %v1245_v56  ;;  %v626_v16 = vmul.f32 %v614_v3, %v1284_v29  ;;  %v622_v44 = vmul.f32 %v610_v13, %v1287_v4  ;;  %v1315_v58 = vand.u32 2147483647, %v1306_v17 }
 0x13c   :  { %v683_v11 = vadd.f32 0.2548296, %v671_v14  ;;  %v464_v22 = vsub.f32 1.0, %v463_v26  ;;  %v473_v39 = vand.u32 2147483648, %v1271_v33  ;;  %vm468_vm8 = vweird.f32 %v866_v21  ;;  %v144_v26 = vpop.xlane.xlu2 %143 }
 0x13d   :  { %v681_v15 = vadd.f32 0.2548296, %v669_v35  ;;  %v638_v31 = vadd.f32 1.4214138, %v626_v16  ;;  %v634_v63 = vadd.f32 1.4214138, %v622_v44  ;;  %vm216_vm9 = vweird.f32 %v1200_v25 }
 0x13e   :  { %v695_v20 = vmul.f32 %v683_v11, %v1236_v34  ;;  %v868_v34 = vpop.eup %867  ;;  %v401_v12 = vmul.f32 0.3275911, %v1315_v58  ;;  %v465_v2 = vmul.f32 %v866_v21, %v464_v22  ;;  %vm467_vm10 = vweird.f32 %v1271_v33  ;;  %vm1335_vm13 = vmor %vm215_vm7, %vm216_vm9 }
 0x13f   :  { %v693_v30 = vmul.f32 %v681_v15, %v1245_v56  ;;  %v650_v55 = vmul.f32 %v638_v31, %v1284_v29  ;;  %v214_v56 = vmul.f32 %v1200_v25, %v213_v57  ;;  %v870_v47 = vpop.eup %869  ;;  %v646_v9 = vmul.f32 %v634_v63, %v1287_v4  ;;  %vm469_vm11 = vmor %vm467_vm10, %vm468_vm8  ;;  %v134_v57 = vpop.xlane.xlu0 %133 }
 0x140   :  { %v755_v38 = vmul.f32 %v1232_v42, %v695_v20  ;;  %v1324_v24 = vadd.f32 1.0, %v401_v12  ;;  %v466_v14 = vadd.f32 %v866_v21, %v465_v2  ;;  %v474_v35 = vor.u32 1.1754944e-38, %v473_v39 }
 0x141   :  { %v753_v52 = vmul.f32 %v1257_v6, %v693_v30  ;;  %v662_v0 = vadd.f32 -0.28449672, %v650_v55  ;;  %v658_v36 = vadd.f32 -0.28449672, %v646_v9  ;;  %vm472_vm12 = vcmp.eq.f32.partialorder %v471_v32, 8.507059e+37  ;;  %v136_v30 = vpop.xlane.xlu1 %135 }
 0x142   :  { %v767_v61 = vsub.f32 1.0, %v755_v38  ;;  %871 = vrcp.f32 %v1324_v24  ;;  %v470_v13 = vsel %vm469_vm11, %v866_v21, %v466_v14  ;;  %v218_v16 = vsel %vm1335_vm13, %v1200_v25, %v214_v56 }
 0x143   :  { %v765_v42 = vsub.f32 1.0, %v753_v52  ;;  %v674_v8 = vmul.f32 %v662_v0, %v1284_v29  ;;  %v670_v11 = vmul.f32 %v658_v36, %v1287_v4  ;;  %v370_v21 = vsel %vm358_vm6, 1.0, %v968_v46 }
 0x144   :  { %v779_v6 = vmul.f32 %v767_v61, %v1178_v49  ;;  %v735_v38 = vmul.f32 1.442695, %v720_v27  ;;  %v713_v63 = vsub.f32 0.0, %v1315_v58  ;;  %v293_v25 = vmul.f32 %v218_v16, %v1073_v45 }
 0x145   :  { %v777_v7 = vmul.f32 %v765_v42, %v1181_v40  ;;  %v686_v15 = vadd.f32 0.2548296, %v674_v8  ;;  %v1339_v40 = vsel %vm472_vm12, %v474_v35, %v470_v13  ;;  %v682_v28 = vadd.f32 0.2548296, %v670_v11 }
 0x146   :  { %v791_v3 = vadd.f32 1.0, %v779_v6  ;;  %v600_v44 = vmul.f32 1.0614054, %v1339_v40  ;;  %v151_v22 = vmul.f32 %v134_v57, %v1043_v18  ;;  %v156_v27 = vmul.f32 %v144_v26, %v1043_v18 }
 0x147   :  { %v789_v33 = vadd.f32 1.0, %v777_v7  ;;  %v698_v32 = vmul.f32 %v686_v15, %v1284_v29  ;;  %v546_v29 = vand.u32 2147483647, %v1324_v24  ;;  %v152_v52 = vmul.f32 %v136_v30, %v1043_v18 }
 0x148   :  { %v803_v20 = vmul.f32 %v791_v3, %v1167_v37  ;;  %v694_v37 = vmul.f32 %v682_v28, %v1287_v4  ;;  %v612_v51 = vadd.f32 -1.4531521, %v600_v44  ;;  %v872_v39 = vpop.eup %871  ;;  %v548_v45 = vand.u32 2147483648, %v1324_v24  ;;  %v140_v44 = vpop.xlane.xlu0 %139 }
 0x149   :  { %v801_v31 = vmul.f32 %v789_v33, %v1172_v43  ;;  %v758_v43 = vmul.f32 %v868_v34, %v698_v32  ;;  %v538_v12 = vmul.f32 %v872_v39, %v1324_v24  ;;  %v309_v61 = vmul.f32 %v1120_v41, %v293_v25 }
 0x14a   :  { %815 = vst [vmem:[%s1659_s3 + $0x10] sm:$0xff] %v803_v20  ;;  %v754_v55 = vmul.f32 %v870_v47, %v694_v37  ;;  %v624_v4 = vmul.f32 %v612_v51, %v1339_v40  ;;  %v1368_v9 = vadd.f32 1e-05, %v151_v22  ;;  %v1370_v2 = vadd.f32 1e-05, %v156_v27 }
 0x14b   :  { %813 = vst [vmem:[%s1659_s3] sm:$0xff] %v801_v31  ;;  %v770_v56 = vsub.f32 1.0, %v758_v43  ;;  %v539_v0 = vsub.f32 1.0, %v538_v12  ;;  %v1372_v6 = vadd.f32 1e-05, %v152_v52  ;;  %vm543_vm14 = vweird.f32 %v872_v39 }
 0x14c   :  { %v766_v34 = vsub.f32 1.0, %v754_v55  ;;  %v636_v42 = vadd.f32 1.4214138, %v624_v4  ;;  %v1376_v36 = vadd.f32 %v1124_v50, %v309_v61  ;;  %873 = vrsqrt.f32 %v1368_v9 }
 0x14d   :  { %v782_v47 = vmul.f32 %v770_v56, %v1301_v10  ;;  %v540_v8 = vmul.f32 %v872_v39, %v539_v0  ;;  %875 = vrsqrt.f32 %v1370_v2  ;;  %vm542_vm15 = vweird.f32 %v1324_v24 }
 0x14e   :  { %v778_v14 = vmul.f32 %v766_v34, %v370_v21  ;;  %v648_v7 = vmul.f32 %v636_v42, %v1339_v40  ;;  %v725_v3 = vmul.f32 %v713_v63, %v1315_v58  ;;  %v1384_v11 = vmul.f32 0.70710677, %v1376_v36  ;;  %vm544_vm0 = vmor %vm542_vm15, %vm543_vm14 }
 0x14f   :  { %v794_v35 = vadd.f32 1.0, %v782_v47  ;;  %v541_v49 = vadd.f32 %v872_v39, %v540_v8  ;;  %877 = vrsqrt.f32 %v1372_v6  ;;  %v549_v15 = vor.u32 1.1754944e-38, %v548_v45 }
 0x150   :  { %v790_v10 = vadd.f32 1.0, %v778_v14  ;;  %v660_v13 = vadd.f32 -0.28449672, %v648_v7  ;;  %879 = vpow2.f32 %v735_v38  ;;  %v1390_v16 = vand.u32 2147483647, %v1384_v11 }
 0x151   :  { %v806_v33 = vmul.f32 %v794_v35, %v1221_v23  ;;  %v545_v57 = vsel %vm544_vm0, %v872_v39, %v541_v49  ;;  %vm547_vm1 = vcmp.eq.f32.partialorder %v546_v29, 8.507059e+37  ;;  %v745_v21 = vmul.f32 1.442695, %v725_v3 }
 0x152   :  { %v802_v24 = vmul.f32 %v790_v10, %v1291_v5  ;;  %v672_v58 = vmul.f32 %v660_v13, %v1339_v40  ;;  %v1394_v20 = vpop.eup %873  ;;  %v1399_v23 = vsel %vm547_vm1, %v549_v15, %v545_v57  ;;  %v397_v28 = vmul.f32 0.3275911, %v1390_v16 }
 0x153   :  { %818 = vst [vmem:[%s1659_s3 + $0x28] sm:$0xff] %v806_v33  ;;  %v1402_v26 = vpop.eup %875  ;;  %vm360_vm2 = vcmp.ge.f32.partialorder %v1240_v53, 0.0  ;;  %v605_v30 = vmul.f32 1.0614054, %v1399_v23  ;;  %v230_v31 = vmul.f32 %v1394_v20, %v1368_v9  ;;  %v154_v53 = vmul.f32 %v140_v44, %v1043_v18  ;;  %v142_v33 = vpop.xlane.xlu1 %141 }
 0x154   :  { %814 = vst [vmem:[%s1659_s3 + $0x8] sm:$0xff] %v802_v24  ;;  %v684_v5 = vadd.f32 0.2548296, %v672_v58  ;;  %v1411_v32 = vadd.f32 1.0, %v397_v28  ;;  %v280_v38 = vmul.f32 %v1402_v26, %v1370_v2  ;;  %v336_v39 = vmul.f32 0.5, %v1219_v19 }
 0x155   :  { %v1415_v63 = vpop.eup %877  ;;  %v617_v51 = vadd.f32 -1.4531521, %v605_v30  ;;  %v231_v25 = vmul.f32 %v1394_v20, %v230_v31  ;;  %v372_v43 = vsel %vm360_vm2, 1.0, %v968_v46  ;;  %vm235_vm3 = vweird.f32 %v1368_v9 }
 0x156   :  { %v696_v37 = vmul.f32 %v684_v5, %v1339_v40  ;;  %v880_v22 = vpop.eup %879  ;;  %881 = vrcp.f32 %v1411_v32  ;;  %v281_v40 = vmul.f32 %v1402_v26, %v280_v38  ;;  %vm285_vm4 = vweird.f32 %v1370_v2 }
 0x157   :  { %v629_v27 = vmul.f32 %v617_v51, %v1399_v23  ;;  %883 = vpow2.f32 %v745_v21  ;;  %v232_v52 = vmul.f32 0.5, %v231_v25  ;;  %v240_v55 = vmul.f32 %v1415_v63, %v1372_v6 }
 0x158   :  { %v756_v29 = vmul.f32 %v880_v22, %v696_v37  ;;  %v1429_v45 = vadd.f32 1e-05, %v154_v53  ;;  %vm236_vm5 = vweird.f32 %v1394_v20  ;;  %v282_v56 = vmul.f32 0.5, %v281_v40 }
 0x159   :  { %v641_v19 = vadd.f32 1.4214138, %v629_v27  ;;  %v233_v12 = vsub.f32 1.5, %v232_v52  ;;  %v241_v61 = vmul.f32 %v1415_v63, %v240_v55  ;;  %vm245_vm6 = vweird.f32 %v1372_v6  ;;  %vm237_vm8 = vmor %vm235_vm3, %vm236_vm5 }
 0x15a   :  { %v768_v4 = vsub.f32 1.0, %v756_v29  ;;  %vm286_vm7 = vweird.f32 %v1402_v26  ;;  %v486_v14 = vand.u32 2147483647, %v1411_v32  ;;  %v488_v7 = vand.u32 2147483648, %v1411_v32 }
 0x15b   :  { %v653_v42 = vmul.f32 %v641_v19, %v1399_v23  ;;  %v234_v0 = vmul.f32 %v1394_v20, %v233_v12  ;;  %v283_v8 = vsub.f32 1.5, %v282_v56  ;;  %v242_v35 = vmul.f32 0.5, %v241_v61  ;;  %vm287_vm10 = vmor %vm285_vm4, %vm286_vm7 }
 0x15c   :  { %v780_v34 = vmul.f32 %v768_v4, %v372_v43  ;;  %v882_v47 = vpop.eup %881  ;;  %885 = vrsqrt.f32 %v1429_v45  ;;  %vm246_vm9 = vweird.f32 %v1415_v63  ;;  %v155_v5 = vmul.f32 %v142_v33, %v1043_v18 }
 0x15d   :  { %v884_v3 = vpop.eup %883  ;;  %v665_v13 = vadd.f32 -0.28449672, %v653_v42  ;;  %v478_v49 = vmul.f32 %v882_v47, %v1411_v32  ;;  %v238_v15 = vsel %vm237_vm8, %v1394_v20, %v234_v0  ;;  %v284_v24 = vmul.f32 %v1402_v26, %v283_v8  ;;  %vm247_vm12 = vmor %vm245_vm6, %vm246_vm9 }
 0x15e   :  { %v792_v10 = vadd.f32 1.0, %v780_v34  ;;  %v243_v58 = vsub.f32 1.5, %v242_v35  ;;  %v295_v44 = vmul.f32 %v238_v15, %v1078_v48  ;;  %vm483_vm11 = vweird.f32 %v882_v47 }
 0x15f   :  { %v677_v21 = vmul.f32 %v665_v13, %v1399_v23  ;;  %v479_v28 = vsub.f32 1.0, %v478_v49  ;;  %v288_v9 = vsel %vm287_vm10, %v1402_v26, %v284_v24  ;;  %vm365_vm13 = vcmp.ge.f32.partialorder %v1306_v17, 0.0 }
 0x160   :  { %v804_v57 = vmul.f32 %v792_v10, %v336_v39  ;;  %v244_v20 = vmul.f32 %v1415_v63, %v243_v58  ;;  %v311_v48 = vmul.f32 %v1120_v41, %v295_v44  ;;  %v300_v38 = vmul.f32 %v288_v9, %v1093_v59 }
 0x161   :  { %v689_v30 = vadd.f32 0.2548296, %v677_v21  ;;  %v480_v31 = vmul.f32 %v882_v47, %v479_v28  ;;  %vm482_vm14 = vweird.f32 %v1411_v32  ;;  %vm487_vm0 = vcmp.eq.f32.partialorder %v486_v14, 8.507059e+37 }
 0x162   :  { %816 = vst [vmem:[%s1659_s3 + $0x18] sm:$0xff] %v804_v57  ;;  %v248_v18 = vsel %vm247_vm12, %v1415_v63, %v244_v20  ;;  %v1469_v2 = vpop.eup %885  ;;  %v1473_v51 = vadd.f32 %v1124_v50, %v311_v48  ;;  %v316_v59 = vmul.f32 %v1120_v41, %v300_v38  ;;  %vm484_vm15 = vmor %vm482_vm14, %vm483_vm11  ;;  %v489_v6 = vor.u32 1.1754944e-38, %v488_v7 }
 0x163   :  { %v701_v26 = vmul.f32 %v689_v30, %v1399_v23  ;;  %v481_v37 = vadd.f32 %v882_v47, %v480_v31  ;;  %v709_v25 = vsub.f32 0.0, %v1390_v16  ;;  %v296_v32 = vmul.f32 %v248_v18, %v1088_v54 }
 0x164   :  { %v1480_v22 = vmul.f32 0.70710677, %v1473_v51  ;;  %v1482_v23 = vadd.f32 1e-05, %v155_v5  ;;  %v1485_v43 = vadd.f32 %v1124_v50, %v316_v59  ;;  %v260_v27 = vmul.f32 %v1469_v2, %v1429_v45 }
 0x165   :  { %v761_v53 = vmul.f32 %v884_v3, %v701_v26  ;;  %v485_v63 = vsel %vm484_vm15, %v882_v47, %v481_v37  ;;  %v312_v29 = vmul.f32 %v1120_v41, %v296_v32  ;;  %v377_v55 = vsel %vm365_vm13, 1.0, %v968_v46 }
 0x166   :  { %v490_v39 = vsel %vm487_vm0, %v489_v6, %v485_v63  ;;  %v387_v54 = vand.u32 2147483647, %v1480_v22  ;;  %v1495_v4 = vmul.f32 0.70710677, %v1485_v43  ;;  %v341_v12 = vmul.f32 0.5, %v1296_v62 }
 0x167   :  { %v773_v52 = vsub.f32 1.0, %v761_v53  ;;  %v601_v40 = vmul.f32 1.0614054, %v490_v39  ;;  %v1498_v19 = vadd.f32 %v1124_v50, %v312_v29  ;;  %v721_v42 = vmul.f32 %v709_v25, %v1390_v16 }
 0x168   :  { %v399_v34 = vmul.f32 0.3275911, %v387_v54  ;;  %v1503_v0 = vand.u32 2147483647, %v1495_v4  ;;  %v261_v47 = vmul.f32 %v1469_v2, %v260_v27  ;;  %887 = vrsqrt.f32 %v1482_v23 }
 0x169   :  { %v785_v56 = vmul.f32 %v773_v52, %v377_v55  ;;  %v613_v61 = vadd.f32 -1.4531521, %v601_v40  ;;  %v1508_v8 = vmul.f32 0.70710677, %v1498_v19  ;;  %v737_v10 = vmul.f32 1.442695, %v721_v42 }
 0x16a   :  { %v411_v7 = vadd.f32 1.0, %v399_v34  ;;  %v404_v62 = vmul.f32 0.3275911, %v1503_v0  ;;  %v262_v13 = vmul.f32 0.5, %v261_v47  ;;  %v711_v24 = vsub.f32 0.0, %v387_v54 }
 0x16b   :  { %v797_v17 = vadd.f32 1.0, %v785_v56  ;;  %v625_v14 = vmul.f32 %v613_v61, %v490_v39  ;;  %v1517_v33 = vand.u32 2147483647, %v1508_v8  ;;  %vm361_vm1 = vcmp.ge.f32.partialorder %v1384_v11, 0.0 }
 0x16c   :  { %889 = vrcp.f32 %v411_v7  ;;  %v1511_v16 = vadd.f32 1.0, %v404_v62  ;;  %v1524_v57 = vmul.f32 0.5, %v1376_v36  ;;  %v263_v28 = vsub.f32 1.5, %v262_v13 }
 0x16d   :  { %v809_v35 = vmul.f32 %v797_v17, %v341_v12  ;;  %v637_v3 = vadd.f32 1.4214138, %v625_v14  ;;  %v400_v21 = vmul.f32 0.3275911, %v1517_v33  ;;  %vm265_vm2 = vweird.f32 %v1429_v45 }
 0x16e   :  { %v1519_v15 = vpop.eup %887  ;;  %891 = vrcp.f32 %v1511_v16  ;;  %vm266_vm3 = vweird.f32 %v1469_v2  ;;  %v373_v11 = vsel %vm361_vm1, 1.0, %v968_v46  ;;  %v1532_v30 = vmul.f32 %v711_v24, %v387_v54 }
 0x16f   :  { %821 = vst [vmem:[%s1659_s3 + $0x40] sm:$0xff] %v809_v35  ;;  %v649_v49 = vmul.f32 %v637_v3, %v490_v39  ;;  %893 = vpow2.f32 %v737_v10  ;;  %v270_v20 = vmul.f32 %v1519_v15, %v1482_v23  ;;  %v1534_v36 = vadd.f32 1.0, %v400_v21  ;;  %vm1539_vm4 = vmor %vm265_vm2, %vm266_vm3 }
 0x170   :  { %v516_v48 = vand.u32 2147483647, %v411_v7  ;;  %v518_v38 = vand.u32 2147483648, %v411_v7  ;;  %v264_v18 = vmul.f32 %v1469_v2, %v263_v28  ;;  %v716_v45 = vsub.f32 0.0, %v1503_v0 }
 0x171   :  { %v661_v58 = vadd.f32 -0.28449672, %v649_v49  ;;  %895 = vrcp.f32 %v1534_v36  ;;  %v271_v59 = vmul.f32 %v1519_v15, %v270_v20  ;;  %v591_v32 = vand.u32 2147483647, %v1511_v16 }
 0x172   :  { %v890_v44 = vpop.eup %889  ;;  %v593_v53 = vand.u32 2147483648, %v1511_v16  ;;  %v268_v63 = vsel %vm1539_vm4, %v1469_v2, %v264_v18  ;;  %vm275_vm5 = vweird.f32 %v1482_v23  ;;  %vm512_vm6 = vweird.f32 %v411_v7 }
 0x173   :  { %v673_v9 = vmul.f32 %v661_v58, %v490_v39  ;;  %v508_v5 = vmul.f32 %v890_v44, %v411_v7  ;;  %vm513_vm7 = vweird.f32 %v890_v44  ;;  %vm1551_vm8 = vcmp.eq.f32.partialorder %v516_v48, 8.507059e+37 }
 0x174   :  { %v892_v6 = vpop.eup %891  ;;  %v298_v55 = vmul.f32 %v268_v63, %v1095_v60  ;;  %vm587_vm9 = vweird.f32 %v1511_v16  ;;  %v272_v2 = vmul.f32 0.5, %v271_v59  ;;  %vm514_vm10 = vmor %vm512_vm6, %vm513_vm7  ;;  %vm1557_vm11 = vcmp.eq.f32.partialorder %v591_v32, 8.507059e+37  ;;  %v911_v32 = vld [vmem:[#allocation2] ss:$0 sm:$0xff] }
 0x175   :  { %v685_v31 = vadd.f32 0.2548296, %v673_v9  ;;  %v509_v26 = vsub.f32 1.0, %v508_v5  ;;  %v894_v29 = vpop.eup %893  ;;  %v583_v52 = vmul.f32 %v892_v6, %v1511_v16  ;;  %v594_v42 = vor.u32 1.1754944e-38, %v593_v53 }
 0x176   :  { %v314_v47 = vmul.f32 %v1120_v41, %v298_v55  ;;  %vm588_vm12 = vweird.f32 %v892_v6  ;;  %v273_v62 = vsub.f32 1.5, %v272_v2  ;;  %vm276_vm13 = vweird.f32 %v1519_v15 }
 0x177   :  { %v697_v25 = vmul.f32 %v685_v31, %v490_v39  ;;  %v510_v27 = vmul.f32 %v890_v44, %v509_v26  ;;  %v519_v39 = vor.u32 1.1754944e-38, %v518_v38  ;;  %v584_v56 = vsub.f32 1.0, %v583_v52  ;;  %v896_v17 = vpop.eup %895  ;;  %vm589_vm14 = vmor %vm587_vm9, %vm588_vm12  ;;  %v912_v52 = vld [vmem:[#allocation4] ss:$0 sm:$0xff] }
 0x178   :  { %v523_v3 = vmul.f32 %v896_v17, %v1534_v36  ;;  %v1570_v49 = vadd.f32 %v1124_v50, %v314_v47  ;;  %v274_v41 = vmul.f32 %v1519_v15, %v273_v62  ;;  %v531_v21 = vand.u32 2147483647, %v1534_v36  ;;  %vm277_vm0 = vmor %vm275_vm5, %vm276_vm13 }
 0x179   :  { %v757_v40 = vmul.f32 %v894_v29, %v697_v25  ;;  %v511_v12 = vadd.f32 %v890_v44, %v510_v27  ;;  %v585_v7 = vmul.f32 %v892_v6, %v584_v56  ;;  %v533_v28 = vand.u32 2147483648, %v1534_v36 }
 0x17a   :  { %v524_v58 = vsub.f32 1.0, %v523_v3  ;;  %vm528_vm15 = vweird.f32 %v896_v17  ;;  %v1578_v20 = vmul.f32 0.70710677, %v1570_v49  ;;  %v278_v5 = vsel %vm277_vm0, %v1519_v15, %v274_v41 }
 0x17b   :  { %v769_v61 = vsub.f32 1.0, %v757_v40  ;;  %v515_v14 = vsel %vm514_vm10, %v890_v44, %v511_v12  ;;  %v586_v13 = vadd.f32 %v892_v6, %v585_v7  ;;  %v741_v48 = vmul.f32 1.442695, %v1532_v30 }
 0x17c   :  { %v1564_v35 = vsel %vm1551_vm8, %v519_v39, %v515_v14  ;;  %v1589_v18 = vand.u32 2147483647, %v1578_v20  ;;  %vm527_vm1 = vweird.f32 %v1534_v36  ;;  %v299_v26 = vmul.f32 %v278_v5, %v1105_v1 }
 0x17d   :  { %v781_v60 = vmul.f32 %v769_v61, %v373_v11  ;;  %v603_v10 = vmul.f32 1.0614054, %v1564_v35  ;;  %v590_v9 = vsel %vm589_vm14, %v892_v6, %v586_v13  ;;  %v525_v11 = vmul.f32 %v896_v17, %v524_v58  ;;  %vm529_vm2 = vmor %vm527_vm1, %vm528_vm15 }
 0x17e   :  { %v595_v16 = vsel %vm1557_vm11, %v594_v42, %v590_v9  ;;  %v728_v30 = vmul.f32 %v716_v45, %v1503_v0  ;;  %v402_v59 = vmul.f32 0.3275911, %v1589_v18  ;;  %vm532_vm3 = vcmp.eq.f32.partialorder %v531_v21, 8.507059e+37 }
 0x17f   :  { %v793_v24 = vadd.f32 1.0, %v781_v60  ;;  %v615_v44 = vadd.f32 -1.4531521, %v603_v10  ;;  %v608_v38 = vmul.f32 1.0614054, %v595_v16  ;;  %v526_v23 = vadd.f32 %v896_v17, %v525_v11 }
 0x180   :  { %v712_v25 = vsub.f32 0.0, %v1517_v33  ;;  %v315_v53 = vmul.f32 %v911_v32, %v299_v26  ;;  %v414_v29 = vadd.f32 1.0, %v402_v59  ;;  %v751_v54 = vmul.f32 1.442695, %v728_v30 }
 0x181   :  { %v805_v50 = vmul.f32 %v793_v24, %v1524_v57  ;;  %v627_v31 = vmul.f32 %v615_v44, %v1564_v35  ;;  %v534_v57 = vor.u32 1.1754944e-38, %v533_v28  ;;  %v620_v15 = vadd.f32 -1.4531521, %v608_v38 }
 0x182   :  { %v530_v6 = vsel %vm529_vm2, %v896_v17, %v526_v23  ;;  %v1603_v40 = vadd.f32 %v912_v52, %v315_v53  ;;  %897 = vrcp.f32 %v414_v29  ;;  %v724_v55 = vmul.f32 %v712_v25, %v1517_v33 }
 0x183   :  { %817 = vst [vmem:[%s1659_s3 + $0x20] sm:$0xff] %v805_v50  ;;  %v639_v37 = vadd.f32 1.4214138, %v627_v31  ;;  %v632_v63 = vmul.f32 %v620_v15, %v595_v16  ;;  %v535_v1 = vsel %vm532_vm3, %v534_v57, %v530_v6  ;;  %899 = vpow2.f32 %v741_v48 }
 0x184   :  { %v604_v27 = vmul.f32 1.0614054, %v535_v1  ;;  %v1608_v2 = vmul.f32 0.70710677, %v1603_v40  ;;  %vm363_vm4 = vcmp.ge.f32.partialorder %v1480_v22, 0.0  ;;  %901 = vpow2.f32 %v751_v54 }
 0x185   :  { %v651_v36 = vmul.f32 %v639_v37, %v1564_v35  ;;  %v644_v45 = vadd.f32 1.4214138, %v632_v63  ;;  %v743_v17 = vmul.f32 1.442695, %v724_v55  ;;  %v375_v41 = vsel %vm363_vm4, 1.0, %v968_v46 }
 0x186   :  { %v616_v39 = vadd.f32 -1.4531521, %v604_v27  ;;  %v1612_v14 = vand.u32 2147483647, %v1608_v2  ;;  %v561_v50 = vand.u32 2147483647, %v414_v29  ;;  %vm557_vm7 = vweird.f32 %v414_v29 }
 0x187   :  { %v663_v0 = vadd.f32 -0.28449672, %v651_v36  ;;  %v656_v56 = vmul.f32 %v644_v45, %v595_v16  ;;  %903 = vpow2.f32 %v743_v17  ;;  %v563_v11 = vand.u32 2147483648, %v414_v29 }
 0x188   :  { %v628_v61 = vmul.f32 %v616_v39, %v535_v1  ;;  %v898_v7 = vpop.eup %897  ;;  %v403_v13 = vmul.f32 0.3275911, %v1612_v14  ;;  %vm368_vm6 = vcmp.ge.f32.partialorder %v1495_v4, 0.0  ;;  %v339_v26 = vmul.f32 0.5, %v1473_v51 }
 0x189   :  { %v675_v12 = vmul.f32 %v663_v0, %v1564_v35  ;;  %v668_v42 = vadd.f32 -0.28449672, %v656_v56  ;;  %v900_v60 = vpop.eup %899  ;;  %v553_v10 = vmul.f32 %v898_v7, %v414_v29  ;;  %vm558_vm5 = vweird.f32 %v898_v7 }
 0x18a   :  { %v640_v47 = vadd.f32 1.4214138, %v628_v61  ;;  %v1617_v28 = vadd.f32 1.0, %v403_v13  ;;  %vm559_vm8 = vmor %vm557_vm7, %vm558_vm5  ;;  %v380_v59 = vsel %vm368_vm6, 1.0, %v968_v46  ;;  %vm562_vm9 = vcmp.eq.f32.partialorder %v561_v50, 8.507059e+37 }
 0x18b   :  { %v687_v34 = vadd.f32 0.2548296, %v675_v12  ;;  %v680_v62 = vmul.f32 %v668_v42, %v595_v16  ;;  %v554_v21 = vsub.f32 1.0, %v553_v10  ;;  %v714_v4 = vsub.f32 0.0, %v1589_v18 }
 0x18c   :  { %v652_v3 = vmul.f32 %v640_v47, %v535_v1  ;;  %905 = vrcp.f32 %v1617_v28  ;;  %vm364_vm10 = vcmp.ge.f32.partialorder %v1508_v8, 0.0  ;;  %v344_v27 = vmul.f32 0.5, %v1485_v43 }
 0x18d   :  { %v699_v33 = vmul.f32 %v687_v34, %v1564_v35  ;;  %v692_v24 = vadd.f32 0.2548296, %v680_v62  ;;  %v902_v35 = vpop.eup %901  ;;  %v555_v31 = vmul.f32 %v898_v7, %v554_v21  ;;  %v376_v39 = vsel %vm364_vm10, 1.0, %v968_v46 }
 0x18e   :  { %v664_v58 = vadd.f32 -0.28449672, %v652_v3  ;;  %v904_v30 = vpop.eup %903  ;;  %v726_v55 = vmul.f32 %v714_v4, %v1589_v18  ;;  %v578_v61 = vand.u32 2147483648, %v1617_v28  ;;  %v576_v34 = vand.u32 2147483647, %v1617_v28 }
 0x18f   :  { %v759_v22 = vmul.f32 %v900_v60, %v699_v33  ;;  %v704_v9 = vmul.f32 %v692_v24, %v595_v16  ;;  %v556_v57 = vadd.f32 %v898_v7, %v555_v31  ;;  %v564_v16 = vor.u32 1.1754944e-38, %v563_v11 }
 0x190   :  { %v676_v5 = vmul.f32 %v664_v58, %v535_v1  ;;  %v340_v42 = vmul.f32 0.5, %v1498_v19  ;;  %vm572_vm12 = vweird.f32 %v1617_v28  ;;  %v579_v60 = vor.u32 1.1754944e-38, %v578_v61 }
 0x191   :  { %v771_v44 = vsub.f32 1.0, %v759_v22  ;;  %v764_v38 = vmul.f32 %v902_v35, %v704_v9  ;;  %v560_v25 = vsel %vm559_vm8, %v898_v7, %v556_v57  ;;  %v747_v7 = vmul.f32 1.442695, %v726_v55 }
 0x192   :  { %v688_v23 = vadd.f32 0.2548296, %v676_v5  ;;  %v565_v36 = vsel %vm562_vm9, %v564_v16, %v560_v25  ;;  %v906_v63 = vpop.eup %905  ;;  %vm577_vm14 = vcmp.eq.f32.partialorder %v576_v34, 8.507059e+37  ;;  %v715_v19 = vsub.f32 0.0, %v1612_v14 }
 0x193   :  { %v783_v48 = vmul.f32 %v771_v44, %v375_v41  ;;  %v776_v15 = vsub.f32 1.0, %v764_v38  ;;  %v606_v51 = vmul.f32 1.0614054, %v565_v36  ;;  %vm573_vm11 = vweird.f32 %v906_v63 }
 0x194   :  { %v700_v6 = vmul.f32 %v688_v23, %v535_v1  ;;  %v568_v1 = vmul.f32 %v906_v63, %v1617_v28  ;;  %vm574_vm13 = vmor %vm572_vm12, %vm573_vm11  ;;  %907 = vpow2.f32 %v747_v7  ;;  %v727_v21 = vmul.f32 %v715_v19, %v1612_v14 }
 0x195   :  { %v795_v37 = vadd.f32 1.0, %v783_v48  ;;  %v788_v53 = vmul.f32 %v776_v15, %v380_v59  ;;  %v618_v45 = vadd.f32 -1.4531521, %v606_v51  ;;  %vm366_vm15 = vcmp.ge.f32.partialorder %v1578_v20, 0.0 }
 0x196   :  { %v760_v29 = vmul.f32 %v904_v30, %v700_v6  ;;  %v569_v12 = vsub.f32 1.0, %v568_v1  ;;  %v749_v35 = vmul.f32 1.442695, %v727_v21  ;;  %v378_v48 = vsel %vm366_vm15, 1.0, %v968_v46 }
 0x197   :  { %v807_v32 = vmul.f32 %v795_v37, %v339_v26  ;;  %v800_v52 = vadd.f32 1.0, %v788_v53  ;;  %v630_v56 = vmul.f32 %v618_v45, %v565_v36  ;;  %v342_v26 = vmul.f32 0.5, %v1570_v49 }
 0x198   :  { %v772_v0 = vsub.f32 1.0, %v760_v29  ;;  %v570_v43 = vmul.f32 %v906_v63, %v569_v12  ;;  %909 = vpow2.f32 %v749_v35  ;;  %vm367_vm0 = vcmp.ge.f32.partialorder %v1608_v2, 0.0 }
 0x199   :  { %819 = vst [vmem:[%s1659_s3 + $0x30] sm:$0xff] %v807_v32  ;;  %v812_v54 = vmul.f32 %v800_v52, %v344_v27  ;;  %v642_v17 = vadd.f32 1.4214138, %v630_v56  ;;  %v379_v6 = vsel %vm367_vm0, 1.0, %v968_v46  ;;  %v343_v32 = vmul.f32 0.5, %v1603_v40 }
 0x19a   :  { %v784_v8 = vmul.f32 %v772_v0, %v376_v39  ;;  %v571_v33 = vadd.f32 %v906_v63, %v570_v43  ;;  %v908_v9 = vpop.eup %907 }
 0x19b   :  { %824 = vst [vmem:[%s1659_s3 + $0x58] sm:$0xff] %v812_v54  ;;  %v654_v62 = vmul.f32 %v642_v17, %v565_v36 }
 0x19c   :  { %v796_v47 = vadd.f32 1.0, %v784_v8  ;;  %v575_v3 = vsel %vm574_vm13, %v906_v63, %v571_v33 }
 0x19d   :  { %v666_v10 = vadd.f32 -0.28449672, %v654_v62  ;;  %v580_v13 = vsel %vm577_vm14, %v579_v60, %v575_v3 }
 0x19e   :  { %v808_v18 = vmul.f32 %v796_v47, %v340_v42  ;;  %v607_v41 = vmul.f32 1.0614054, %v580_v13  ;;  %v910_v30 = vpop.eup %909 }
 0x19f   :  { %v678_v22 = vmul.f32 %v666_v10, %v565_v36 }
 0x1a0   :  { %820 = vst [vmem:[%s1659_s3 + $0x38] sm:$0xff] %v808_v18  ;;  %v619_v24 = vadd.f32 -1.4531521, %v607_v41 }
 0x1a1   :  { %v690_v58 = vadd.f32 0.2548296, %v678_v22 }
 0x1a2   :  { %v631_v28 = vmul.f32 %v619_v24, %v580_v13 }
 0x1a3   :  { %v702_v44 = vmul.f32 %v690_v58, %v565_v36 }
 0x1a4   :  { %v643_v50 = vadd.f32 1.4214138, %v631_v28 }
 0x1a5   :  { %v762_v11 = vmul.f32 %v908_v9, %v702_v44 }
 0x1a6   :  { %v655_v5 = vmul.f32 %v643_v50, %v580_v13 }
 0x1a7   :  { %v774_v31 = vsub.f32 1.0, %v762_v11 }
 0x1a8   :  { %v667_v38 = vadd.f32 -0.28449672, %v655_v5 }
 0x1a9   :  { %v786_v23 = vmul.f32 %v774_v31, %v378_v48 }
 0x1aa   :  { %v679_v57 = vmul.f32 %v667_v38, %v580_v13 }
 0x1ab   :  { %v798_v37 = vadd.f32 1.0, %v786_v23 }
 0x1ac   :  { %v691_v14 = vadd.f32 0.2548296, %v679_v57 }
 0x1ad   :  { %v810_v15 = vmul.f32 %v798_v37, %v342_v26 }
 0x1ae   :  { %v703_v16 = vmul.f32 %v691_v14, %v580_v13 }
 0x1af   :  { %822 = vst [vmem:[%s1659_s3 + $0x48] sm:$0xff] %v810_v15 }
 0x1b0   :  { %v763_v20 = vmul.f32 %v910_v30, %v703_v16 }
 0x1b2   :  { %v775_v59 = vsub.f32 1.0, %v763_v20 }
 0x1b4   :  { %v787_v25 = vmul.f32 %v775_v59, %v379_v6 }
 0x1b6   :  { %v799_v53 = vadd.f32 1.0, %v787_v25 }
 0x1b8   :  { %v811_v49 = vmul.f32 %v799_v53, %v343_v32 }
 0x1ba   :  { %823 = vst [vmem:[%s1659_s3 + $0x50] sm:$0xff] %v811_v49 }
 0x1bb   :  { %829 = vsyncpa [#allocation3], 1 }
 0x1bc   :  { %830 = vsyncpa [#allocation5], 1 }

// kernel: tile.23
= control target key start
LH: loop header
LB: loop body
LE: loop exit
PB: predicated region body
PF: predicated region fallthrough
CT: control target
= control target key end

     0   :  { %s28_s0 = inlined_call_operand.vmem [shape: f32[4], index: 0, kind: input, shape index: {}]   ;;  %s29_s1 = inlined_call_operand.vmem [shape: f32[12,4], index: 1, kind: output, shape index: {}]  }
   0x1   :  { %v4_v0 = vld [vmem:[%s28_s0] ss:$0 sm:$0xff] }
   0x2   :  { %5 = vst [vmem:[%s29_s1] sm:$0xff] %v4_v0 }
   0x3   :  { %8 = vst [vmem:[%s29_s1 + $0x8] sm:$0xff] %v4_v0 }

// kernel: acoustic_forward.15
= control target key start
LH: loop header
LB: loop body
LE: loop exit
PB: predicated region body
PF: predicated region fallthrough
CT: control target
= control target key end

     0   :  { %s660_s12 = smov 0   ;;  %s754_s0 = inlined_call_operand.vmem [shape: bf16[3,48,56], index: 0, kind: input, shape index: {}]   ;;  %s755_s1 = inlined_call_operand.vmem [shape: f32[48,1], index: 1, kind: input, shape index: {}]   ;;  %s756_s2 = inlined_call_operand.vmem [shape: f32[2,56,130], index: 2, kind: input, shape index: {}]   ;;  %s757_s3 = inlined_call_operand.vmem [shape: f32[2,48,128], index: 3, kind: output, shape index: {}]  }
   0x1 LB: > { %s534_s13 = sadd.s32 4294967295, %s635_s12   ;;  %p538_p0 = scmp.ge.s32.totalorder %s635_s12, 1  ;;  %s635_s12 = sphi %s660_s12, %s13_s12  }
   0x2   : > { %p137_p1 = scmp.lt.s32.totalorder %s635_s12, 3 }
   0x4   : > { %p138_p2 = pnand %p538_p0, %p137_p1 }
   0x5   : > { %p161_p3 = scmp.lt.s32.totalorder (!%p138_p2), %s534_s13, 1  ;;  %s637_s18 = smov (!%p138_p2), 126  }
   0x6   : > { %141 = sbr.rel (%p138_p2) target bundleno = 340 (0x154), region = 32  ;;  %s638_s19 = smov (!%p138_p2), 127  }
   0xb   : > { %s759_s13 = smov (!%p161_p3, %s534_s13), 1  ;;  %vm264_vm0 = vcmask 1043456   ;;  %vm254_vm1 = vcmask 457728   ;;  %v600_v23 = vld [vmem:[%s754_s0] sm:$0xff]  ;;  %vm381_vm2 = vcmask 1031168   ;;  %v601_v32 = vld [vmem:[%s754_s0 + $0x8] sm:$0xff] }
   0xc   : > { %s613_s14 = smul.u32 112, %s759_s13  ;;  %v431_v33 = vld [vmem:[%s755_s1] sm:$0xff]  ;;  %v639_v35 = vmov 0   ;;  %v606_v41 = vld [vmem:[%s754_s0 + $0x30] sm:$0xff]  ;;  %vm246_vm3 = vcmask 1039360   ;;  %v434_v49 = vld [vmem:[%s755_s1 + $0x18] sm:$0xff] }
   0xd   : > { %626 = vset.pattern.permute.xlu1 %v639_v35  ;;  %628 = vset.pattern.permute.xlu0 %v639_v35  ;;  %v602_v47 = vld [vmem:[%s754_s0 + $0x10] sm:$0xff]  ;;  %v432_v51 = vld [vmem:[%s755_s1 + $0x8] sm:$0xff]  ;;  %v435_v56 = vld [vmem:[%s755_s1 + $0x20] sm:$0xff]  ;;  %s614_s25 = smul.u32 48, %s759_s13 }
   0xe   : > { %s165_s17 = scalar_lea.vmem %s756_s2, %s613_s14  ;;  %627 = vset.pattern.permute.xlu2 %v639_v35  ;;  %v433_v50 = vld [vmem:[%s755_s1 + $0x10] sm:$0xff]  ;;  %v436_v55 = vld [vmem:[%s755_s1 + $0x28] sm:$0xff]  ;;  %v607_v58 = vld [vmem:[%s754_s0 + $0x38] sm:$0xff] }
   0xf   : > { %v178_v0 = vld [vmem:[%s165_s17 + $0x60] sm:$0xff]  ;;  %v177_v2 = vld [vmem:[%s165_s17 + $0x50] sm:$0xff]  ;;  %v195_v5 = vld [vmem:[%s165_s17 + $0x68] sm:$0xff]  ;;  %s743_s28 = scalar_lea.vmem %s757_s3, %s614_s25 }
  0x10   : > { %v176_v1 = vld [vmem:[%s165_s17 + $0x40] sm:$0xff]  ;;  %v182_v3 = vpack.c.bf16 %v178_v0, %v178_v0  ;;  %v193_v7 = vld [vmem:[%s165_s17 + $0x48] sm:$0xff]  ;;  %v194_v8 = vld [vmem:[%s165_s17 + $0x58] sm:$0xff]  ;;  %v199_v11 = vpack.c.bf16 %v195_v5, %v195_v5 }
  0x11   : > { %v181_v4 = vpack.c.bf16 %v177_v2, %v176_v1  ;;  %v174_v6 = vld [vmem:[%s165_s17 + $0x20] sm:$0xff]  ;;  %v175_v9 = vld [vmem:[%s165_s17 + $0x30] sm:$0xff]  ;;  %v198_v12 = vpack.c.bf16 %v194_v8, %v193_v7  ;;  %v191_v13 = vld [vmem:[%s165_s17 + $0x28] sm:$0xff] }
  0x12   : > { %377 = vrot.lane.b32.xlu0 %v182_v3, %s637_s18  ;;  %v180_v10 = vpack.c.bf16 %v175_v9, %v174_v6  ;;  %v192_v14 = vld [vmem:[%s165_s17 + $0x38] sm:$0xff]  ;;  %v189_v15 = vld [vmem:[%s165_s17 + $0x8] sm:$0xff]  ;;  %v172_v18 = vld [vmem:[%s165_s17] sm:$0xff]  ;;  %v317_v22 = vsel %vm264_vm0, %v182_v3, 0 }
  0x13   : > { %373 = vrot.lane.b32.xlu1 %v181_v4, %s637_s18  ;;  %v197_v16 = vpack.c.bf16 %v192_v14, %v191_v13  ;;  %v190_v17 = vld [vmem:[%s165_s17 + $0x18] sm:$0xff]  ;;  %v173_v19 = vld [vmem:[%s165_s17 + $0x10] sm:$0xff]  ;;  %323 = vmatpush.bf16.msra.mxu1 %v317_v22  ;;  %v604_v62 = vld [vmem:[%s754_s0 + $0x20] sm:$0xff] }
  0x14   : > { %369 = vrot.lane.b32.xlu2 %v180_v10, %s637_s18  ;;  %v196_v20 = vpack.c.bf16 %v190_v17, %v189_v15  ;;  %v179_v21 = vpack.c.bf16 %v173_v19, %v172_v18  ;;  %v603_v61 = vld [vmem:[%s754_s0 + $0x18] sm:$0xff]  ;;  %v608_v63 = vld [vmem:[%s754_s0 + $0x40] sm:$0xff]  ;;  %v605_v0 = vld [vmem:[%s754_s0 + $0x28] sm:$0xff] }
  0x17   : > { %324 = vmatpush.bf16.msra.mxu1 %v181_v4 }
  0x1a   : > { %379 = vrot.lane.b32.xlu0 %v199_v11, %s637_s18 }
  0x1b   : > { %375 = vrot.lane.b32.xlu1 %v198_v12, %s637_s18  ;;  %325 = vmatpush.bf16.msra.mxu1 %v180_v10 }
  0x1c   : > { %371 = vrot.lane.b32.xlu2 %v197_v16, %s637_s18 }
  0x1f   : > { %326 = vmatpush.bf16.msra.mxu1 %v179_v21 }
  0x22   : > { %365 = vrot.lane.b32.xlu0 %v179_v21, %s637_s18  ;;  %574 = vmatmul.msk.bf16.vlgmr.msra.gmra.mxu1 %vm254_vm1, %v600_v23 }
  0x23   : > { %367 = vrot.lane.b32.xlu1 %v196_v20, %s637_s18 }
  0x24   : > { %242 = vrot.lane.b32.xlu2 %v182_v3, %s638_s19 }
  0x2a   : > { %244 = vrot.lane.b32.xlu0 %v199_v11, %s638_s19 }
  0x2b   : > { %238 = vrot.lane.b32.xlu1 %v181_v4, %s638_s19 }
  0x2c   : > { %240 = vrot.lane.b32.xlu2 %v198_v12, %s638_s19 }
  0x32   : > { %234 = vrot.lane.b32.xlu0 %v180_v10, %s638_s19  ;;  %575 = vmatmul.msk.bf16.gmra.mxu1 %vm254_vm1, %v601_v32 }
  0x33   : > { %236 = vrot.lane.b32.xlu1 %v197_v16, %s638_s19 }
  0x34   : > { %230 = vrot.lane.b32.xlu2 %v179_v21, %s638_s19 }
  0x3a   : > { %232 = vrot.lane.b32.xlu0 %v196_v20, %s638_s19 }
  0x3b   : > { %439 = vperm.xlu1 %626, %v431_v33  }
  0x3c   : > { %444 = vperm.xlu2 %627, %v432_v51  }
  0x42   : > { %576 = vmatmul.msk.bf16.gmra.mxu1 %vm254_vm1, %v602_v47  ;;  %449 = vperm.xlu0 %628, %v433_v50  }
  0x43   : > { %454 = vperm.xlu1 %626, %v434_v49  }
  0x44   : > { %459 = vperm.xlu2 %627, %v435_v56  }
  0x4b   : > { %464 = vperm.xlu1 %626, %v436_v55  }
  0x6e   : > { %v370_v24 = vpop.permute.xlu2 %369 }
  0x76   : > { %v372_v27 = vpop.permute.xlu2 %371 }
  0x77   : > { %v383_v39 = vsel %vm381_vm2, %v370_v24, %v372_v27 }
  0x7e   : > { %v243_v36 = vpop.permute.xlu2 %242 }
  0x84   : > { %v378_v25 = vpop.permute.xlu0 %377 }
  0x85   : > { %v374_v26 = vpop.permute.xlu1 %373 }
  0x86   : > { %v241_v45 = vpop.permute.xlu2 %240 }
  0x8c   : > { %v380_v28 = vpop.permute.xlu0 %379 }
  0x8d   : > { %v376_v29 = vpop.permute.xlu1 %375  ;;  %v385_v30 = vsel %vm381_vm2, %v378_v25, %v380_v28 }
  0x8e   : > { %v399_v31 = vsel %vm264_vm0, %v385_v30, 0  ;;  %v384_v34 = vsel %vm381_vm2, %v374_v26, %v376_v29  ;;  %v231_v57 = vpop.permute.xlu2 %230 }
  0x8f   : > { %405 = vmatpush.bf16.msra.mxu2 %v399_v31 }
  0x93   : > { %406 = vmatpush.bf16.msra.mxu2 %v384_v34 }
  0x94   : > { %v366_v38 = vpop.permute.xlu0 %365 }
  0x95   : > { %v368_v37 = vpop.permute.xlu1 %367 }
  0x96   : > { %v382_v40 = vsel %vm381_vm2, %v366_v38, %v368_v37  ;;  %v445_v19 = vpop.permute.xlu2 %444 }
  0x97   : > { %407 = vmatpush.bf16.msra.mxu2 %v383_v39 }
  0x9b   : > { %408 = vmatpush.bf16.msra.mxu2 %v382_v40 }
  0x9c   : > { %v245_v43 = vpop.permute.xlu0 %244 }
  0x9d   : > { %v239_v42 = vpop.permute.xlu1 %238  ;;  %v250_v44 = vsel %vm246_vm3, %v243_v36, %v245_v43 }
  0x9e   : > { %595 = vmatmul.msk.bf16.vlgmr.msra.gmra.mxu2 %vm254_vm1, %v606_v41  ;;  %v266_v46 = vsel %vm264_vm0, %v250_v44, 0  ;;  %v249_v48 = vsel %vm246_vm3, %v239_v42, %v241_v45  ;;  %v460_v33 = vpop.permute.xlu2 %459 }
  0x9f   : > { %272 = vmatpush.bf16.msra.mxu0 %v266_v46  ;;  %609 = vmatpush.bf16.msra.mxu3 %v266_v46  ;;  %v328_v1 = vpop.f32.mrf.mxu1 }
  0xa3   : > { %273 = vmatpush.bf16.msra.mxu0 %v249_v48  ;;  %610 = vmatpush.bf16.msra.mxu3 %v249_v48 }
  0xa4   : > { %v235_v53 = vpop.permute.xlu0 %234 }
  0xa5   : > { %v237_v52 = vpop.permute.xlu1 %236 }
  0xa6   : > { %v248_v54 = vsel %vm246_vm3, %v235_v53, %v237_v52 }
  0xa7   : > { %274 = vmatpush.bf16.msra.mxu0 %v248_v54  ;;  %611 = vmatpush.bf16.msra.mxu3 %v248_v54  ;;  %v330_v3 = vpop.f32.mrf.mxu1 }
  0xac   : > { %v233_v59 = vpop.permute.xlu0 %232 }
  0xad   : > { %v247_v60 = vsel %vm246_vm3, %v231_v57, %v233_v59  ;;  %v440_v9 = vpop.permute.xlu1 %439 }
  0xae   : > { %275 = vmatpush.bf16.msra.mxu0 %v247_v60  ;;  %612 = vmatpush.bf16.msra.mxu3 %v247_v60 }
  0xaf   : > { %596 = vmatmul.msk.bf16.gmra.mxu2 %vm254_vm1, %v607_v58  ;;  %v333_v5 = vpop.f32.mrf.mxu1 }
  0xb1   : > { %559 = vmatmul.msk.bf16.vlgmr.msra.gmra.mxu0 %vm254_vm1, %v603_v61  ;;  %560 = vmatmul.msk.bf16.vlgmr.msra.gmra.mxu3 %vm254_vm1, %v604_v62 }
  0xb4   : > { %v450_v15 = vpop.permute.xlu0 %449 }
  0xb5   : > { %v455_v27 = vpop.permute.xlu1 %454 }
  0xb7   : > { %v335_v18 = vpop.f32.mrf.mxu1 }
  0xbd   : > { %v465_v41 = vpop.permute.xlu1 %464 }
  0xbf   : > { %597 = vmatmul.msk.bf16.gmra.mxu2 %vm254_vm1, %v608_v63  ;;  %v338_v29 = vpop.f32.mrf.mxu1 }
  0xc1   : > { %561 = vmatmul.msk.bf16.gmra.mxu3 %vm254_vm1, %v605_v0 }
  0xc7   : > { %v340_v36 = vpop.f32.mrf.mxu1 }
 0x121   : > { %v410_v2 = vpop.f32.mrf.mxu2 }
 0x129   : > { %v412_v4 = vpop.f32.mrf.mxu2 }
 0x12e   : > { %v277_v6 = vpop.f32.mrf.mxu0 }
 0x12f   : > { %v329_v7 = vadd.f32 %v328_v1, %v277_v6 }
 0x131   : > { %v425_v8 = vadd.f32 %v410_v2, %v329_v7 }
 0x132   : > { %v415_v10 = vpop.f32.mrf.mxu2 }
 0x133   : > { %v467_v11 = vadd.f32 %v440_v9, %v425_v8 }
 0x134   : > { %v282_v12 = vpop.f32.mrf.mxu3 }
 0x135   : > { %473 = vst [vmem:[%s743_s28] sm:$0xff] %v467_v11  ;;  %v334_v13 = vadd.f32 %v333_v5, %v282_v12 }
 0x136   : > { %v279_v14 = vpop.f32.mrf.mxu0 }
 0x137   : > { %v331_v16 = vadd.f32 %v330_v3, %v279_v14  ;;  %v427_v17 = vadd.f32 %v415_v10, %v334_v13 }
 0x139   : > { %v469_v20 = vadd.f32 %v450_v15, %v427_v17  ;;  %v426_v21 = vadd.f32 %v412_v4, %v331_v16 }
 0x13a   : > { %v417_v22 = vpop.f32.mrf.mxu2 }
 0x13b   : > { %475 = vst [vmem:[%s743_s28 + $0x10] sm:$0xff] %v469_v20  ;;  %v468_v23 = vadd.f32 %v445_v19, %v426_v21 }
 0x13c   : > { %v284_v24 = vpop.f32.mrf.mxu3 }
 0x13d   : > { %474 = vst [vmem:[%s743_s28 + $0x8] sm:$0xff] %v468_v23  ;;  %v336_v25 = vadd.f32 %v335_v18, %v284_v24 }
 0x13f   : > { %v428_v26 = vadd.f32 %v417_v22, %v336_v25 }
 0x141   : > { %v470_v28 = vadd.f32 %v455_v27, %v428_v26 }
 0x142   : > { %v420_v30 = vpop.f32.mrf.mxu2 }
 0x143   : > { %476 = vst [vmem:[%s743_s28 + $0x18] sm:$0xff] %v470_v28 }
 0x144   : > { %v287_v31 = vpop.f32.mrf.mxu3 }
 0x145   : > { %v339_v32 = vadd.f32 %v338_v29, %v287_v31 }
 0x147   : > { %v429_v34 = vadd.f32 %v420_v30, %v339_v32 }
 0x149   : > { %v471_v35 = vadd.f32 %v460_v33, %v429_v34 }
 0x14a   : > { %v422_v39 = vpop.f32.mrf.mxu2 }
 0x14b   : > { %477 = vst [vmem:[%s743_s28 + $0x20] sm:$0xff] %v471_v35 }
 0x14c   : > { %v289_v37 = vpop.f32.mrf.mxu3 }
 0x14d   : > { %v341_v38 = vadd.f32 %v340_v36, %v289_v37 }
 0x14f   : > { %v430_v40 = vadd.f32 %v422_v39, %v341_v38 }
 0x151   : > { %v472_v42 = vadd.f32 %v465_v41, %v430_v40 }
 0x153   : > { %478 = vst [vmem:[%s743_s28 + $0x28] sm:$0xff] %v472_v42 }
 0x154 PF: > { %s13_s12 = sadd.s32 1, %s635_s12  }
 0x155   : > { %p10_p4 = scmp.ge.s32.totalorder %s13_s12, 4  }
 0x157   :  { %12 = sbr.rel (!%p10_p4) target bundleno = 1 (0x1), region = 64 }

// kernel: acoustic_forward.16
= control target key start
LH: loop header
LB: loop body
LE: loop exit
PB: predicated region body
PF: predicated region fallthrough
CT: control target
= control target key end

     0   :  { %v881_v12 = vmov 128.0   ;;  %s1580_s0 = inlined_call_operand.vmem [shape: f32[96,128], index: 0, kind: input, shape index: {}]   ;;  %s1581_s1 = inlined_call_operand.vmem [shape: f32[1,128], index: 1, kind: input, shape index: {}]   ;;  %s1582_s2 = inlined_call_operand.vmem [shape: f32[1,128], index: 2, kind: input, shape index: {}]   ;;  %s1583_s3 = inlined_call_operand.vmem [shape: f32[96,128], index: 3, kind: output, shape index: {}]  }
   0x1   :  { %v906_v0 = vld [vmem:[%s1580_s0 + $0x20] sm:$0xff]  ;;  %v16_v1 = vld [vmem:[%s1580_s0 + $0x10] sm:$0xff]  ;;  %v19_v3 = vld [vmem:[%s1580_s0 + $0x28] sm:$0xff]  ;;  %805 = vrcp.f32 %v881_v12 }
   0x2   :  { %v14_v2 = vld [vmem:[%s1580_s0] sm:$0xff]  ;;  %34 = vadd.xlane.f32.xlu2 %v906_v0  ;;  %30 = vadd.xlane.f32.xlu1 %v16_v1  ;;  %v17_v4 = vld [vmem:[%s1580_s0 + $0x18] sm:$0xff]  ;;  %v15_v5 = vld [vmem:[%s1580_s0 + $0x8] sm:$0xff] }
   0x3   :  { %26 = vadd.xlane.f32.xlu0 %v14_v2  ;;  %v22_v6 = vld [vmem:[%s1580_s0 + $0x40] sm:$0xff]  ;;  %v930_v7 = vld [vmem:[%s1580_s0 + $0x38] sm:$0xff]  ;;  %v20_v8 = vld [vmem:[%s1580_s0 + $0x30] sm:$0xff] }
   0x4   :  { %v939_v9 = vld [vmem:[%s1580_s0 + $0x58] sm:$0xff]  ;;  %v944_v10 = vld [vmem:[%s1580_s0 + $0x50] sm:$0xff]  ;;  %v949_v11 = vld [vmem:[%s1580_s0 + $0x48] sm:$0xff] }
   0x7   :  { %v806_v13 = vpop.eup %805 }
   0x8   :  { %v51_v14 = vmul.f32 128.0, %v806_v13  ;;  %vm55_vm0 = vweird.f32 %v806_v13 }
   0xa   :  { %36 = vadd.xlane.f32.xlu2 %v19_v3  ;;  %32 = vadd.xlane.f32.xlu1 %v17_v4  ;;  %v52_v15 = vsub.f32 1.0, %v51_v14 }
   0xb   :  { %28 = vadd.xlane.f32.xlu0 %v15_v5 }
   0xc   :  { %v53_v16 = vmul.f32 %v806_v13, %v52_v15 }
   0xe   :  { %v54_v17 = vadd.f32 %v806_v13, %v53_v16 }
  0x10   :  { %v954_v18 = vsel %vm55_vm0, %v806_v13, %v54_v17 }
  0x12   :  { %42 = vadd.xlane.f32.xlu2 %v22_v6  ;;  %40 = vadd.xlane.f32.xlu1 %v930_v7 }
  0x13   :  { %38 = vadd.xlane.f32.xlu0 %v20_v8 }
  0x1a   :  { %48 = vadd.xlane.f32.xlu2 %v939_v9  ;;  %46 = vadd.xlane.f32.xlu1 %v944_v10 }
  0x1b   :  { %44 = vadd.xlane.f32.xlu0 %v949_v11 }
  0x75   :  { %v35_v19 = vpop.xlane.xlu2 %34  ;;  %v31_v20 = vpop.xlane.xlu1 %30 }
  0x76   :  { %v59_v21 = vmul.f32 %v954_v18, %v31_v20  ;;  %v27_v22 = vpop.xlane.xlu0 %26  ;;  %v61_v39 = vmul.f32 %v954_v18, %v35_v19 }
  0x77   :  { %v57_v23 = vmul.f32 %v954_v18, %v27_v22 }
  0x78   :  { %v958_v24 = vsub.f32 %v16_v1, %v59_v21  ;;  %v984_v45 = vsub.f32 %v906_v0, %v61_v39 }
  0x79   :  { %v960_v25 = vsub.f32 %v14_v2, %v57_v23 }
  0x7a   :  { %v83_v26 = vmul.f32 %v958_v24, %v958_v24  ;;  %v85_v51 = vmul.f32 %v984_v45, %v984_v45 }
  0x7b   :  { %v81_v27 = vmul.f32 %v960_v25, %v960_v25 }
  0x7c   :  { %97 = vadd.xlane.f32.xlu2 %v83_v26 }
  0x7d   :  { %93 = vadd.xlane.f32.xlu0 %v81_v27  ;;  %v37_v28 = vpop.xlane.xlu2 %36  ;;  %v33_v29 = vpop.xlane.xlu1 %32 }
  0x7e   :  { %v62_v30 = vmul.f32 %v954_v18, %v37_v28  ;;  %v60_v31 = vmul.f32 %v954_v18, %v33_v29  ;;  %v29_v32 = vpop.xlane.xlu0 %28 }
  0x7f   :  { %v58_v33 = vmul.f32 %v954_v18, %v29_v32 }
  0x80   :  { %v969_v34 = vsub.f32 %v19_v3, %v62_v30  ;;  %v971_v35 = vsub.f32 %v17_v4, %v60_v31 }
  0x81   :  { %v973_v36 = vsub.f32 %v15_v5, %v58_v33 }
  0x82   :  { %v86_v37 = vmul.f32 %v969_v34, %v969_v34  ;;  %v84_v38 = vmul.f32 %v971_v35, %v971_v35 }
  0x83   :  { %v82_v40 = vmul.f32 %v973_v36, %v973_v36 }
  0x84   :  { %103 = vadd.xlane.f32.xlu2 %v86_v37 }
  0x85   :  { %99 = vadd.xlane.f32.xlu0 %v84_v38  ;;  %95 = vadd.xlane.f32.xlu1 %v82_v40  ;;  %v43_v41 = vpop.xlane.xlu2 %42  ;;  %v41_v42 = vpop.xlane.xlu1 %40 }
  0x86   :  { %v65_v43 = vmul.f32 %v954_v18, %v43_v41  ;;  %v39_v44 = vpop.xlane.xlu0 %38  ;;  %v64_v49 = vmul.f32 %v954_v18, %v41_v42  ;;  %v1035_v41 = vld [vmem:[%s1581_s1] ss:$0 sm:$0xff] }
  0x87   :  { %v63_v46 = vmul.f32 %v954_v18, %v39_v44 }
  0x88   :  { %v987_v47 = vsub.f32 %v22_v6, %v65_v43  ;;  %v999_v54 = vsub.f32 %v930_v7, %v64_v49 }
  0x89   :  { %v989_v48 = vsub.f32 %v20_v8, %v63_v46 }
  0x8a   :  { %v89_v50 = vmul.f32 %v987_v47, %v987_v47  ;;  %v88_v61 = vmul.f32 %v999_v54, %v999_v54 }
  0x8b   :  { %v87_v52 = vmul.f32 %v989_v48, %v989_v48 }
  0x8c   :  { %109 = vadd.xlane.f32.xlu2 %v89_v50  ;;  %v1042_v50 = vld [vmem:[%s1582_s2] ss:$0 sm:$0xff] }
  0x8d   :  { %101 = vadd.xlane.f32.xlu1 %v85_v51  ;;  %105 = vadd.xlane.f32.xlu0 %v87_v52  ;;  %v49_v53 = vpop.xlane.xlu2 %48  ;;  %v47_v57 = vpop.xlane.xlu1 %46 }
  0x8e   :  { %v68_v55 = vmul.f32 %v954_v18, %v49_v53  ;;  %v45_v56 = vpop.xlane.xlu0 %44  ;;  %v67_v62 = vmul.f32 %v954_v18, %v47_v57 }
  0x8f   :  { %v66_v58 = vmul.f32 %v954_v18, %v45_v56 }
  0x90   :  { %v1004_v59 = vsub.f32 %v939_v9, %v68_v55  ;;  %v1017_v1 = vsub.f32 %v944_v10, %v67_v62 }
  0x91   :  { %v1007_v60 = vsub.f32 %v949_v11, %v66_v58 }
  0x92   :  { %v92_v63 = vmul.f32 %v1004_v59, %v1004_v59  ;;  %v91_v2 = vmul.f32 %v1017_v1, %v1017_v1 }
  0x93   :  { %v90_v0 = vmul.f32 %v1007_v60, %v1007_v60 }
  0x94   :  { %115 = vadd.xlane.f32.xlu2 %v92_v63 }
  0x95   :  { %107 = vadd.xlane.f32.xlu1 %v88_v61  ;;  %111 = vadd.xlane.f32.xlu0 %v90_v0 }
  0x9d   :  { %113 = vadd.xlane.f32.xlu1 %v91_v2 }
  0xef   :  { %v98_v3 = vpop.xlane.xlu2 %97 }
  0xf0   :  { %v119_v4 = vmul.f32 %v98_v3, %v954_v18  ;;  %v94_v5 = vpop.xlane.xlu0 %93 }
  0xf1   :  { %v117_v6 = vmul.f32 %v94_v5, %v954_v18 }
  0xf2   :  { %v131_v7 = vadd.f32 1e-05, %v119_v4 }
  0xf3   :  { %v129_v8 = vadd.f32 1e-05, %v117_v6 }
  0xf4   :  { %807 = vrsqrt.f32 %v131_v7  ;;  %vm167_vm1 = vweird.f32 %v131_v7 }
  0xf5   :  { %809 = vrsqrt.f32 %v129_v8  ;;  %vm147_vm5 = vweird.f32 %v129_v8 }
  0xf7   :  { %v104_v9 = vpop.xlane.xlu2 %103 }
  0xf8   :  { %v122_v11 = vmul.f32 %v104_v9, %v954_v18  ;;  %v96_v12 = vpop.xlane.xlu1 %95  ;;  %v100_v10 = vpop.xlane.xlu0 %99 }
  0xf9   :  { %v118_v13 = vmul.f32 %v96_v12, %v954_v18  ;;  %v120_v14 = vmul.f32 %v100_v10, %v954_v18 }
  0xfa   :  { %v808_v15 = vpop.eup %807  ;;  %v134_v16 = vadd.f32 1e-05, %v122_v11 }
  0xfb   :  { %v810_v17 = vpop.eup %809  ;;  %v162_v19 = vmul.f32 %v808_v15, %v131_v7  ;;  %v130_v20 = vadd.f32 1e-05, %v118_v13  ;;  %v1026_v21 = vadd.f32 1e-05, %v120_v14  ;;  %vm168_vm2 = vweird.f32 %v808_v15 }
  0xfc   :  { %v142_v22 = vmul.f32 %v810_v17, %v129_v8  ;;  %811 = vrsqrt.f32 %v134_v16  ;;  %vm148_vm3 = vweird.f32 %v810_v17  ;;  %vm169_vm4 = vmor %vm167_vm1, %vm168_vm2  ;;  %vm197_vm7 = vweird.f32 %v134_v16 }
  0xfd   :  { %v163_v23 = vmul.f32 %v808_v15, %v162_v19  ;;  %813 = vrsqrt.f32 %v130_v20  ;;  %vm149_vm6 = vmor %vm147_vm5, %vm148_vm3  ;;  %vm157_vm11 = vweird.f32 %v130_v20  ;;  %vm177_vm13 = vweird.f32 %v1026_v21 }
  0xfe   :  { %v143_v26 = vmul.f32 %v810_v17, %v142_v22  ;;  %815 = vrsqrt.f32 %v1026_v21 }
  0xff   :  { %v164_v27 = vmul.f32 0.5, %v163_v23  ;;  %v110_v29 = vpop.xlane.xlu2 %109 }
 0x100   :  { %v144_v28 = vmul.f32 0.5, %v143_v26  ;;  %v125_v39 = vmul.f32 %v110_v29, %v954_v18  ;;  %v102_v5 = vpop.xlane.xlu1 %101 }
 0x101   :  { %v165_v30 = vsub.f32 1.5, %v164_v27  ;;  %v121_v14 = vmul.f32 %v102_v5, %v954_v18 }
 0x102   :  { %v812_v31 = vpop.eup %811  ;;  %v145_v32 = vsub.f32 1.5, %v144_v28  ;;  %v1047_v58 = vadd.f32 1e-05, %v125_v39 }
 0x103   :  { %v814_v33 = vpop.eup %813  ;;  %v166_v37 = vmul.f32 %v808_v15, %v165_v30  ;;  %v192_v38 = vmul.f32 %v812_v31, %v134_v16  ;;  %vm198_vm8 = vweird.f32 %v812_v31  ;;  %v1066_v28 = vadd.f32 1e-05, %v121_v14 }
 0x104   :  { %v1030_v40 = vpop.eup %815  ;;  %v146_v42 = vmul.f32 %v810_v17, %v145_v32  ;;  %v152_v43 = vmul.f32 %v814_v33, %v130_v20  ;;  %vm158_vm9 = vweird.f32 %v814_v33  ;;  %817 = vrsqrt.f32 %v1047_v58  ;;  %vm199_vm10 = vmor %vm197_vm7, %vm198_vm8 }
 0x105   :  { %v170_v44 = vsel %vm169_vm4, %v808_v15, %v166_v37  ;;  %v193_v46 = vmul.f32 %v812_v31, %v192_v38  ;;  %v172_v49 = vmul.f32 %v1030_v40, %v1026_v21  ;;  %vm159_vm12 = vmor %vm157_vm11, %vm158_vm9  ;;  %vm178_vm14 = vweird.f32 %v1030_v40 }
 0x106   :  { %v263_v51 = vmul.f32 %v170_v44, %v958_v24  ;;  %v150_v52 = vsel %vm149_vm6, %v810_v17, %v146_v42  ;;  %v153_v53 = vmul.f32 %v814_v33, %v152_v43  ;;  %vm1075_vm0 = vmor %vm177_vm13, %vm178_vm14  ;;  %vm227_vm5 = vweird.f32 %v1047_v58 }
 0x107   :  { %v261_v55 = vmul.f32 %v150_v52, %v960_v25  ;;  %v194_v56 = vmul.f32 0.5, %v193_v46  ;;  %v173_v57 = vmul.f32 %v1030_v40, %v172_v49  ;;  %v882_v46 = vmov -1.0  }
 0x108   :  { %v279_v61 = vmul.f32 %v1035_v41, %v263_v51  ;;  %v154_v62 = vmul.f32 0.5, %v153_v53 }
 0x109   :  { %v277_v63 = vmul.f32 %v1035_v41, %v261_v55  ;;  %v195_v0 = vsub.f32 1.5, %v194_v56  ;;  %v174_v2 = vmul.f32 0.5, %v173_v57 }
 0x10a   :  { %v295_v24 = vadd.f32 %v1042_v50, %v279_v61  ;;  %v155_v3 = vsub.f32 1.5, %v154_v62  ;;  %v1059_v22 = vpop.eup %817 }
 0x10b   :  { %v293_v25 = vadd.f32 %v1042_v50, %v277_v63  ;;  %v196_v4 = vmul.f32 %v812_v31, %v195_v0  ;;  %v175_v11 = vsub.f32 1.5, %v174_v2  ;;  %vm228_vm6 = vweird.f32 %v1059_v22 }
 0x10c   :  { %v319_v6 = vmul.f32 0.70710677, %v295_v24  ;;  %v156_v7 = vmul.f32 %v814_v33, %v155_v3  ;;  %v1085_v37 = vmul.f32 0.5, %v295_v24 }
 0x10d   :  { %v317_v8 = vmul.f32 0.70710677, %v293_v25  ;;  %v200_v9 = vsel %vm199_vm10, %v812_v31, %v196_v4  ;;  %v176_v26 = vmul.f32 %v1030_v40, %v175_v11  ;;  %v222_v31 = vmul.f32 %v1059_v22, %v1047_v58 }
 0x10e   :  { %v355_v12 = vand.u32 2147483647, %v319_v6  ;;  %v266_v10 = vmul.f32 %v200_v9, %v969_v34  ;;  %v160_v13 = vsel %vm159_vm12, %v814_v33, %v156_v7  ;;  %vm331_vm15 = vcmp.ge.f32.partialorder %v319_v6, 0.0 }
 0x10f   :  { %v353_v15 = vand.u32 2147483647, %v317_v8  ;;  %v262_v16 = vmul.f32 %v160_v13, %v973_v36  ;;  %vm329_vm1 = vcmp.ge.f32.partialorder %v317_v8, 0.0  ;;  %v180_v33 = vsel %vm1075_vm0, %v1030_v40, %v176_v26  ;;  %vm229_vm0 = vmor %vm227_vm5, %vm228_vm6 }
 0x110   :  { %v367_v17 = vmul.f32 0.3275911, %v355_v12  ;;  %v282_v19 = vmul.f32 %v1035_v41, %v266_v10  ;;  %v679_v27 = vsub.f32 0.0, %v355_v12  ;;  %v1090_v43 = vmul.f32 0.5, %v293_v25 }
 0x111   :  { %v365_v20 = vmul.f32 0.3275911, %v353_v15  ;;  %v278_v23 = vmul.f32 %v1035_v41, %v262_v16  ;;  %v677_v32 = vsub.f32 0.0, %v353_v15  ;;  %v1096_v49 = vsel %vm331_vm15, 1.0, %v882_v46 }
 0x112   :  { %v1064_v34 = vadd.f32 1.0, %v367_v17  ;;  %v298_v29 = vadd.f32 %v1042_v50, %v282_v19  ;;  %v691_v38 = vmul.f32 %v679_v27, %v355_v12  ;;  %v1099_v40 = vsel %vm329_vm1, 1.0, %v882_v46 }
 0x113   :  { %v1068_v36 = vadd.f32 1.0, %v365_v20  ;;  %v1073_v21 = vadd.f32 %v1042_v50, %v278_v23  ;;  %v264_v52 = vmul.f32 %v180_v33, %v971_v35  ;;  %v689_v53 = vmul.f32 %v677_v32, %v353_v15 }
 0x114   :  { %819 = vrcp.f32 %v1064_v34  ;;  %v428_v39 = vand.u32 2147483647, %v1064_v34  ;;  %v430_v42 = vand.u32 2147483648, %v1064_v34  ;;  %v1092_v44 = vmul.f32 0.70710677, %v298_v29 }
 0x115   :  { %821 = vrcp.f32 %v1068_v36  ;;  %v1102_v51 = vmul.f32 0.70710677, %v1073_v21  ;;  %vm424_vm2 = vweird.f32 %v1064_v34  ;;  %v223_v56 = vmul.f32 %v1059_v22, %v222_v31 }
 0x116   :  { %823 = vrsqrt.f32 %v1066_v28  ;;  %v358_v55 = vand.u32 2147483647, %v1092_v44  ;;  %v705_v61 = vmul.f32 1.442695, %v691_v38  ;;  %vm394_vm3 = vweird.f32 %v1068_v36 }
 0x117   :  { %v398_v62 = vand.u32 2147483647, %v1068_v36  ;;  %v1111_v63 = vand.u32 2147483647, %v1102_v51  ;;  %vm1114_vm4 = vcmp.eq.f32.partialorder %v428_v39, 8.507059e+37  ;;  %v431_v24 = vor.u32 1.1754944e-38, %v430_v42 }
 0x118   :  { %v370_v3 = vmul.f32 0.3275911, %v358_v55  ;;  %v400_v5 = vand.u32 2147483648, %v1068_v36  ;;  %v280_v7 = vmul.f32 %v1035_v41, %v264_v52  ;;  %v682_v11 = vsub.f32 0.0, %v358_v55 }
 0x119   :  { %v366_v6 = vmul.f32 0.3275911, %v1111_v63  ;;  %v224_v12 = vmul.f32 0.5, %v223_v56  ;;  %825 = vpow2.f32 %v705_v61  ;;  %v701_v13 = vmul.f32 1.442695, %v689_v53 }
 0x11a   :  { %v820_v57 = vpop.eup %819  ;;  %v1124_v9 = vadd.f32 1.0, %v370_v3  ;;  %vm1130_vm8 = vcmp.eq.f32.partialorder %v398_v62, 8.507059e+37  ;;  %v1137_v19 = vadd.f32 %v1042_v50, %v280_v7  ;;  %v1139_v23 = vmul.f32 0.5, %v298_v29 }
 0x11b   :  { %v822_v0 = vpop.eup %821  ;;  %v420_v2 = vmul.f32 %v820_v57, %v1064_v34  ;;  %v1128_v14 = vadd.f32 1.0, %v366_v6  ;;  %vm425_vm7 = vweird.f32 %v820_v57  ;;  %v694_v26 = vmul.f32 %v682_v11, %v358_v55 }
 0x11c   :  { %v1118_v25 = vpop.eup %823  ;;  %v390_v4 = vmul.f32 %v822_v0, %v1068_v36  ;;  %827 = vrcp.f32 %v1124_v9  ;;  %vm395_vm9 = vweird.f32 %v822_v0  ;;  %v225_v27 = vsub.f32 1.5, %v224_v12  ;;  %vm426_vm10 = vmor %vm424_vm2, %vm425_vm7 }
 0x11d   :  { %v421_v8 = vsub.f32 1.0, %v420_v2  ;;  %829 = vrcp.f32 %v1128_v14  ;;  %v401_v31 = vor.u32 1.1754944e-38, %v400_v5  ;;  %v473_v32 = vand.u32 2147483647, %v1124_v9  ;;  %vm396_vm11 = vmor %vm394_vm3, %vm395_vm9 }
 0x11e   :  { %v391_v10 = vsub.f32 1.0, %v390_v4  ;;  %831 = vpow2.f32 %v701_v13  ;;  %v475_v38 = vand.u32 2147483648, %v1124_v9  ;;  %v678_v39 = vsub.f32 0.0, %v1111_v63 }
 0x11f   :  { %v422_v15 = vmul.f32 %v820_v57, %v421_v8  ;;  %v182_v29 = vmul.f32 %v1118_v25, %v1066_v28  ;;  %v1150_v42 = vpop.eup %825  ;;  %vm469_vm12 = vweird.f32 %v1124_v9  ;;  %v1158_v53 = vmul.f32 0.70710677, %v1137_v19 }
 0x120   :  { %v392_v17 = vmul.f32 %v822_v0, %v391_v10  ;;  %v226_v61 = vmul.f32 %v1059_v22, %v225_v27  ;;  %vm1168_vm13 = vcmp.eq.f32.partialorder %v473_v32, 8.507059e+37  ;;  %vm409_vm14 = vweird.f32 %v1128_v14 }
 0x121   :  { %v423_v20 = vadd.f32 %v820_v57, %v422_v15  ;;  %v476_v3 = vor.u32 1.1754944e-38, %v475_v38  ;;  %v413_v5 = vand.u32 2147483647, %v1128_v14  ;;  %vm334_vm15 = vcmp.ge.f32.partialorder %v1092_v44, 0.0 }
 0x122   :  { %v393_v30 = vadd.f32 %v822_v0, %v392_v17  ;;  %v828_v36 = vpop.eup %827  ;;  %v415_v11 = vand.u32 2147483648, %v1128_v14  ;;  %v356_v12 = vand.u32 2147483647, %v1158_v53  ;;  %v690_v15 = vmul.f32 %v678_v39, %v1111_v63 }
 0x123   :  { %v427_v33 = vsel %vm426_vm10, %v820_v57, %v423_v20  ;;  %v711_v57 = vmul.f32 1.442695, %v694_v26  ;;  %v830_v62 = vpop.eup %829  ;;  %v230_v16 = vsel %vm229_vm0, %v1059_v22, %v226_v61  ;;  %vm470_vm1 = vweird.f32 %v828_v36 }
 0x124   :  { %v1154_v34 = vsel %vm1114_vm4, %v431_v24, %v427_v33  ;;  %v397_v52 = vsel %vm396_vm11, %v822_v0, %v393_v30  ;;  %v465_v0 = vmul.f32 %v828_v36, %v1124_v9  ;;  %v405_v4 = vmul.f32 %v830_v62, %v1128_v14  ;;  %v1175_v6 = vpop.eup %831  ;;  %vm471_vm3 = vmor %vm469_vm12, %vm470_vm1 }
 0x125   :  { %v571_v55 = vmul.f32 1.0614054, %v1154_v34  ;;  %v1163_v56 = vsel %vm1130_vm8, %v401_v31, %v397_v52  ;;  %v368_v26 = vmul.f32 0.3275911, %v356_v12  ;;  %vm410_vm2 = vweird.f32 %v830_v62 }
 0x126   :  { %v569_v2 = vmul.f32 1.0614054, %v1163_v56  ;;  %v466_v8 = vsub.f32 1.0, %v465_v0  ;;  %v406_v13 = vsub.f32 1.0, %v405_v4  ;;  %v269_v31 = vmul.f32 %v230_v16, %v987_v47  ;;  %vm411_vm5 = vmor %vm409_vm14, %vm410_vm2 }
 0x127   :  { %v583_v24 = vadd.f32 -1.4531521, %v571_v55  ;;  %v1189_v33 = vadd.f32 1.0, %v368_v26  ;;  %v183_v38 = vmul.f32 %v1118_v25, %v182_v29  ;;  %vm414_vm4 = vcmp.eq.f32.partialorder %v413_v5, 8.507059e+37 }
 0x128   :  { %v581_v7 = vadd.f32 -1.4531521, %v569_v2  ;;  %v467_v20 = vmul.f32 %v828_v36, %v466_v8  ;;  %v407_v30 = vmul.f32 %v830_v62, %v406_v13  ;;  %v416_v39 = vor.u32 1.1754944e-38, %v415_v11 }
 0x129   :  { %v595_v10 = vmul.f32 %v583_v24, %v1154_v34  ;;  %833 = vrcp.f32 %v1189_v33  ;;  %v285_v47 = vmul.f32 %v1035_v41, %v269_v31  ;;  %v703_v2 = vmul.f32 1.442695, %v690_v15 }
 0x12a   :  { %v593_v17 = vmul.f32 %v581_v7, %v1163_v56  ;;  %v468_v58 = vadd.f32 %v828_v36, %v467_v20  ;;  %v408_v22 = vadd.f32 %v830_v62, %v407_v30  ;;  %v1209_v5 = vmul.f32 0.5, %v1073_v21 }
 0x12b   :  { %v607_v27 = vadd.f32 1.4214138, %v595_v10  ;;  %v680_v8 = vsub.f32 0.0, %v356_v12  ;;  %835 = vpow2.f32 %v711_v57  ;;  %v1219_v10 = vsel %vm334_vm15, 1.0, %v882_v46 }
 0x12c   :  { %v605_v32 = vadd.f32 1.4214138, %v593_v17  ;;  %v472_v55 = vsel %vm471_vm3, %v828_v36, %v468_v58  ;;  %v412_v9 = vsel %vm411_vm5, %v830_v62, %v408_v22  ;;  %v184_v36 = vmul.f32 0.5, %v183_v38 }
 0x12d   :  { %v619_v63 = vmul.f32 %v607_v27, %v1154_v34  ;;  %v1202_v29 = vsel %vm1168_vm13, %v476_v3, %v472_v55  ;;  %v1205_v4 = vsel %vm414_vm4, %v416_v39, %v412_v9  ;;  %v1214_v62 = vadd.f32 %v1042_v50, %v285_v47 }
 0x12e   :  { %v617_v52 = vmul.f32 %v605_v32, %v1163_v56  ;;  %v574_v24 = vmul.f32 1.0614054, %v1202_v29  ;;  %v570_v7 = vmul.f32 1.0614054, %v1205_v4  ;;  %837 = vpow2.f32 %v703_v2 }
 0x12f   :  { %v631_v61 = vadd.f32 -0.28449672, %v619_v63  ;;  %v834_v21 = vpop.eup %833  ;;  %vm330_vm6 = vcmp.ge.f32.partialorder %v1102_v51, 0.0  ;;  %v1224_v17 = vmul.f32 0.70710677, %v1214_v62  ;;  %v185_v57 = vsub.f32 1.5, %v184_v36 }
 0x130   :  { %v629_v0 = vadd.f32 -0.28449672, %v617_v52  ;;  %v586_v3 = vadd.f32 -1.4531521, %v574_v24  ;;  %v582_v13 = vadd.f32 -1.4531521, %v570_v7  ;;  %vm187_vm7 = vweird.f32 %v1066_v28 }
 0x131   :  { %v643_v14 = vmul.f32 %v631_v61, %v1154_v34  ;;  %v435_v26 = vmul.f32 %v834_v21, %v1189_v33  ;;  %v692_v27 = vmul.f32 %v680_v8, %v356_v12  ;;  %v443_v32 = vand.u32 2147483647, %v1189_v33 }
 0x132   :  { %v641_v35 = vmul.f32 %v629_v0, %v1163_v56  ;;  %v598_v16 = vmul.f32 %v586_v3, %v1202_v29  ;;  %v594_v44 = vmul.f32 %v582_v13, %v1205_v4  ;;  %v1233_v58 = vand.u32 2147483647, %v1224_v17 }
 0x133   :  { %v655_v11 = vadd.f32 0.2548296, %v643_v14  ;;  %v436_v22 = vsub.f32 1.0, %v435_v26  ;;  %v445_v39 = vand.u32 2147483648, %v1189_v33  ;;  %vm440_vm8 = vweird.f32 %v834_v21  ;;  %v116_v26 = vpop.xlane.xlu2 %115 }
 0x134   :  { %v653_v15 = vadd.f32 0.2548296, %v641_v35  ;;  %v610_v31 = vadd.f32 1.4214138, %v598_v16  ;;  %v606_v63 = vadd.f32 1.4214138, %v594_v44  ;;  %vm188_vm9 = vweird.f32 %v1118_v25 }
 0x135   :  { %v667_v20 = vmul.f32 %v655_v11, %v1154_v34  ;;  %v836_v34 = vpop.eup %835  ;;  %v373_v12 = vmul.f32 0.3275911, %v1233_v58  ;;  %v437_v2 = vmul.f32 %v834_v21, %v436_v22  ;;  %vm439_vm10 = vweird.f32 %v1189_v33  ;;  %vm1253_vm13 = vmor %vm187_vm7, %vm188_vm9 }
 0x136   :  { %v665_v30 = vmul.f32 %v653_v15, %v1163_v56  ;;  %v622_v55 = vmul.f32 %v610_v31, %v1202_v29  ;;  %v186_v56 = vmul.f32 %v1118_v25, %v185_v57  ;;  %v838_v47 = vpop.eup %837  ;;  %v618_v9 = vmul.f32 %v606_v63, %v1205_v4  ;;  %vm441_vm11 = vmor %vm439_vm10, %vm440_vm8  ;;  %v106_v57 = vpop.xlane.xlu0 %105 }
 0x137   :  { %v727_v38 = vmul.f32 %v1150_v42, %v667_v20  ;;  %v1242_v24 = vadd.f32 1.0, %v373_v12  ;;  %v438_v14 = vadd.f32 %v834_v21, %v437_v2  ;;  %v446_v35 = vor.u32 1.1754944e-38, %v445_v39 }
 0x138   :  { %v725_v52 = vmul.f32 %v1175_v6, %v665_v30  ;;  %v634_v0 = vadd.f32 -0.28449672, %v622_v55  ;;  %v630_v36 = vadd.f32 -0.28449672, %v618_v9  ;;  %vm444_vm12 = vcmp.eq.f32.partialorder %v443_v32, 8.507059e+37  ;;  %v108_v30 = vpop.xlane.xlu1 %107 }
 0x139   :  { %v739_v61 = vsub.f32 1.0, %v727_v38  ;;  %839 = vrcp.f32 %v1242_v24  ;;  %v442_v13 = vsel %vm441_vm11, %v834_v21, %v438_v14  ;;  %v190_v16 = vsel %vm1253_vm13, %v1118_v25, %v186_v56 }
 0x13a   :  { %v737_v42 = vsub.f32 1.0, %v725_v52  ;;  %v646_v8 = vmul.f32 %v634_v0, %v1202_v29  ;;  %v642_v11 = vmul.f32 %v630_v36, %v1205_v4  ;;  %v342_v21 = vsel %vm330_vm6, 1.0, %v882_v46 }
 0x13b   :  { %v751_v6 = vmul.f32 %v739_v61, %v1096_v49  ;;  %v707_v38 = vmul.f32 1.442695, %v692_v27  ;;  %v685_v63 = vsub.f32 0.0, %v1233_v58  ;;  %v265_v25 = vmul.f32 %v190_v16, %v984_v45 }
 0x13c   :  { %v749_v7 = vmul.f32 %v737_v42, %v1099_v40  ;;  %v658_v15 = vadd.f32 0.2548296, %v646_v8  ;;  %v1257_v40 = vsel %vm444_vm12, %v446_v35, %v442_v13  ;;  %v654_v28 = vadd.f32 0.2548296, %v642_v11 }
 0x13d   :  { %v763_v3 = vadd.f32 1.0, %v751_v6  ;;  %v572_v44 = vmul.f32 1.0614054, %v1257_v40  ;;  %v123_v22 = vmul.f32 %v106_v57, %v954_v18  ;;  %v128_v27 = vmul.f32 %v116_v26, %v954_v18 }
 0x13e   :  { %v761_v33 = vadd.f32 1.0, %v749_v7  ;;  %v670_v32 = vmul.f32 %v658_v15, %v1202_v29  ;;  %v518_v29 = vand.u32 2147483647, %v1242_v24  ;;  %v124_v52 = vmul.f32 %v108_v30, %v954_v18 }
 0x13f   :  { %v775_v20 = vmul.f32 %v763_v3, %v1085_v37  ;;  %v666_v37 = vmul.f32 %v654_v28, %v1205_v4  ;;  %v584_v51 = vadd.f32 -1.4531521, %v572_v44  ;;  %v840_v39 = vpop.eup %839  ;;  %v520_v45 = vand.u32 2147483648, %v1242_v24  ;;  %v112_v44 = vpop.xlane.xlu0 %111 }
 0x140   :  { %v773_v31 = vmul.f32 %v761_v33, %v1090_v43  ;;  %v730_v43 = vmul.f32 %v836_v34, %v670_v32  ;;  %v510_v12 = vmul.f32 %v840_v39, %v1242_v24  ;;  %v281_v61 = vmul.f32 %v1035_v41, %v265_v25 }
 0x141   :  { %787 = vst [vmem:[%s1583_s3 + $0x10] sm:$0xff] %v775_v20  ;;  %v726_v55 = vmul.f32 %v838_v47, %v666_v37  ;;  %v596_v4 = vmul.f32 %v584_v51, %v1257_v40  ;;  %v1286_v9 = vadd.f32 1e-05, %v123_v22  ;;  %v1288_v2 = vadd.f32 1e-05, %v128_v27 }
 0x142   :  { %785 = vst [vmem:[%s1583_s3] sm:$0xff] %v773_v31  ;;  %v742_v56 = vsub.f32 1.0, %v730_v43  ;;  %v511_v0 = vsub.f32 1.0, %v510_v12  ;;  %v1290_v6 = vadd.f32 1e-05, %v124_v52  ;;  %vm515_vm14 = vweird.f32 %v840_v39 }
 0x143   :  { %v738_v34 = vsub.f32 1.0, %v726_v55  ;;  %v608_v42 = vadd.f32 1.4214138, %v596_v4  ;;  %v1294_v36 = vadd.f32 %v1042_v50, %v281_v61  ;;  %841 = vrsqrt.f32 %v1286_v9 }
 0x144   :  { %v754_v47 = vmul.f32 %v742_v56, %v1219_v10  ;;  %v512_v8 = vmul.f32 %v840_v39, %v511_v0  ;;  %843 = vrsqrt.f32 %v1288_v2  ;;  %vm514_vm15 = vweird.f32 %v1242_v24 }
 0x145   :  { %v750_v14 = vmul.f32 %v738_v34, %v342_v21  ;;  %v620_v7 = vmul.f32 %v608_v42, %v1257_v40  ;;  %v697_v3 = vmul.f32 %v685_v63, %v1233_v58  ;;  %v1302_v11 = vmul.f32 0.70710677, %v1294_v36  ;;  %vm516_vm0 = vmor %vm514_vm15, %vm515_vm14 }
 0x146   :  { %v766_v35 = vadd.f32 1.0, %v754_v47  ;;  %v513_v49 = vadd.f32 %v840_v39, %v512_v8  ;;  %845 = vrsqrt.f32 %v1290_v6  ;;  %v521_v15 = vor.u32 1.1754944e-38, %v520_v45 }
 0x147   :  { %v762_v10 = vadd.f32 1.0, %v750_v14  ;;  %v632_v13 = vadd.f32 -0.28449672, %v620_v7  ;;  %847 = vpow2.f32 %v707_v38  ;;  %v1308_v16 = vand.u32 2147483647, %v1302_v11 }
 0x148   :  { %v778_v33 = vmul.f32 %v766_v35, %v1139_v23  ;;  %v517_v57 = vsel %vm516_vm0, %v840_v39, %v513_v49  ;;  %vm519_vm1 = vcmp.eq.f32.partialorder %v518_v29, 8.507059e+37  ;;  %v717_v21 = vmul.f32 1.442695, %v697_v3 }
 0x149   :  { %v774_v24 = vmul.f32 %v762_v10, %v1209_v5  ;;  %v644_v58 = vmul.f32 %v632_v13, %v1257_v40  ;;  %v1312_v20 = vpop.eup %841  ;;  %v1317_v23 = vsel %vm519_vm1, %v521_v15, %v517_v57  ;;  %v369_v28 = vmul.f32 0.3275911, %v1308_v16 }
 0x14a   :  { %790 = vst [vmem:[%s1583_s3 + $0x28] sm:$0xff] %v778_v33  ;;  %v1320_v26 = vpop.eup %843  ;;  %vm332_vm2 = vcmp.ge.f32.partialorder %v1158_v53, 0.0  ;;  %v577_v30 = vmul.f32 1.0614054, %v1317_v23  ;;  %v202_v31 = vmul.f32 %v1312_v20, %v1286_v9  ;;  %v126_v53 = vmul.f32 %v112_v44, %v954_v18  ;;  %v114_v33 = vpop.xlane.xlu1 %113 }
 0x14b   :  { %786 = vst [vmem:[%s1583_s3 + $0x8] sm:$0xff] %v774_v24  ;;  %v656_v5 = vadd.f32 0.2548296, %v644_v58  ;;  %v1329_v32 = vadd.f32 1.0, %v369_v28  ;;  %v252_v38 = vmul.f32 %v1320_v26, %v1288_v2  ;;  %v308_v39 = vmul.f32 0.5, %v1137_v19 }
 0x14c   :  { %v1333_v63 = vpop.eup %845  ;;  %v589_v51 = vadd.f32 -1.4531521, %v577_v30  ;;  %v203_v25 = vmul.f32 %v1312_v20, %v202_v31  ;;  %v344_v43 = vsel %vm332_vm2, 1.0, %v882_v46  ;;  %vm207_vm3 = vweird.f32 %v1286_v9 }
 0x14d   :  { %v668_v37 = vmul.f32 %v656_v5, %v1257_v40  ;;  %v848_v22 = vpop.eup %847  ;;  %849 = vrcp.f32 %v1329_v32  ;;  %v253_v40 = vmul.f32 %v1320_v26, %v252_v38  ;;  %vm257_vm4 = vweird.f32 %v1288_v2 }
 0x14e   :  { %v601_v27 = vmul.f32 %v589_v51, %v1317_v23  ;;  %851 = vpow2.f32 %v717_v21  ;;  %v204_v52 = vmul.f32 0.5, %v203_v25  ;;  %v212_v55 = vmul.f32 %v1333_v63, %v1290_v6 }
 0x14f   :  { %v728_v29 = vmul.f32 %v848_v22, %v668_v37  ;;  %v1347_v45 = vadd.f32 1e-05, %v126_v53  ;;  %vm208_vm5 = vweird.f32 %v1312_v20  ;;  %v254_v56 = vmul.f32 0.5, %v253_v40 }
 0x150   :  { %v613_v19 = vadd.f32 1.4214138, %v601_v27  ;;  %v205_v12 = vsub.f32 1.5, %v204_v52  ;;  %v213_v61 = vmul.f32 %v1333_v63, %v212_v55  ;;  %vm217_vm6 = vweird.f32 %v1290_v6  ;;  %vm209_vm8 = vmor %vm207_vm3, %vm208_vm5 }
 0x151   :  { %v740_v4 = vsub.f32 1.0, %v728_v29  ;;  %vm258_vm7 = vweird.f32 %v1320_v26  ;;  %v458_v14 = vand.u32 2147483647, %v1329_v32  ;;  %v460_v7 = vand.u32 2147483648, %v1329_v32 }
 0x152   :  { %v625_v42 = vmul.f32 %v613_v19, %v1317_v23  ;;  %v206_v0 = vmul.f32 %v1312_v20, %v205_v12  ;;  %v255_v8 = vsub.f32 1.5, %v254_v56  ;;  %v214_v35 = vmul.f32 0.5, %v213_v61  ;;  %vm259_vm10 = vmor %vm257_vm4, %vm258_vm7 }
 0x153   :  { %v752_v34 = vmul.f32 %v740_v4, %v344_v43  ;;  %v850_v47 = vpop.eup %849  ;;  %853 = vrsqrt.f32 %v1347_v45  ;;  %vm218_vm9 = vweird.f32 %v1333_v63  ;;  %v127_v5 = vmul.f32 %v114_v33, %v954_v18 }
 0x154   :  { %v852_v3 = vpop.eup %851  ;;  %v637_v13 = vadd.f32 -0.28449672, %v625_v42  ;;  %v450_v49 = vmul.f32 %v850_v47, %v1329_v32  ;;  %v210_v15 = vsel %vm209_vm8, %v1312_v20, %v206_v0  ;;  %v256_v24 = vmul.f32 %v1320_v26, %v255_v8  ;;  %vm219_vm12 = vmor %vm217_vm6, %vm218_vm9 }
 0x155   :  { %v764_v10 = vadd.f32 1.0, %v752_v34  ;;  %v215_v58 = vsub.f32 1.5, %v214_v35  ;;  %v267_v44 = vmul.f32 %v210_v15, %v989_v48  ;;  %vm455_vm11 = vweird.f32 %v850_v47 }
 0x156   :  { %v649_v21 = vmul.f32 %v637_v13, %v1317_v23  ;;  %v451_v28 = vsub.f32 1.0, %v450_v49  ;;  %v260_v9 = vsel %vm259_vm10, %v1320_v26, %v256_v24  ;;  %vm337_vm13 = vcmp.ge.f32.partialorder %v1224_v17, 0.0 }
 0x157   :  { %v776_v57 = vmul.f32 %v764_v10, %v308_v39  ;;  %v216_v20 = vmul.f32 %v1333_v63, %v215_v58  ;;  %v283_v48 = vmul.f32 %v1035_v41, %v267_v44  ;;  %v272_v38 = vmul.f32 %v260_v9, %v1004_v59 }
 0x158   :  { %v661_v30 = vadd.f32 0.2548296, %v649_v21  ;;  %v452_v31 = vmul.f32 %v850_v47, %v451_v28  ;;  %vm454_vm14 = vweird.f32 %v1329_v32  ;;  %vm459_vm0 = vcmp.eq.f32.partialorder %v458_v14, 8.507059e+37 }
 0x159   :  { %788 = vst [vmem:[%s1583_s3 + $0x18] sm:$0xff] %v776_v57  ;;  %v220_v18 = vsel %vm219_vm12, %v1333_v63, %v216_v20  ;;  %v1387_v2 = vpop.eup %853  ;;  %v1391_v51 = vadd.f32 %v1042_v50, %v283_v48  ;;  %v288_v59 = vmul.f32 %v1035_v41, %v272_v38  ;;  %vm456_vm15 = vmor %vm454_vm14, %vm455_vm11  ;;  %v461_v6 = vor.u32 1.1754944e-38, %v460_v7 }
 0x15a   :  { %v673_v26 = vmul.f32 %v661_v30, %v1317_v23  ;;  %v453_v37 = vadd.f32 %v850_v47, %v452_v31  ;;  %v681_v25 = vsub.f32 0.0, %v1308_v16  ;;  %v268_v32 = vmul.f32 %v220_v18, %v999_v54 }
 0x15b   :  { %v1398_v22 = vmul.f32 0.70710677, %v1391_v51  ;;  %v1400_v23 = vadd.f32 1e-05, %v127_v5  ;;  %v1403_v43 = vadd.f32 %v1042_v50, %v288_v59  ;;  %v232_v27 = vmul.f32 %v1387_v2, %v1347_v45 }
 0x15c   :  { %v733_v53 = vmul.f32 %v852_v3, %v673_v26  ;;  %v457_v63 = vsel %vm456_vm15, %v850_v47, %v453_v37  ;;  %v284_v29 = vmul.f32 %v1035_v41, %v268_v32  ;;  %v349_v55 = vsel %vm337_vm13, 1.0, %v882_v46 }
 0x15d   :  { %v462_v39 = vsel %vm459_vm0, %v461_v6, %v457_v63  ;;  %v359_v54 = vand.u32 2147483647, %v1398_v22  ;;  %v1413_v4 = vmul.f32 0.70710677, %v1403_v43  ;;  %v313_v12 = vmul.f32 0.5, %v1214_v62 }
 0x15e   :  { %v745_v52 = vsub.f32 1.0, %v733_v53  ;;  %v573_v40 = vmul.f32 1.0614054, %v462_v39  ;;  %v1416_v19 = vadd.f32 %v1042_v50, %v284_v29  ;;  %v693_v42 = vmul.f32 %v681_v25, %v1308_v16 }
 0x15f   :  { %v371_v34 = vmul.f32 0.3275911, %v359_v54  ;;  %v1421_v0 = vand.u32 2147483647, %v1413_v4  ;;  %v233_v47 = vmul.f32 %v1387_v2, %v232_v27  ;;  %855 = vrsqrt.f32 %v1400_v23 }
 0x160   :  { %v757_v56 = vmul.f32 %v745_v52, %v349_v55  ;;  %v585_v61 = vadd.f32 -1.4531521, %v573_v40  ;;  %v1426_v8 = vmul.f32 0.70710677, %v1416_v19  ;;  %v709_v10 = vmul.f32 1.442695, %v693_v42 }
 0x161   :  { %v383_v7 = vadd.f32 1.0, %v371_v34  ;;  %v376_v62 = vmul.f32 0.3275911, %v1421_v0  ;;  %v234_v13 = vmul.f32 0.5, %v233_v47  ;;  %v683_v24 = vsub.f32 0.0, %v359_v54 }
 0x162   :  { %v769_v17 = vadd.f32 1.0, %v757_v56  ;;  %v597_v14 = vmul.f32 %v585_v61, %v462_v39  ;;  %v1435_v33 = vand.u32 2147483647, %v1426_v8  ;;  %vm333_vm1 = vcmp.ge.f32.partialorder %v1302_v11, 0.0 }
 0x163   :  { %857 = vrcp.f32 %v383_v7  ;;  %v1429_v16 = vadd.f32 1.0, %v376_v62  ;;  %v1442_v57 = vmul.f32 0.5, %v1294_v36  ;;  %v235_v28 = vsub.f32 1.5, %v234_v13 }
 0x164   :  { %v781_v35 = vmul.f32 %v769_v17, %v313_v12  ;;  %v609_v3 = vadd.f32 1.4214138, %v597_v14  ;;  %v372_v21 = vmul.f32 0.3275911, %v1435_v33  ;;  %vm237_vm2 = vweird.f32 %v1347_v45 }
 0x165   :  { %v1437_v15 = vpop.eup %855  ;;  %859 = vrcp.f32 %v1429_v16  ;;  %vm238_vm3 = vweird.f32 %v1387_v2  ;;  %v345_v11 = vsel %vm333_vm1, 1.0, %v882_v46  ;;  %v1450_v30 = vmul.f32 %v683_v24, %v359_v54 }
 0x166   :  { %793 = vst [vmem:[%s1583_s3 + $0x40] sm:$0xff] %v781_v35  ;;  %v621_v49 = vmul.f32 %v609_v3, %v462_v39  ;;  %861 = vpow2.f32 %v709_v10  ;;  %v242_v20 = vmul.f32 %v1437_v15, %v1400_v23  ;;  %v1452_v36 = vadd.f32 1.0, %v372_v21  ;;  %vm1457_vm4 = vmor %vm237_vm2, %vm238_vm3 }
 0x167   :  { %v488_v48 = vand.u32 2147483647, %v383_v7  ;;  %v490_v38 = vand.u32 2147483648, %v383_v7  ;;  %v236_v18 = vmul.f32 %v1387_v2, %v235_v28  ;;  %v688_v45 = vsub.f32 0.0, %v1421_v0 }
 0x168   :  { %v633_v58 = vadd.f32 -0.28449672, %v621_v49  ;;  %863 = vrcp.f32 %v1452_v36  ;;  %v243_v59 = vmul.f32 %v1437_v15, %v242_v20  ;;  %v563_v32 = vand.u32 2147483647, %v1429_v16 }
 0x169   :  { %v858_v44 = vpop.eup %857  ;;  %v565_v53 = vand.u32 2147483648, %v1429_v16  ;;  %v240_v63 = vsel %vm1457_vm4, %v1387_v2, %v236_v18  ;;  %vm247_vm5 = vweird.f32 %v1400_v23  ;;  %vm484_vm6 = vweird.f32 %v383_v7 }
 0x16a   :  { %v645_v9 = vmul.f32 %v633_v58, %v462_v39  ;;  %v480_v5 = vmul.f32 %v858_v44, %v383_v7  ;;  %vm485_vm7 = vweird.f32 %v858_v44  ;;  %vm1469_vm8 = vcmp.eq.f32.partialorder %v488_v48, 8.507059e+37 }
 0x16b   :  { %v860_v6 = vpop.eup %859  ;;  %v270_v55 = vmul.f32 %v240_v63, %v1007_v60  ;;  %vm559_vm9 = vweird.f32 %v1429_v16  ;;  %v244_v2 = vmul.f32 0.5, %v243_v59  ;;  %vm486_vm10 = vmor %vm484_vm6, %vm485_vm7  ;;  %vm1475_vm11 = vcmp.eq.f32.partialorder %v563_v32, 8.507059e+37 }
 0x16c   :  { %v657_v31 = vadd.f32 0.2548296, %v645_v9  ;;  %v481_v26 = vsub.f32 1.0, %v480_v5  ;;  %v862_v29 = vpop.eup %861  ;;  %v555_v52 = vmul.f32 %v860_v6, %v1429_v16  ;;  %v566_v42 = vor.u32 1.1754944e-38, %v565_v53 }
 0x16d   :  { %v286_v47 = vmul.f32 %v1035_v41, %v270_v55  ;;  %vm560_vm12 = vweird.f32 %v860_v6  ;;  %v245_v62 = vsub.f32 1.5, %v244_v2  ;;  %vm248_vm13 = vweird.f32 %v1437_v15 }
 0x16e   :  { %v669_v25 = vmul.f32 %v657_v31, %v462_v39  ;;  %v482_v27 = vmul.f32 %v858_v44, %v481_v26  ;;  %v491_v39 = vor.u32 1.1754944e-38, %v490_v38  ;;  %v556_v56 = vsub.f32 1.0, %v555_v52  ;;  %v864_v17 = vpop.eup %863  ;;  %vm561_vm14 = vmor %vm559_vm9, %vm560_vm12 }
 0x16f   :  { %v495_v3 = vmul.f32 %v864_v17, %v1452_v36  ;;  %v1488_v49 = vadd.f32 %v1042_v50, %v286_v47  ;;  %v246_v41 = vmul.f32 %v1437_v15, %v245_v62  ;;  %v503_v21 = vand.u32 2147483647, %v1452_v36  ;;  %vm249_vm0 = vmor %vm247_vm5, %vm248_vm13 }
 0x170   :  { %v729_v40 = vmul.f32 %v862_v29, %v669_v25  ;;  %v483_v12 = vadd.f32 %v858_v44, %v482_v27  ;;  %v557_v7 = vmul.f32 %v860_v6, %v556_v56  ;;  %v505_v28 = vand.u32 2147483648, %v1452_v36 }
 0x171   :  { %v496_v58 = vsub.f32 1.0, %v495_v3  ;;  %vm500_vm15 = vweird.f32 %v864_v17  ;;  %v1496_v20 = vmul.f32 0.70710677, %v1488_v49  ;;  %v250_v5 = vsel %vm249_vm0, %v1437_v15, %v246_v41 }
 0x172   :  { %v741_v61 = vsub.f32 1.0, %v729_v40  ;;  %v487_v14 = vsel %vm486_vm10, %v858_v44, %v483_v12  ;;  %v558_v13 = vadd.f32 %v860_v6, %v557_v7  ;;  %v713_v48 = vmul.f32 1.442695, %v1450_v30 }
 0x173   :  { %v1482_v35 = vsel %vm1469_vm8, %v491_v39, %v487_v14  ;;  %v1507_v18 = vand.u32 2147483647, %v1496_v20  ;;  %vm499_vm1 = vweird.f32 %v1452_v36  ;;  %v271_v26 = vmul.f32 %v250_v5, %v1017_v1  ;;  %v879_v36 = vld [vmem:[%s1581_s1] ss:$0 sm:$0xff] }
 0x174   :  { %v753_v60 = vmul.f32 %v741_v61, %v345_v11  ;;  %v575_v10 = vmul.f32 1.0614054, %v1482_v35  ;;  %v562_v9 = vsel %vm561_vm14, %v860_v6, %v558_v13  ;;  %v497_v11 = vmul.f32 %v864_v17, %v496_v58  ;;  %vm501_vm2 = vmor %vm499_vm1, %vm500_vm15 }
 0x175   :  { %v567_v16 = vsel %vm1475_vm11, %v566_v42, %v562_v9  ;;  %v700_v30 = vmul.f32 %v688_v45, %v1421_v0  ;;  %v374_v59 = vmul.f32 0.3275911, %v1507_v18  ;;  %vm504_vm3 = vcmp.eq.f32.partialorder %v503_v21, 8.507059e+37  ;;  %v880_v0 = vld [vmem:[%s1582_s2] ss:$0 sm:$0xff] }
 0x176   :  { %v765_v24 = vadd.f32 1.0, %v753_v60  ;;  %v587_v44 = vadd.f32 -1.4531521, %v575_v10  ;;  %v580_v38 = vmul.f32 1.0614054, %v567_v16  ;;  %v498_v23 = vadd.f32 %v864_v17, %v497_v11 }
 0x177   :  { %v684_v25 = vsub.f32 0.0, %v1435_v33  ;;  %v287_v32 = vmul.f32 %v879_v36, %v271_v26  ;;  %v386_v29 = vadd.f32 1.0, %v374_v59  ;;  %v723_v54 = vmul.f32 1.442695, %v700_v30 }
 0x178   :  { %v777_v50 = vmul.f32 %v765_v24, %v1442_v57  ;;  %v599_v31 = vmul.f32 %v587_v44, %v1482_v35  ;;  %v506_v57 = vor.u32 1.1754944e-38, %v505_v28  ;;  %v592_v15 = vadd.f32 -1.4531521, %v580_v38 }
 0x179   :  { %v502_v6 = vsel %vm501_vm2, %v864_v17, %v498_v23  ;;  %v1527_v45 = vadd.f32 %v880_v0, %v287_v32  ;;  %865 = vrcp.f32 %v386_v29  ;;  %v696_v55 = vmul.f32 %v684_v25, %v1435_v33 }
 0x17a   :  { %789 = vst [vmem:[%s1583_s3 + $0x20] sm:$0xff] %v777_v50  ;;  %v611_v37 = vadd.f32 1.4214138, %v599_v31  ;;  %v604_v53 = vmul.f32 %v592_v15, %v567_v16  ;;  %v507_v63 = vsel %vm504_vm3, %v506_v57, %v502_v6  ;;  %867 = vpow2.f32 %v713_v48 }
 0x17b   :  { %v576_v27 = vmul.f32 1.0614054, %v507_v63  ;;  %v1532_v2 = vmul.f32 0.70710677, %v1527_v45  ;;  %vm335_vm4 = vcmp.ge.f32.partialorder %v1398_v22, 0.0  ;;  %869 = vpow2.f32 %v723_v54 }
 0x17c   :  { %v623_v1 = vmul.f32 %v611_v37, %v1482_v35  ;;  %v616_v40 = vadd.f32 1.4214138, %v604_v53  ;;  %v715_v17 = vmul.f32 1.442695, %v696_v55  ;;  %v347_v41 = vsel %vm335_vm4, 1.0, %v882_v46 }
 0x17d   :  { %v588_v39 = vadd.f32 -1.4531521, %v576_v27  ;;  %v1536_v14 = vand.u32 2147483647, %v1532_v2  ;;  %v533_v50 = vand.u32 2147483647, %v386_v29  ;;  %vm529_vm7 = vweird.f32 %v386_v29 }
 0x17e   :  { %v635_v52 = vadd.f32 -0.28449672, %v623_v1  ;;  %v628_v56 = vmul.f32 %v616_v40, %v567_v16  ;;  %871 = vpow2.f32 %v715_v17  ;;  %v535_v11 = vand.u32 2147483648, %v386_v29 }
 0x17f   :  { %v600_v61 = vmul.f32 %v588_v39, %v507_v63  ;;  %v866_v7 = vpop.eup %865  ;;  %v375_v13 = vmul.f32 0.3275911, %v1536_v14  ;;  %vm340_vm6 = vcmp.ge.f32.partialorder %v1413_v4, 0.0  ;;  %v311_v26 = vmul.f32 0.5, %v1391_v51 }
 0x180   :  { %v647_v12 = vmul.f32 %v635_v52, %v1482_v35  ;;  %v640_v42 = vadd.f32 -0.28449672, %v628_v56  ;;  %v868_v60 = vpop.eup %867  ;;  %v525_v10 = vmul.f32 %v866_v7, %v386_v29  ;;  %vm530_vm5 = vweird.f32 %v866_v7 }
 0x181   :  { %v612_v47 = vadd.f32 1.4214138, %v600_v61  ;;  %v1541_v28 = vadd.f32 1.0, %v375_v13  ;;  %vm531_vm8 = vmor %vm529_vm7, %vm530_vm5  ;;  %v352_v59 = vsel %vm340_vm6, 1.0, %v882_v46  ;;  %vm534_vm9 = vcmp.eq.f32.partialorder %v533_v50, 8.507059e+37 }
 0x182   :  { %v659_v34 = vadd.f32 0.2548296, %v647_v12  ;;  %v652_v62 = vmul.f32 %v640_v42, %v567_v16  ;;  %v526_v21 = vsub.f32 1.0, %v525_v10  ;;  %v686_v4 = vsub.f32 0.0, %v1507_v18 }
 0x183   :  { %v624_v3 = vmul.f32 %v612_v47, %v507_v63  ;;  %873 = vrcp.f32 %v1541_v28  ;;  %vm336_vm10 = vcmp.ge.f32.partialorder %v1426_v8, 0.0  ;;  %v316_v27 = vmul.f32 0.5, %v1403_v43 }
 0x184   :  { %v671_v33 = vmul.f32 %v659_v34, %v1482_v35  ;;  %v664_v24 = vadd.f32 0.2548296, %v652_v62  ;;  %v870_v35 = vpop.eup %869  ;;  %v527_v31 = vmul.f32 %v866_v7, %v526_v21  ;;  %v348_v39 = vsel %vm336_vm10, 1.0, %v882_v46 }
 0x185   :  { %v636_v58 = vadd.f32 -0.28449672, %v624_v3  ;;  %v872_v30 = vpop.eup %871  ;;  %v698_v55 = vmul.f32 %v686_v4, %v1507_v18  ;;  %v550_v61 = vand.u32 2147483648, %v1541_v28  ;;  %v548_v34 = vand.u32 2147483647, %v1541_v28 }
 0x186   :  { %v731_v22 = vmul.f32 %v868_v60, %v671_v33  ;;  %v676_v9 = vmul.f32 %v664_v24, %v567_v16  ;;  %v528_v57 = vadd.f32 %v866_v7, %v527_v31  ;;  %v536_v16 = vor.u32 1.1754944e-38, %v535_v11 }
 0x187   :  { %v648_v5 = vmul.f32 %v636_v58, %v507_v63  ;;  %v312_v42 = vmul.f32 0.5, %v1416_v19  ;;  %vm544_vm12 = vweird.f32 %v1541_v28  ;;  %v551_v60 = vor.u32 1.1754944e-38, %v550_v61 }
 0x188   :  { %v743_v44 = vsub.f32 1.0, %v731_v22  ;;  %v736_v38 = vmul.f32 %v870_v35, %v676_v9  ;;  %v532_v25 = vsel %vm531_vm8, %v866_v7, %v528_v57  ;;  %v719_v7 = vmul.f32 1.442695, %v698_v55 }
 0x189   :  { %v660_v23 = vadd.f32 0.2548296, %v648_v5  ;;  %v537_v1 = vsel %vm534_vm9, %v536_v16, %v532_v25  ;;  %v874_v53 = vpop.eup %873  ;;  %vm549_vm14 = vcmp.eq.f32.partialorder %v548_v34, 8.507059e+37  ;;  %v687_v19 = vsub.f32 0.0, %v1536_v14 }
 0x18a   :  { %v755_v48 = vmul.f32 %v743_v44, %v347_v41  ;;  %v748_v15 = vsub.f32 1.0, %v736_v38  ;;  %v578_v51 = vmul.f32 1.0614054, %v537_v1  ;;  %vm545_vm11 = vweird.f32 %v874_v53 }
 0x18b   :  { %v672_v6 = vmul.f32 %v660_v23, %v507_v63  ;;  %v540_v63 = vmul.f32 %v874_v53, %v1541_v28  ;;  %vm546_vm13 = vmor %vm544_vm12, %vm545_vm11  ;;  %875 = vpow2.f32 %v719_v7  ;;  %v699_v21 = vmul.f32 %v687_v19, %v1536_v14 }
 0x18c   :  { %v767_v37 = vadd.f32 1.0, %v755_v48  ;;  %v760_v32 = vmul.f32 %v748_v15, %v352_v59  ;;  %v590_v40 = vadd.f32 -1.4531521, %v578_v51  ;;  %vm338_vm15 = vcmp.ge.f32.partialorder %v1496_v20, 0.0 }
 0x18d   :  { %v732_v29 = vmul.f32 %v872_v30, %v672_v6  ;;  %v541_v12 = vsub.f32 1.0, %v540_v63  ;;  %v721_v35 = vmul.f32 1.442695, %v699_v21  ;;  %v350_v48 = vsel %vm338_vm15, 1.0, %v882_v46 }
 0x18e   :  { %v779_v36 = vmul.f32 %v767_v37, %v311_v26  ;;  %v772_v0 = vadd.f32 1.0, %v760_v32  ;;  %v602_v56 = vmul.f32 %v590_v40, %v537_v1  ;;  %v314_v26 = vmul.f32 0.5, %v1488_v49 }
 0x18f   :  { %v744_v52 = vsub.f32 1.0, %v732_v29  ;;  %v542_v43 = vmul.f32 %v874_v53, %v541_v12  ;;  %877 = vpow2.f32 %v721_v35  ;;  %vm339_vm0 = vcmp.ge.f32.partialorder %v1532_v2, 0.0 }
 0x190   :  { %791 = vst [vmem:[%s1583_s3 + $0x30] sm:$0xff] %v779_v36  ;;  %v784_v54 = vmul.f32 %v772_v0, %v316_v27  ;;  %v614_v17 = vadd.f32 1.4214138, %v602_v56  ;;  %v351_v6 = vsel %vm339_vm0, 1.0, %v882_v46  ;;  %v315_v36 = vmul.f32 0.5, %v1527_v45 }
 0x191   :  { %v756_v8 = vmul.f32 %v744_v52, %v348_v39  ;;  %v543_v33 = vadd.f32 %v874_v53, %v542_v43  ;;  %v876_v9 = vpop.eup %875 }
 0x192   :  { %796 = vst [vmem:[%s1583_s3 + $0x58] sm:$0xff] %v784_v54  ;;  %v626_v62 = vmul.f32 %v614_v17, %v537_v1 }
 0x193   :  { %v768_v47 = vadd.f32 1.0, %v756_v8  ;;  %v547_v3 = vsel %vm546_vm13, %v874_v53, %v543_v33 }
 0x194   :  { %v638_v10 = vadd.f32 -0.28449672, %v626_v62  ;;  %v552_v13 = vsel %vm549_vm14, %v551_v60, %v547_v3 }
 0x195   :  { %v780_v18 = vmul.f32 %v768_v47, %v312_v42  ;;  %v579_v41 = vmul.f32 1.0614054, %v552_v13  ;;  %v878_v30 = vpop.eup %877 }
 0x196   :  { %v650_v22 = vmul.f32 %v638_v10, %v537_v1 }
 0x197   :  { %792 = vst [vmem:[%s1583_s3 + $0x38] sm:$0xff] %v780_v18  ;;  %v591_v24 = vadd.f32 -1.4531521, %v579_v41 }
 0x198   :  { %v662_v58 = vadd.f32 0.2548296, %v650_v22 }
 0x199   :  { %v603_v28 = vmul.f32 %v591_v24, %v552_v13 }
 0x19a   :  { %v674_v44 = vmul.f32 %v662_v58, %v537_v1 }
 0x19b   :  { %v615_v50 = vadd.f32 1.4214138, %v603_v28 }
 0x19c   :  { %v734_v11 = vmul.f32 %v876_v9, %v674_v44 }
 0x19d   :  { %v627_v5 = vmul.f32 %v615_v50, %v552_v13 }
 0x19e   :  { %v746_v31 = vsub.f32 1.0, %v734_v11 }
 0x19f   :  { %v639_v38 = vadd.f32 -0.28449672, %v627_v5 }
 0x1a0   :  { %v758_v23 = vmul.f32 %v746_v31, %v350_v48 }
 0x1a1   :  { %v651_v57 = vmul.f32 %v639_v38, %v552_v13 }
 0x1a2   :  { %v770_v37 = vadd.f32 1.0, %v758_v23 }
 0x1a3   :  { %v663_v14 = vadd.f32 0.2548296, %v651_v57 }
 0x1a4   :  { %v782_v15 = vmul.f32 %v770_v37, %v314_v26 }
 0x1a5   :  { %v675_v16 = vmul.f32 %v663_v14, %v552_v13 }
 0x1a6   :  { %794 = vst [vmem:[%s1583_s3 + $0x48] sm:$0xff] %v782_v15 }
 0x1a7   :  { %v735_v20 = vmul.f32 %v878_v30, %v675_v16 }
 0x1a9   :  { %v747_v59 = vsub.f32 1.0, %v735_v20 }
 0x1ab   :  { %v759_v25 = vmul.f32 %v747_v59, %v351_v6 }
 0x1ad   :  { %v771_v32 = vadd.f32 1.0, %v759_v25 }
 0x1af   :  { %v783_v49 = vmul.f32 %v771_v32, %v315_v36 }
 0x1b1   :  { %795 = vst [vmem:[%s1583_s3 + $0x50] sm:$0xff] %v783_v49 }

// kernel: acoustic_forward.17
= control target key start
LH: loop header
LB: loop body
LE: loop exit
PB: predicated region body
PF: predicated region fallthrough
CT: control target
= control target key end

     0   :  { %s737_s15 = smov 0   ;;  %s842_s0 = inlined_call_operand.vmem [shape: bf16[3,48,56], index: 0, kind: input, shape index: {}]   ;;  %s843_s1 = inlined_call_operand.vmem [shape: f32[48,1], index: 1, kind: input, shape index: {}]   ;;  %s844_s2 = inlined_call_operand.vmem [shape: f32[2,56,130], index: 2, kind: input, shape index: {}]   ;;  %s845_s3 = inlined_call_operand.vmem [shape: f32[2,48,128], index: 3, kind: input, shape index: {}]   ;;  %s846_s4 = inlined_call_operand.vmem [shape: f32[2,48,128], index: 4, kind: output, shape index: {}]  }
   0x1 LB: > { %s605_s16 = sadd.s32 4294967295, %s707_s15   ;;  %p609_p0 = scmp.ge.s32.totalorder %s707_s15, 1  ;;  %s707_s15 = sphi %s737_s15, %s14_s15  }
   0x2   : > { %p172_p1 = scmp.lt.s32.totalorder %s707_s15, 3 }
   0x4   : > { %p173_p2 = pnand %p609_p0, %p172_p1 }
   0x5   : > { %p203_p3 = scmp.lt.s32.totalorder (!%p173_p2), %s605_s16, 1  ;;  %s709_s21 = smov (!%p173_p2), 126  }
   0x6   : > { %176 = sbr.rel (%p173_p2) target bundleno = 342 (0x156), region = 36  ;;  %s710_s22 = smov (!%p173_p2), 127  }
   0xb   : > { %s848_s16 = smov (!%p203_p3, %s605_s16), 1  ;;  %vm311_vm0 = vcmask 1043456   ;;  %vm301_vm1 = vcmask 457728   ;;  %v672_v23 = vld [vmem:[%s842_s0] sm:$0xff]  ;;  %vm428_vm2 = vcmask 1031168   ;;  %v673_v32 = vld [vmem:[%s842_s0 + $0x8] sm:$0xff] }
   0xc   : > { %s685_s17 = smul.u32 112, %s848_s16  ;;  %v478_v33 = vld [vmem:[%s843_s1] sm:$0xff]  ;;  %v711_v35 = vmov 0   ;;  %v678_v41 = vld [vmem:[%s842_s0 + $0x30] sm:$0xff]  ;;  %vm293_vm3 = vcmask 1039360   ;;  %v481_v49 = vld [vmem:[%s843_s1 + $0x18] sm:$0xff] }
   0xd   : > { %698 = vset.pattern.permute.xlu1 %v711_v35  ;;  %700 = vset.pattern.permute.xlu0 %v711_v35  ;;  %v674_v47 = vld [vmem:[%s842_s0 + $0x10] sm:$0xff]  ;;  %v479_v51 = vld [vmem:[%s843_s1 + $0x8] sm:$0xff]  ;;  %v482_v56 = vld [vmem:[%s843_s1 + $0x20] sm:$0xff]  ;;  %s686_s29 = smul.u32 48, %s848_s16 }
   0xe   : > { %s207_s20 = scalar_lea.vmem %s844_s2, %s685_s17  ;;  %699 = vset.pattern.permute.xlu2 %v711_v35  ;;  %v480_v50 = vld [vmem:[%s843_s1 + $0x10] sm:$0xff]  ;;  %v483_v55 = vld [vmem:[%s843_s1 + $0x28] sm:$0xff]  ;;  %v679_v58 = vld [vmem:[%s842_s0 + $0x38] sm:$0xff] }
   0xf   : > { %v225_v0 = vld [vmem:[%s207_s20 + $0x60] sm:$0xff]  ;;  %v224_v2 = vld [vmem:[%s207_s20 + $0x50] sm:$0xff]  ;;  %v242_v5 = vld [vmem:[%s207_s20 + $0x68] sm:$0xff]  ;;  %s820_s6 = scalar_lea.vmem %s845_s3, %s686_s29  ;;  %s826_s16 = scalar_lea.vmem %s846_s4, %s686_s29 }
  0x10   : > { %v223_v1 = vld [vmem:[%s207_s20 + $0x40] sm:$0xff]  ;;  %v229_v3 = vpack.c.bf16 %v225_v0, %v225_v0  ;;  %v240_v7 = vld [vmem:[%s207_s20 + $0x48] sm:$0xff]  ;;  %v241_v8 = vld [vmem:[%s207_s20 + $0x58] sm:$0xff]  ;;  %v246_v11 = vpack.c.bf16 %v242_v5, %v242_v5 }
  0x11   : > { %v228_v4 = vpack.c.bf16 %v224_v2, %v223_v1  ;;  %v221_v6 = vld [vmem:[%s207_s20 + $0x20] sm:$0xff]  ;;  %v222_v9 = vld [vmem:[%s207_s20 + $0x30] sm:$0xff]  ;;  %v245_v12 = vpack.c.bf16 %v241_v8, %v240_v7  ;;  %v238_v13 = vld [vmem:[%s207_s20 + $0x28] sm:$0xff] }
  0x12   : > { %424 = vrot.lane.b32.xlu0 %v229_v3, %s709_s21  ;;  %v227_v10 = vpack.c.bf16 %v222_v9, %v221_v6  ;;  %v239_v14 = vld [vmem:[%s207_s20 + $0x38] sm:$0xff]  ;;  %v236_v15 = vld [vmem:[%s207_s20 + $0x8] sm:$0xff]  ;;  %v219_v18 = vld [vmem:[%s207_s20] sm:$0xff]  ;;  %v364_v22 = vsel %vm311_vm0, %v229_v3, 0 }
  0x13   : > { %420 = vrot.lane.b32.xlu1 %v228_v4, %s709_s21  ;;  %v244_v16 = vpack.c.bf16 %v239_v14, %v238_v13  ;;  %v237_v17 = vld [vmem:[%s207_s20 + $0x18] sm:$0xff]  ;;  %v220_v19 = vld [vmem:[%s207_s20 + $0x10] sm:$0xff]  ;;  %370 = vmatpush.bf16.msra.mxu1 %v364_v22  ;;  %v676_v62 = vld [vmem:[%s842_s0 + $0x20] sm:$0xff] }
  0x14   : > { %416 = vrot.lane.b32.xlu2 %v227_v10, %s709_s21  ;;  %v243_v20 = vpack.c.bf16 %v237_v17, %v236_v15  ;;  %v226_v21 = vpack.c.bf16 %v220_v19, %v219_v18  ;;  %v675_v61 = vld [vmem:[%s842_s0 + $0x18] sm:$0xff]  ;;  %v680_v63 = vld [vmem:[%s842_s0 + $0x40] sm:$0xff]  ;;  %v677_v0 = vld [vmem:[%s842_s0 + $0x28] sm:$0xff] }
  0x15   : > { %v520_v9 = vld [vmem:[%s820_s6] sm:$0xff] }
  0x17   : > { %371 = vmatpush.bf16.msra.mxu1 %v228_v4 }
  0x1a   : > { %426 = vrot.lane.b32.xlu0 %v246_v11, %s709_s21 }
  0x1b   : > { %422 = vrot.lane.b32.xlu1 %v245_v12, %s709_s21  ;;  %372 = vmatpush.bf16.msra.mxu1 %v227_v10 }
  0x1c   : > { %418 = vrot.lane.b32.xlu2 %v244_v16, %s709_s21 }
  0x1f   : > { %373 = vmatpush.bf16.msra.mxu1 %v226_v21 }
  0x22   : > { %412 = vrot.lane.b32.xlu0 %v226_v21, %s709_s21  ;;  %646 = vmatmul.msk.bf16.vlgmr.msra.gmra.mxu1 %vm301_vm1, %v672_v23 }
  0x23   : > { %414 = vrot.lane.b32.xlu1 %v243_v20, %s709_s21 }
  0x24   : > { %289 = vrot.lane.b32.xlu2 %v229_v3, %s710_s22 }
  0x2a   : > { %291 = vrot.lane.b32.xlu0 %v246_v11, %s710_s22 }
  0x2b   : > { %285 = vrot.lane.b32.xlu1 %v228_v4, %s710_s22 }
  0x2c   : > { %287 = vrot.lane.b32.xlu2 %v245_v12, %s710_s22 }
  0x32   : > { %281 = vrot.lane.b32.xlu0 %v227_v10, %s710_s22  ;;  %647 = vmatmul.msk.bf16.gmra.mxu1 %vm301_vm1, %v673_v32 }
  0x33   : > { %283 = vrot.lane.b32.xlu1 %v244_v16, %s710_s22 }
  0x34   : > { %277 = vrot.lane.b32.xlu2 %v226_v21, %s710_s22  ;;  %v522_v21 = vld [vmem:[%s820_s6 + $0x10] sm:$0xff] }
  0x3a   : > { %279 = vrot.lane.b32.xlu0 %v243_v20, %s710_s22 }
  0x3b   : > { %486 = vperm.xlu1 %698, %v478_v33  }
  0x3c   : > { %491 = vperm.xlu2 %699, %v479_v51  }
  0x42   : > { %648 = vmatmul.msk.bf16.gmra.mxu1 %vm301_vm1, %v674_v47  ;;  %496 = vperm.xlu0 %700, %v480_v50  }
  0x43   : > { %501 = vperm.xlu1 %698, %v481_v49  }
  0x44   : > { %506 = vperm.xlu2 %699, %v482_v56  }
  0x4b   : > { %511 = vperm.xlu1 %698, %v483_v55  }
  0x6e   : > { %v417_v24 = vpop.permute.xlu2 %416 }
  0x76   : > { %v419_v27 = vpop.permute.xlu2 %418 }
  0x77   : > { %v430_v39 = vsel %vm428_vm2, %v417_v24, %v419_v27 }
  0x7e   : > { %v290_v36 = vpop.permute.xlu2 %289 }
  0x84   : > { %v425_v25 = vpop.permute.xlu0 %424 }
  0x85   : > { %v421_v26 = vpop.permute.xlu1 %420 }
  0x86   : > { %v288_v45 = vpop.permute.xlu2 %287 }
  0x8c   : > { %v427_v28 = vpop.permute.xlu0 %426 }
  0x8d   : > { %v423_v29 = vpop.permute.xlu1 %422  ;;  %v432_v30 = vsel %vm428_vm2, %v425_v25, %v427_v28 }
  0x8e   : > { %v446_v31 = vsel %vm311_vm0, %v432_v30, 0  ;;  %v431_v34 = vsel %vm428_vm2, %v421_v26, %v423_v29  ;;  %v278_v57 = vpop.permute.xlu2 %277  ;;  %v521_v26 = vld [vmem:[%s820_s6 + $0x8] sm:$0xff] }
  0x8f   : > { %452 = vmatpush.bf16.msra.mxu2 %v446_v31 }
  0x93   : > { %453 = vmatpush.bf16.msra.mxu2 %v431_v34  ;;  %v523_v34 = vld [vmem:[%s820_s6 + $0x18] sm:$0xff] }
  0x94   : > { %v413_v38 = vpop.permute.xlu0 %412 }
  0x95   : > { %v415_v37 = vpop.permute.xlu1 %414 }
  0x96   : > { %v429_v40 = vsel %vm428_vm2, %v413_v38, %v415_v37  ;;  %v492_v22 = vpop.permute.xlu2 %491 }
  0x97   : > { %454 = vmatpush.bf16.msra.mxu2 %v430_v39 }
  0x9b   : > { %455 = vmatpush.bf16.msra.mxu2 %v429_v40 }
  0x9c   : > { %v292_v43 = vpop.permute.xlu0 %291 }
  0x9d   : > { %v286_v42 = vpop.permute.xlu1 %285  ;;  %v297_v44 = vsel %vm293_vm3, %v290_v36, %v292_v43  ;;  %v524_v43 = vld [vmem:[%s820_s6 + $0x20] sm:$0xff] }
  0x9e   : > { %667 = vmatmul.msk.bf16.vlgmr.msra.gmra.mxu2 %vm301_vm1, %v678_v41  ;;  %v313_v46 = vsel %vm311_vm0, %v297_v44, 0  ;;  %v296_v48 = vsel %vm293_vm3, %v286_v42, %v288_v45  ;;  %v507_v41 = vpop.permute.xlu2 %506 }
  0x9f   : > { %319 = vmatpush.bf16.msra.mxu0 %v313_v46  ;;  %681 = vmatpush.bf16.msra.mxu3 %v313_v46  ;;  %v375_v1 = vpop.f32.mrf.mxu1 }
  0xa3   : > { %320 = vmatpush.bf16.msra.mxu0 %v296_v48  ;;  %682 = vmatpush.bf16.msra.mxu3 %v296_v48 }
  0xa4   : > { %v282_v53 = vpop.permute.xlu0 %281 }
  0xa5   : > { %v284_v52 = vpop.permute.xlu1 %283 }
  0xa6   : > { %v295_v54 = vsel %vm293_vm3, %v282_v53, %v284_v52  ;;  %v525_v52 = vld [vmem:[%s820_s6 + $0x28] sm:$0xff] }
  0xa7   : > { %321 = vmatpush.bf16.msra.mxu0 %v295_v54  ;;  %683 = vmatpush.bf16.msra.mxu3 %v295_v54  ;;  %v377_v3 = vpop.f32.mrf.mxu1 }
  0xac   : > { %v280_v59 = vpop.permute.xlu0 %279 }
  0xad   : > { %v294_v60 = vsel %vm293_vm3, %v278_v57, %v280_v59  ;;  %v487_v10 = vpop.permute.xlu1 %486 }
  0xae   : > { %322 = vmatpush.bf16.msra.mxu0 %v294_v60  ;;  %684 = vmatpush.bf16.msra.mxu3 %v294_v60 }
  0xaf   : > { %668 = vmatmul.msk.bf16.gmra.mxu2 %vm301_vm1, %v679_v58  ;;  %v380_v5 = vpop.f32.mrf.mxu1 }
  0xb1   : > { %631 = vmatmul.msk.bf16.vlgmr.msra.gmra.mxu0 %vm301_vm1, %v675_v61  ;;  %632 = vmatmul.msk.bf16.vlgmr.msra.gmra.mxu3 %vm301_vm1, %v676_v62 }
  0xb4   : > { %v497_v17 = vpop.permute.xlu0 %496 }
  0xb5   : > { %v502_v33 = vpop.permute.xlu1 %501 }
  0xb7   : > { %v382_v20 = vpop.f32.mrf.mxu1 }
  0xbd   : > { %v512_v51 = vpop.permute.xlu1 %511 }
  0xbf   : > { %669 = vmatmul.msk.bf16.gmra.mxu2 %vm301_vm1, %v680_v63  ;;  %v385_v36 = vpop.f32.mrf.mxu1 }
  0xc1   : > { %633 = vmatmul.msk.bf16.gmra.mxu3 %vm301_vm1, %v677_v0 }
  0xc7   : > { %v387_v46 = vpop.f32.mrf.mxu1 }
 0x121   : > { %v457_v2 = vpop.f32.mrf.mxu2 }
 0x129   : > { %v459_v4 = vpop.f32.mrf.mxu2 }
 0x12e   : > { %v324_v6 = vpop.f32.mrf.mxu0 }
 0x12f   : > { %v376_v7 = vadd.f32 %v375_v1, %v324_v6 }
 0x131   : > { %v472_v8 = vadd.f32 %v457_v2, %v376_v7 }
 0x132   : > { %v462_v11 = vpop.f32.mrf.mxu2 }
 0x133   : > { %v514_v12 = vadd.f32 %v487_v10, %v472_v8 }
 0x134   : > { %v329_v13 = vpop.f32.mrf.mxu3 }
 0x135   : > { %v526_v14 = vadd.f32 %v520_v9, %v514_v12  ;;  %v381_v15 = vadd.f32 %v380_v5, %v329_v13 }
 0x136   : > { %v326_v16 = vpop.f32.mrf.mxu0 }
 0x137   : > { %532 = vst [vmem:[%s826_s16] sm:$0xff] %v526_v14  ;;  %v378_v18 = vadd.f32 %v377_v3, %v326_v16  ;;  %v474_v19 = vadd.f32 %v462_v11, %v381_v15 }
 0x139   : > { %v516_v23 = vadd.f32 %v497_v17, %v474_v19  ;;  %v473_v24 = vadd.f32 %v459_v4, %v378_v18 }
 0x13a   : > { %v464_v25 = vpop.f32.mrf.mxu2 }
 0x13b   : > { %v528_v27 = vadd.f32 %v522_v21, %v516_v23  ;;  %v515_v28 = vadd.f32 %v492_v22, %v473_v24 }
 0x13c   : > { %v331_v29 = vpop.f32.mrf.mxu3 }
 0x13d   : > { %534 = vst [vmem:[%s826_s16 + $0x10] sm:$0xff] %v528_v27  ;;  %v527_v30 = vadd.f32 %v521_v26, %v515_v28  ;;  %v383_v31 = vadd.f32 %v382_v20, %v331_v29 }
 0x13f   : > { %533 = vst [vmem:[%s826_s16 + $0x8] sm:$0xff] %v527_v30  ;;  %v475_v32 = vadd.f32 %v464_v25, %v383_v31 }
 0x141   : > { %v517_v35 = vadd.f32 %v502_v33, %v475_v32 }
 0x142   : > { %v467_v38 = vpop.f32.mrf.mxu2 }
 0x143   : > { %v529_v37 = vadd.f32 %v523_v34, %v517_v35 }
 0x144   : > { %v334_v39 = vpop.f32.mrf.mxu3 }
 0x145   : > { %535 = vst [vmem:[%s826_s16 + $0x18] sm:$0xff] %v529_v37  ;;  %v386_v40 = vadd.f32 %v385_v36, %v334_v39 }
 0x147   : > { %v476_v42 = vadd.f32 %v467_v38, %v386_v40 }
 0x149   : > { %v518_v44 = vadd.f32 %v507_v41, %v476_v42 }
 0x14a   : > { %v469_v49 = vpop.f32.mrf.mxu2 }
 0x14b   : > { %v530_v45 = vadd.f32 %v524_v43, %v518_v44 }
 0x14c   : > { %v336_v47 = vpop.f32.mrf.mxu3 }
 0x14d   : > { %536 = vst [vmem:[%s826_s16 + $0x20] sm:$0xff] %v530_v45  ;;  %v388_v48 = vadd.f32 %v387_v46, %v336_v47 }
 0x14f   : > { %v477_v50 = vadd.f32 %v469_v49, %v388_v48 }
 0x151   : > { %v519_v53 = vadd.f32 %v512_v51, %v477_v50 }
 0x153   : > { %v531_v54 = vadd.f32 %v525_v52, %v519_v53 }
 0x155   : > { %537 = vst [vmem:[%s826_s16 + $0x28] sm:$0xff] %v531_v54 }
 0x156 PF: > { %s14_s15 = sadd.s32 1, %s707_s15  }
 0x157   : > { %p11_p4 = scmp.ge.s32.totalorder %s14_s15, 4  }
 0x159   :  { %13 = sbr.rel (!%p11_p4) target bundleno = 1 (0x1), region = 71 }

// kernel: acoustic_forward.19
= control target key start
LH: loop header
LB: loop body
LE: loop exit
PB: predicated region body
PF: predicated region fallthrough
CT: control target
= control target key end

     0   :  { %vm49_vm0 = vcmask 261120   ;;  %s180_s1 = inlined_call_operand.vmem [shape: bf16[32,256], index: 1, kind: input, shape index: {}]   ;;  %s181_s0 = inlined_call_operand.vmem [shape: f32[8,32], index: 0, kind: input, shape index: {}]   ;;  %s182_s2 = inlined_call_operand.vmem [shape: f32[1,256], index: 2, kind: input, shape index: {}]   ;;  %s183_s3 = inlined_call_operand.vmem [shape: f32[8,256], index: 3, kind: output, shape index: {}]  }
   0x1   :  { %v112_v0 = vld [vmem:[%s180_s1 + $0x10] sm:$0xf]  ;;  %v123_v1 = vld [vmem:[%s180_s1 + $0x14] sm:$0xf0]  ;;  %v122_v2 = vld [vmem:[%s180_s1 + $0x14] sm:$0xf] }
   0x2   :  { %v113_v3 = vor.u32 %v123_v1, %v112_v0  ;;  %v114_v4 = vld [vmem:[%s180_s1 + $0x18] sm:$0xf0]  ;;  %v104_v5 = vld [vmem:[%s180_s1] sm:$0xf]  ;;  %v121_v6 = vld [vmem:[%s180_s1 + $0x4] sm:$0xf0] }
   0x3   :  { %v117_v7 = vor.u32 %v122_v2, %v114_v4  ;;  %v120_v8 = vld [vmem:[%s180_s1 + $0x4] sm:$0xf]  ;;  %v106_v9 = vld [vmem:[%s180_s1 + $0x8] sm:$0xf0]  ;;  %v105_v10 = vor.u32 %v121_v6, %v104_v5  ;;  %v88_v14 = vld [vmem:[%s182_s2] sm:$0x3] }
   0x4   :  { %59 = vmatpush.bf16.msra.mxu0 %v113_v3  ;;  %v23_v11 = vld [vmem:[%s181_s0] sm:$0xff]  ;;  %v109_v12 = vor.u32 %v120_v8, %v106_v9  ;;  %v90_v15 = vperm.slane %v88_v14, 0  ;;  %v91_v16 = vperm.slane %v88_v14, 1 }
   0x5   :  { %72 = vmatpush.bf16.msra.mxu1 %v117_v7  ;;  %v24_v13 = vpack.c.bf16 %v23_v11, %v23_v11 }
   0x8   :  { %60 = vmatpush.bf16.msra.mxu0 %v105_v10 }
   0x9   :  { %73 = vmatpush.bf16.msra.mxu1 %v109_v12 }
   0xb   :  { %118 = vmatmul.msk.bf16.vlgmr.msra.gmra.mxu0 %vm49_vm0, %v24_v13 }
   0xc   :  { %119 = vmatmul.msk.bf16.vlgmr.msra.gmra.mxu1 %vm49_vm0, %v24_v13 }
  0x88   :  { %v62_v17 = vpop.f32.mrf.mxu0 }
  0x89   :  { %v94_v18 = vadd.f32 %v90_v15, %v62_v17  ;;  %v75_v19 = vpop.f32.mrf.mxu1 }
  0x8a   :  { %v95_v20 = vadd.f32 %v91_v16, %v75_v19 }
  0x8b   :  { %96 = vst [vmem:[%s183_s3] sm:$0xff] %v94_v18 }
  0x8c   :  { %97 = vst [vmem:[%s183_s3 + $0x8] sm:$0xff] %v95_v20 }
  0x90   :  { %v64_v21 = vpop.f32.mrf.mxu0 }
  0x91   :  { %v77_v22 = vpop.f32.mrf.mxu1 }

// kernel: acoustic_forward.18
= control target key start
LH: loop header
LB: loop body
LE: loop exit
PB: predicated region body
PF: predicated region fallthrough
CT: control target
= control target key end

     0   :  { %vm18_vm0 = vcmask 261120   ;;  %v278_v20 = vmov 0.0   ;;  %s359_s1 = inlined_call_operand.vmem [shape: bf16[256,32], index: 1, kind: input, shape index: {}]   ;;  %s360_s0 = inlined_call_operand.vmem [shape: f32[8,256], index: 0, kind: input, shape index: {}]   ;;  %s361_s2 = inlined_call_operand.vmem [shape: f32[1,32], index: 2, kind: input, shape index: {}]   ;;  %s362_s3 = inlined_call_operand.vmem [shape: f32[8,32], index: 3, kind: output, shape index: {}]  }
   0x1   :  { %v267_v0 = vld [vmem:[%s359_s1 + $0x38] sm:$0xff]  ;;  %v266_v2 = vld [vmem:[%s359_s1 + $0x30] sm:$0xff]  ;;  %v265_v4 = vld [vmem:[%s359_s1 + $0x28] sm:$0xff]  ;;  %19 = vst.msk [vmem:[#allocation2] sm:$0xff] %vm18_vm0, %v278_v20 }
   0x2   :  { %v275_v1 = vld [vmem:[%s359_s1 + $0x78] sm:$0xff]  ;;  %153 = vmatpush.bf16.msra.mxu0 %v267_v0  ;;  %v274_v3 = vld [vmem:[%s359_s1 + $0x70] sm:$0xff]  ;;  %v273_v5 = vld [vmem:[%s359_s1 + $0x68] sm:$0xff] }
   0x3   :  { %166 = vmatpush.bf16.msra.mxu1 %v275_v1  ;;  %v264_v6 = vld [vmem:[%s359_s1 + $0x20] sm:$0xff]  ;;  %v263_v8 = vld [vmem:[%s359_s1 + $0x18] sm:$0xff]  ;;  %v262_v10 = vld [vmem:[%s359_s1 + $0x10] sm:$0xff] }
   0x4   :  { %v272_v7 = vld [vmem:[%s359_s1 + $0x60] sm:$0xff]  ;;  %v271_v9 = vld [vmem:[%s359_s1 + $0x58] sm:$0xff]  ;;  %v270_v11 = vld [vmem:[%s359_s1 + $0x50] sm:$0xff] }
   0x5   :  { %v261_v12 = vld [vmem:[%s359_s1 + $0x8] sm:$0xff]  ;;  %v260_v14 = vld [vmem:[%s359_s1] sm:$0xff] }
   0x6   :  { %154 = vmatpush.bf16.msra.mxu0 %v266_v2  ;;  %v269_v13 = vld [vmem:[%s359_s1 + $0x48] sm:$0xff]  ;;  %v268_v15 = vld [vmem:[%s359_s1 + $0x40] sm:$0xff] }
   0x7   :  { %167 = vmatpush.bf16.msra.mxu1 %v274_v3  ;;  %v21_v16 = vld [vmem:[%s360_s0] sm:$0xff]  ;;  %v22_v17 = vld [vmem:[%s360_s0 + $0x8] sm:$0xff] }
   0x8   :  { %v23_v18 = vpack.c.bf16 %v21_v16, %v21_v16  ;;  %v24_v19 = vpack.c.bf16 %v22_v17, %v22_v17  ;;  %v20_v22 = vld [vmem:[#allocation2] sm:$0xff] }
   0x9   :  { %v277_v28 = vld [vmem:[%s361_s2] ss:$0 sm:$0xff] }
   0xa   :  { %155 = vmatpush.bf16.msra.mxu0 %v265_v4 }
   0xb   :  { %168 = vmatpush.bf16.msra.mxu1 %v273_v5 }
   0xe   :  { %156 = vmatpush.bf16.msra.mxu0 %v264_v6 }
   0xf   :  { %169 = vmatpush.bf16.msra.mxu1 %v272_v7 }
  0x12   :  { %157 = vmatpush.bf16.msra.mxu0 %v263_v8 }
  0x13   :  { %170 = vmatpush.bf16.msra.mxu1 %v271_v9 }
  0x16   :  { %158 = vmatpush.bf16.msra.mxu0 %v262_v10 }
  0x17   :  { %171 = vmatpush.bf16.msra.mxu1 %v270_v11 }
  0x1a   :  { %159 = vmatpush.bf16.msra.mxu0 %v261_v12 }
  0x1b   :  { %172 = vmatpush.bf16.msra.mxu1 %v269_v13 }
  0x1e   :  { %160 = vmatpush.bf16.msra.mxu0 %v260_v14 }
  0x1f   :  { %173 = vmatpush.bf16.msra.mxu1 %v268_v15 }
  0x21   :  { %161 = vmatmul.bf16.vlgmr.msra.gmra.mxu0 %v23_v18 }
  0x22   :  { %174 = vmatmul.bf16.vlgmr.msra.gmra.mxu1 %v24_v19 }
  0x9e   :  { %v162_v21 = vpop.f32.mrf.mxu0 }
  0x9f   :  { %v175_v23 = vpop.f32.mrf.mxu1 }
  0xa0   :  { %v176_v24 = vadd.f32 %v175_v23, %v162_v21 }
  0xa2   :  { %v179_v25 = vadd.f32 %v176_v24, %v20_v22 }
  0xa4   :  { %181 = vst.msk [vmem:[#allocation2] sm:$0xff] %vm18_vm0, %v179_v25 }
  0xa6   :  { %v164_v26 = vpop.f32.mrf.mxu0 }
  0xa7   :  { %v177_v27 = vpop.f32.mrf.mxu1 }
  0xab   :  { %v185_v29 = vld [vmem:[#allocation2] sm:$0xff] }
  0xac   :  { %v190_v30 = vadd.f32 %v277_v28, %v185_v29 }
  0xae   :  { %191 = vst.msk [vmem:[%s362_s3] sm:$0xff] %vm18_vm0, %v190_v30 }

// kernel: acoustic_forward.20
= control target key start
LH: loop header
LB: loop body
LE: loop exit
PB: predicated region body
PF: predicated region fallthrough
CT: control target
= control target key end

     0   :  { %vm17_vm0 = vcmask 254976   ;;  %v355_v0 = vmov 0.0   ;;  %s391_s15 = smov 0   ;;  %s462_s0 = inlined_call_operand.vmem [shape: f32[4,2,256], index: 0, kind: input, shape index: {}]   ;;  %s463_s1 = inlined_call_operand.vmem [shape: bf16[32,128], index: 1, kind: input, shape index: {}]   ;;  %s464_s2 = inlined_call_operand.vmem [shape: bf16[32,128], index: 2, kind: input, shape index: {}]   ;;  %s465_s3 = inlined_call_operand.vmem [shape: f32[4,2,32], index: 3, kind: output, shape index: {0}]   ;;  %s466_s4 = inlined_call_operand.vmem [shape: f32[4,2,32], index: 4, kind: output, shape index: {1}]  }
   0x1   :  { %18 = vst.msk [vmem:[#allocation2] sm:$0x3] %vm17_vm0, %v355_v0 }
   0x2   :  { %19 = vst.msk [vmem:[#allocation3] sm:$0x3] %vm17_vm0, %v355_v0 }
   0x3 LB: > { %v296_v1 = vld [vmem:[%s463_s1 + $0x8] sm:$0xff]  ;;  %v295_v2 = vld [vmem:[%s463_s1] sm:$0xff]  ;;  %vm48_vm1 = vcmask 261120   ;;  %s294_s20 = sshll.u32 %s349_s15, 2  ;;  %s356_s24 = smov 64   ;;  %s349_s15 = sphi %s391_s15, %s25_s15  }
   0x4   : > { %58 = vmatpush.bf16.msra.mxu0 %v296_v1  ;;  %s28_s23 = scalar_lea.vmem %s462_s0, %s294_s20  ;;  %s357_s25 = smov 32  }
   0x5   : > { %v29_v5 = vld [vmem:[%s28_s23] sm:$0xf]  ;;  %s358_s26 = smov 96   ;;  %s270_s27 = sshll.u32 %s349_s15, 1 }
   0x6   : > { %s127_s30 = scalar_lea.vmem %s465_s3, %s270_s27  ;;  %s25_s15 = sadd.s32 1, %s349_s15  }
   0x7   : > { %p22_p0 = scmp.ge.s32.totalorder %s25_s15, 4  }
   0x8   : > { %v30_v3 = vld [vmem:[#allocation2] sm:$0x3]  ;;  %59 = vmatpush.bf16.msra.mxu0 %v295_v2  ;;  %s427_s5 = smov (%p22_p0), 0  }
   0x9   : > { %v31_v4 = vpack.c.bf16 %v30_v3, %v30_v3  ;;  %v86_v10 = vld [vmem:[#allocation3] sm:$0x3] }
   0xb   : > { %280 = vmatmul.msk.bf16.vlgmr.msra.gmra.mxu0 %vm48_vm1, %v31_v4 }
  0x88   : > { %v61_v6 = vpop.f32.mrf.mxu0 }
  0x89   : > { %v65_v7 = vadd.f32 %v61_v6, %v29_v5 }
  0x8b   : > { %323 = vtanh.f32 %v65_v7  ;;  %v281_v11 = vmul.f32 -1.442695, %v65_v7 }
  0x8d   : > { %325 = vpow2.f32 %v281_v11 }
  0x90   : > { %v63_v8 = vpop.f32.mrf.mxu0 }
  0x91   : > { %v324_v9 = vpop.eup %323 }
  0x92   : > { %93 = vrot.lane.b32.xlu0 %v324_v9, %s356_s24 }
  0x93   : > { %v326_v12 = vpop.eup %325 }
  0x94   : > { %v69_v13 = vadd.f32 1.0, %v326_v12 }
  0x96   : > { %327 = vrcp.f32 %v69_v13  ;;  %v81_v19 = vand.u32 2147483648, %v69_v13  ;;  %vm75_vm3 = vweird.f32 %v69_v13  ;;  %v79_v20 = vand.u32 2147483647, %v69_v13 }
  0x98   : > { %v82_v22 = vor.u32 1.1754944e-38, %v81_v19  ;;  %vm80_vm5 = vcmp.eq.f32.partialorder %v79_v20, 8.507059e+37 }
  0x9a   : > { %88 = vrot.lane.b32.xlu0 %v86_v10, %s357_s25 }
  0x9c   : > { %v328_v14 = vpop.eup %327 }
  0x9d   : > { %v71_v15 = vmul.f32 %v328_v14, %v69_v13  ;;  %vm76_vm2 = vweird.f32 %v328_v14 }
  0x9e   : > { %vm77_vm4 = vmor %vm75_vm3, %vm76_vm2 }
  0x9f   : > { %v72_v16 = vsub.f32 1.0, %v71_v15 }
  0xa1   : > { %v73_v17 = vmul.f32 %v328_v14, %v72_v16 }
  0xa3   : > { %v74_v18 = vadd.f32 %v328_v14, %v73_v17 }
  0xa5   : > { %v78_v21 = vsel %vm77_vm4, %v328_v14, %v74_v18 }
  0xa6   : > { %v83_v24 = vsel %vm80_vm5, %v82_v22, %v78_v21 }
 0x104   : > { %v94_v23 = vpop.permute.xlu0 %93 }
 0x105   : > { %v96_v25 = vmul.f32 %v94_v23, %v83_v24 }
 0x107   : > { %98 = vrot.lane.b32.xlu1 %v96_v25, %s357_s25 }
 0x10c   : > { %v89_v26 = vpop.permute.xlu0 %88 }
 0x10d   : > { %v91_v27 = vmul.f32 %v89_v26, %v83_v24 }
 0x179   : > { %v99_v28 = vpop.permute.xlu1 %98 }
 0x17a   : > { %v101_v29 = vadd.f32 %v99_v28, %v91_v27 }
 0x17c   : > { %329 = vtanh.f32 %v101_v29  ;;  %109 = vst [vmem:[#allocation1] ss:$4 sm:$0xff] %v101_v29 }
 0x182   : > { %v330_v30 = vpop.eup %329 }
 0x183   : > { %104 = vrot.lane.b32.xlu1 %v330_v30, %s356_s24  ;;  %v110_v31 = vld.sshfl [vmem:[#allocation1] sm:$0xff pattern:$0x73625140] }
 0x184   : > { %111 = vrot.lane.b32.xlu2 %v110_v31, %s358_s26 }
 0x1de   : > { %v112_v32 = vpop.permute.xlu2 %111 }
 0x1df   : > { %114 = vst.msk [vmem:[#allocation3] sm:$0x3] %vm17_vm0, %v112_v32 }
 0x1e0   :  { %130 = vst.msk [vmem:[#allocation3] sm:$0x3] (%p22_p0), %vm17_vm0, %v355_v0 }
 0x1f5   : > { %v105_v33 = vpop.permute.xlu1 %104 }
 0x1f6   : > { %v107_v34 = vmul.f32 %v105_v33, %v83_v24 }
 0x1f8   : > { %116 = vst [vmem:[#allocation1] ss:$4 sm:$0xff] %v107_v34 }
 0x1ff   : > { %v117_v35 = vld.sshfl [vmem:[#allocation1] sm:$0xff pattern:$0x73625140] }
 0x200   : > { %118 = vrot.lane.b32.xlu2 %v117_v35, %s357_s25  ;;  %122 = vst [vmem:[#allocation1] ss:$4 sm:$0xff] %v107_v34 }
 0x207   : > { %v123_v36 = vld.sshfl [vmem:[#allocation1] sm:$0xff pattern:$0x73625140] }
 0x208   : > { %124 = vrot.lane.b32.xlu0 %v123_v36, %s357_s25 }
 0x25a   : > { %v119_v37 = vpop.permute.xlu2 %118 }
 0x25b   : > { %121 = vst.msk [vmem:[#allocation2] sm:$0x3] %vm17_vm0, %v119_v37 }
 0x25c   :  { %129 = vst.msk [vmem:[#allocation2] sm:$0x3] (%p22_p0), %vm17_vm0, %v355_v0 }
 0x277   :  { %24 = sbr.rel (!%p22_p0) target bundleno = 3 (0x3), region = 58 }
 0x27a   : > { %v125_v38 = vpop.permute.xlu0 %124 }
 0x27b   : > { %128 = vst.msk [vmem:[%s127_s30] sm:$0x3] %vm17_vm0, %v125_v38 }
 0x27c LB: > { %v299_v39 = vld [vmem:[%s464_s2 + $0x8] sm:$0xff]  ;;  %v298_v40 = vld [vmem:[%s464_s2] sm:$0xff]  ;;  %s137_s8 = ssub.s32 3, %s353_s5  ;;  %s359_s13 = smov 64   ;;  %s353_s5 = sphi %s427_s5, %s136_s5  }
 0x27d   : > { %170 = vmatpush.bf16.msra.mxu0 %v299_v39  ;;  %v142_v41 = vld [vmem:[#allocation2] sm:$0x3]  ;;  %s297_s9 = sshll.u32 %s137_s8, 2  ;;  %v201_v49 = vld [vmem:[#allocation3] sm:$0x3]  ;;  %s360_s14 = smov 32  }
 0x27e   : > { %v143_v42 = vpack.c.bf16 %v142_v41, %v142_v41  ;;  %s140_s12 = scalar_lea.vmem %s462_s0, %s297_s9  ;;  %s361_s15 = smov 96  }
 0x27f   : > { %v141_v43 = vld [vmem:[%s140_s12] sm:$0xf]  ;;  %s282_s16 = sshll.u32 %s137_s8, 1  ;;  %s136_s5 = sadd.s32 1, %s353_s5  }
 0x280   : > { %v178_v44 = vrot.slane %v141_v43, 2  ;;  %s242_s19 = scalar_lea.vmem %s466_s4, %s282_s16  ;;  %p133_p1 = scmp.ge.s32.totalorder %s136_s5, 4  }
 0x281   : > { %171 = vmatpush.bf16.msra.mxu0 %v298_v40 }
 0x284   : > { %292 = vmatmul.msk.bf16.vlgmr.msra.gmra.mxu0 %vm48_vm1, %v143_v42 }
 0x301   : > { %v173_v45 = vpop.f32.mrf.mxu0 }
 0x302   : > { %v180_v46 = vadd.f32 %v178_v44, %v173_v45 }
 0x304   : > { %331 = vtanh.f32 %v180_v46  ;;  %v293_v50 = vmul.f32 -1.442695, %v180_v46 }
 0x306   : > { %333 = vpow2.f32 %v293_v50 }
 0x309   : > { %v175_v47 = vpop.f32.mrf.mxu0 }
 0x30a   : > { %v332_v48 = vpop.eup %331 }
 0x30b   : > { %208 = vrot.lane.b32.xlu0 %v332_v48, %s359_s13 }
 0x30c   : > { %v334_v51 = vpop.eup %333 }
 0x30d   : > { %v184_v52 = vadd.f32 1.0, %v334_v51 }
 0x30f   : > { %335 = vrcp.f32 %v184_v52  ;;  %v196_v58 = vand.u32 2147483648, %v184_v52  ;;  %vm190_vm7 = vweird.f32 %v184_v52  ;;  %v194_v59 = vand.u32 2147483647, %v184_v52 }
 0x311   : > { %v197_v61 = vor.u32 1.1754944e-38, %v196_v58  ;;  %vm195_vm9 = vcmp.eq.f32.partialorder %v194_v59, 8.507059e+37 }
 0x313   : > { %203 = vrot.lane.b32.xlu0 %v201_v49, %s360_s14 }
 0x315   : > { %v336_v53 = vpop.eup %335 }
 0x316   : > { %v186_v54 = vmul.f32 %v336_v53, %v184_v52  ;;  %vm191_vm6 = vweird.f32 %v336_v53 }
 0x317   : > { %vm192_vm8 = vmor %vm190_vm7, %vm191_vm6 }
 0x318   : > { %v187_v55 = vsub.f32 1.0, %v186_v54 }
 0x31a   : > { %v188_v56 = vmul.f32 %v336_v53, %v187_v55 }
 0x31c   : > { %v189_v57 = vadd.f32 %v336_v53, %v188_v56 }
 0x31e   : > { %v193_v60 = vsel %vm192_vm8, %v336_v53, %v189_v57 }
 0x31f   : > { %v198_v63 = vsel %vm195_vm9, %v197_v61, %v193_v60 }
 0x37d   : > { %v209_v62 = vpop.permute.xlu0 %208 }
 0x37e   : > { %v211_v0 = vmul.f32 %v209_v62, %v198_v63 }
 0x380   : > { %213 = vrot.lane.b32.xlu1 %v211_v0, %s360_s14 }
 0x385   : > { %v204_v1 = vpop.permute.xlu0 %203 }
 0x386   : > { %v206_v2 = vmul.f32 %v204_v1, %v198_v63 }
 0x3f2   : > { %v214_v3 = vpop.permute.xlu1 %213 }
 0x3f3   : > { %v216_v4 = vadd.f32 %v214_v3, %v206_v2 }
 0x3f5   : > { %337 = vtanh.f32 %v216_v4  ;;  %224 = vst [vmem:[#allocation1] ss:$4 sm:$0xff] %v216_v4 }
 0x3fb   : > { %v338_v5 = vpop.eup %337 }
 0x3fc   : > { %219 = vrot.lane.b32.xlu1 %v338_v5, %s359_s13  ;;  %v225_v6 = vld.sshfl [vmem:[#allocation1] sm:$0xff pattern:$0x73625140] }
 0x3fd   : > { %226 = vrot.lane.b32.xlu2 %v225_v6, %s361_s15 }
 0x457   : > { %v227_v7 = vpop.permute.xlu2 %226 }
 0x458   : > { %229 = vst.msk [vmem:[#allocation3] sm:$0x3] %vm17_vm0, %v227_v7 }
 0x46e   : > { %v220_v8 = vpop.permute.xlu1 %219 }
 0x46f   : > { %v222_v9 = vmul.f32 %v220_v8, %v198_v63 }
 0x471   : > { %231 = vst [vmem:[#allocation1] ss:$4 sm:$0xff] %v222_v9 }
 0x478   : > { %v232_v10 = vld.sshfl [vmem:[#allocation1] sm:$0xff pattern:$0x73625140] }
 0x479   : > { %233 = vrot.lane.b32.xlu2 %v232_v10, %s360_s14  ;;  %237 = vst [vmem:[#allocation1] ss:$4 sm:$0xff] %v222_v9 }
 0x480   : > { %v238_v11 = vld.sshfl [vmem:[#allocation1] sm:$0xff pattern:$0x73625140] }
 0x481   : > { %239 = vrot.lane.b32.xlu0 %v238_v11, %s360_s14 }
 0x4d3   : > { %v234_v12 = vpop.permute.xlu2 %233 }
 0x4d4   : > { %236 = vst.msk [vmem:[#allocation2] sm:$0x3] %vm17_vm0, %v234_v12 }
 0x4f0   :  { %135 = sbr.rel (!%p133_p1) target bundleno = 636 (0x27c), region = 69 }
 0x4f3   : > { %v240_v13 = vpop.permute.xlu0 %239 }
 0x4f4   : > { %243 = vst.msk [vmem:[%s242_s19] sm:$0x3] %vm17_vm0, %v240_v13 }

// kernel: acoustic_forward.21
= control target key start
LH: loop header
LB: loop body
LE: loop exit
PB: predicated region body
PF: predicated region fallthrough
CT: control target
= control target key end

     0   :  { %vm73_vm0 = vcmask 523264   ;;  %s248_s1 = inlined_call_operand.vmem [shape: bf16[64,256], index: 1, kind: input, shape index: {}]   ;;  %s249_s0 = inlined_call_operand.vmem [shape: f32[8,64], index: 0, kind: input, shape index: {}]   ;;  %s250_s2 = inlined_call_operand.vmem [shape: f32[1,256], index: 2, kind: input, shape index: {}]   ;;  %s251_s3 = inlined_call_operand.vmem [shape: f32[8,256], index: 3, kind: output, shape index: {}]  }
   0x1   :  { %v152_v0 = vld [vmem:[%s248_s1 + $0x30] sm:$0xf]  ;;  %v167_v1 = vld [vmem:[%s248_s1 + $0x34] sm:$0xf0]  ;;  %v166_v2 = vld [vmem:[%s248_s1 + $0x34] sm:$0xf] }
   0x2   :  { %v153_v3 = vor.u32 %v167_v1, %v152_v0  ;;  %v154_v4 = vld [vmem:[%s248_s1 + $0x38] sm:$0xf0]  ;;  %v144_v5 = vld [vmem:[%s248_s1 + $0x20] sm:$0xf]  ;;  %v165_v6 = vld [vmem:[%s248_s1 + $0x24] sm:$0xf0] }
   0x3   :  { %v157_v7 = vor.u32 %v166_v2, %v154_v4  ;;  %v164_v8 = vld [vmem:[%s248_s1 + $0x24] sm:$0xf]  ;;  %v146_v9 = vld [vmem:[%s248_s1 + $0x28] sm:$0xf0]  ;;  %v145_v10 = vor.u32 %v165_v6, %v144_v5  ;;  %v136_v12 = vld [vmem:[%s248_s1 + $0x10] sm:$0xf] }
   0x4   :  { %81 = vmatpush.bf16.msra.mxu0 %v153_v3  ;;  %v149_v11 = vor.u32 %v164_v8, %v146_v9  ;;  %v163_v13 = vld [vmem:[%s248_s1 + $0x14] sm:$0xf0]  ;;  %v162_v14 = vld [vmem:[%s248_s1 + $0x14] sm:$0xf]  ;;  %v138_v15 = vld [vmem:[%s248_s1 + $0x18] sm:$0xf0] }
   0x5   :  { %94 = vmatpush.bf16.msra.mxu1 %v157_v7  ;;  %v137_v16 = vor.u32 %v163_v13, %v136_v12  ;;  %v141_v17 = vor.u32 %v162_v14, %v138_v15  ;;  %v128_v18 = vld [vmem:[%s248_s1] sm:$0xf]  ;;  %v161_v19 = vld [vmem:[%s248_s1 + $0x4] sm:$0xf0]  ;;  %v160_v20 = vld [vmem:[%s248_s1 + $0x4] sm:$0xf] }
   0x6   :  { %v130_v21 = vld [vmem:[%s248_s1 + $0x8] sm:$0xf0]  ;;  %v129_v22 = vor.u32 %v161_v19, %v128_v18  ;;  %v23_v23 = vld [vmem:[%s249_s0] sm:$0xff] }
   0x7   :  { %v133_v24 = vor.u32 %v160_v20, %v130_v21  ;;  %v24_v25 = vpack.c.bf16 %v23_v23, %v23_v23  ;;  %v112_v26 = vld [vmem:[%s250_s2] sm:$0x3] }
   0x8   :  { %82 = vmatpush.bf16.msra.mxu0 %v145_v10  ;;  %v114_v27 = vperm.slane %v112_v26, 0  ;;  %v115_v28 = vperm.slane %v112_v26, 1 }
   0x9   :  { %95 = vmatpush.bf16.msra.mxu1 %v149_v11 }
   0xc   :  { %83 = vmatpush.bf16.msra.mxu0 %v137_v16 }
   0xd   :  { %96 = vmatpush.bf16.msra.mxu1 %v141_v17 }
  0x10   :  { %84 = vmatpush.bf16.msra.mxu0 %v129_v22 }
  0x11   :  { %97 = vmatpush.bf16.msra.mxu1 %v133_v24 }
  0x13   :  { %158 = vmatmul.msk.bf16.vlgmr.msra.gmra.mxu0 %vm73_vm0, %v24_v25 }
  0x14   :  { %159 = vmatmul.msk.bf16.vlgmr.msra.gmra.mxu1 %vm73_vm0, %v24_v25 }
  0x90   :  { %v86_v29 = vpop.f32.mrf.mxu0 }
  0x91   :  { %v118_v30 = vadd.f32 %v114_v27, %v86_v29  ;;  %v99_v31 = vpop.f32.mrf.mxu1 }
  0x92   :  { %v119_v32 = vadd.f32 %v115_v28, %v99_v31 }
  0x93   :  { %120 = vst [vmem:[%s251_s3] sm:$0xff] %v118_v30 }
  0x94   :  { %121 = vst [vmem:[%s251_s3 + $0x8] sm:$0xff] %v119_v32 }
  0x98   :  { %v88_v33 = vpop.f32.mrf.mxu0 }
  0x99   :  { %v101_v34 = vpop.f32.mrf.mxu1 }

// kernel: acoustic_forward.25
= control target key start
LH: loop header
LB: loop body
LE: loop exit
PB: predicated region body
PF: predicated region fallthrough
CT: control target
= control target key end

     0   :  { %s192_s0 = inlined_call_operand.vmem [shape: f32[8,64], index: 0, kind: input, shape index: {}]   ;;  %s193_s1 = inlined_call_operand.vmem [shape: bf16[64,128], index: 1, kind: input, shape index: {}]   ;;  %s194_s2 = inlined_call_operand.vmem [shape: f32[1,128], index: 2, kind: input, shape index: {}]   ;;  %s195_s3 = inlined_call_operand.hbm [shape: f32[8,128], index: 3, kind: output, shape index: {}]  }
   0x1   :  { %v121_v0 = vld [vmem:[%s193_s1 + $0x18] sm:$0xff]  ;;  %v120_v1 = vld [vmem:[%s193_s1 + $0x10] sm:$0xff] }
   0x2   :  { %64 = vmatpush.bf16.msra.mxu0 %v121_v0 }
   0x3   :  { %8 = vsyncpa [#allocation4], 0  ;;  %v119_v2 = vld [vmem:[%s193_s1 + $0x8] sm:$0xff]  ;;  %v118_v3 = vld [vmem:[%s193_s1] sm:$0xff]  ;;  %vm56_vm0 = vcmask 523264   ;;  %s150_s24 = smov [#allocation3]  }
   0x4   :  { %v22_v4 = vld [vmem:[%s192_s0] sm:$0xff]  ;;  %s90_s25 = sshll.u32 %s150_s24, 4  ;;  %s92_s28 = sshll.u32 %s195_s3, 4  ;;  %s91_s25 = int_to_ptr.vmem [resolvable:$true] %s90_s25  ;;  %s93_s28 = int_to_ptr.hbm [resolvable:$true] %s92_s28 }
   0x5   :  { %v23_v5 = vpack.c.bf16 %v22_v4, %v22_v4  ;;  %v123_v6 = vld [vmem:[%s194_s2] ss:$0 sm:$0xff] }
   0x6   :  { %65 = vmatpush.bf16.msra.mxu0 %v120_v1 }
   0xa   :  { %66 = vmatpush.bf16.msra.mxu0 %v119_v2 }
   0xe   :  { %67 = vmatpush.bf16.msra.mxu0 %v118_v3 }
  0x11   :  { %117 = vmatmul.msk.bf16.vlgmr.msra.gmra.mxu0 %vm56_vm0, %v23_v5 }
  0x8e   :  { %v69_v7 = vpop.f32.mrf.mxu0 }
  0x8f   :  { %v83_v8 = vadd.f32 %v123_v6, %v69_v7 }
  0x91   :  { %84 = vst [vmem:[#allocation3] sm:$0xff] %v83_v8 }
  0x92   :  { %95 = dma.vmem_to_hbm [thread:$0]  %s91_s25, 128, %s93_s28, [#allocation4]  }
  0x96   :  { %v71_v9 = vpop.f32.mrf.mxu0 }
  0x97   :  { %148 = dma.done.wait [#allocation4], 128  }
  0x98   :  { %149 = vsyncadd [#allocation4], 4294967168 }
  0x99   :  { %100 = vsyncpa [#allocation4], 1 }

// kernel: acoustic_forward.22
= control target key start
LH: loop header
LB: loop body
LE: loop exit
PB: predicated region body
PF: predicated region fallthrough
CT: control target
= control target key end

     0   :  { %vm17_vm0 = vcmask 257024   ;;  %v359_v0 = vmov 0.0   ;;  %s395_s15 = smov 0   ;;  %s466_s0 = inlined_call_operand.vmem [shape: f32[2,4,256], index: 0, kind: input, shape index: {}]   ;;  %s467_s1 = inlined_call_operand.vmem [shape: bf16[32,128], index: 1, kind: input, shape index: {}]   ;;  %s468_s2 = inlined_call_operand.vmem [shape: bf16[32,128], index: 2, kind: input, shape index: {}]   ;;  %s469_s3 = inlined_call_operand.vmem [shape: f32[2,4,32], index: 3, kind: output, shape index: {0}]   ;;  %s470_s4 = inlined_call_operand.vmem [shape: f32[2,4,32], index: 4, kind: output, shape index: {1}]  }
   0x1   :  { %18 = vst.msk [vmem:[#allocation2] sm:$0xf] %vm17_vm0, %v359_v0 }
   0x2   :  { %19 = vst.msk [vmem:[#allocation3] sm:$0xf] %vm17_vm0, %v359_v0 }
   0x3 LB: > { %v300_v1 = vld [vmem:[%s467_s1 + $0x8] sm:$0xff]  ;;  %v299_v2 = vld [vmem:[%s467_s1] sm:$0xff]  ;;  %vm48_vm1 = vcmask 261120   ;;  %s298_s20 = sshll.u32 %s353_s15, 3  ;;  %s360_s24 = smov 64   ;;  %s353_s15 = sphi %s395_s15, %s25_s15  }
   0x4   : > { %58 = vmatpush.bf16.msra.mxu0 %v300_v1  ;;  %s28_s23 = scalar_lea.vmem %s466_s0, %s298_s20  ;;  %s361_s25 = smov 32  }
   0x5   : > { %v29_v5 = vld [vmem:[%s28_s23] sm:$0xff]  ;;  %s362_s26 = smov 96   ;;  %s284_s27 = sshll.u32 %s353_s15, 2 }
   0x6   : > { %s128_s30 = scalar_lea.vmem %s469_s3, %s284_s27  ;;  %s25_s15 = sadd.s32 1, %s353_s15  }
   0x7   : > { %p22_p0 = scmp.ge.s32.totalorder %s25_s15, 2  }
   0x8   : > { %v30_v3 = vld [vmem:[#allocation2] sm:$0xf]  ;;  %59 = vmatpush.bf16.msra.mxu0 %v299_v2  ;;  %s431_s5 = smov (%p22_p0), 0  }
   0x9   : > { %v31_v4 = vpack.c.bf16 %v30_v3, %v30_v3  ;;  %v86_v10 = vld [vmem:[#allocation3] sm:$0xf] }
   0xb   : > { %282 = vmatmul.msk.bf16.vlgmr.msra.gmra.mxu0 %vm48_vm1, %v31_v4 }
  0x88   : > { %v61_v6 = vpop.f32.mrf.mxu0 }
  0x89   : > { %v65_v7 = vadd.f32 %v61_v6, %v29_v5 }
  0x8b   : > { %327 = vtanh.f32 %v65_v7  ;;  %v283_v11 = vmul.f32 -1.442695, %v65_v7 }
  0x8d   : > { %329 = vpow2.f32 %v283_v11 }
  0x90   : > { %v63_v8 = vpop.f32.mrf.mxu0 }
  0x91   : > { %v328_v9 = vpop.eup %327 }
  0x92   : > { %93 = vrot.lane.b32.xlu0 %v328_v9, %s360_s24 }
  0x93   : > { %v330_v12 = vpop.eup %329 }
  0x94   : > { %v69_v13 = vadd.f32 1.0, %v330_v12 }
  0x96   : > { %331 = vrcp.f32 %v69_v13  ;;  %v81_v19 = vand.u32 2147483648, %v69_v13  ;;  %vm75_vm3 = vweird.f32 %v69_v13  ;;  %v79_v20 = vand.u32 2147483647, %v69_v13 }
  0x98   : > { %v82_v22 = vor.u32 1.1754944e-38, %v81_v19  ;;  %vm80_vm5 = vcmp.eq.f32.partialorder %v79_v20, 8.507059e+37 }
  0x9a   : > { %88 = vrot.lane.b32.xlu0 %v86_v10, %s361_s25 }
  0x9c   : > { %v332_v14 = vpop.eup %331 }
  0x9d   : > { %v71_v15 = vmul.f32 %v332_v14, %v69_v13  ;;  %vm76_vm2 = vweird.f32 %v332_v14 }
  0x9e   : > { %vm77_vm4 = vmor %vm75_vm3, %vm76_vm2 }
  0x9f   : > { %v72_v16 = vsub.f32 1.0, %v71_v15 }
  0xa1   : > { %v73_v17 = vmul.f32 %v332_v14, %v72_v16 }
  0xa3   : > { %v74_v18 = vadd.f32 %v332_v14, %v73_v17 }
  0xa5   : > { %v78_v21 = vsel %vm77_vm4, %v332_v14, %v74_v18 }
  0xa6   : > { %v83_v24 = vsel %vm80_vm5, %v82_v22, %v78_v21 }
 0x104   : > { %v94_v23 = vpop.permute.xlu0 %93 }
 0x105   : > { %v96_v25 = vmul.f32 %v94_v23, %v83_v24 }
 0x107   : > { %98 = vrot.lane.b32.xlu1 %v96_v25, %s361_s25 }
 0x10c   : > { %v89_v26 = vpop.permute.xlu0 %88 }
 0x10d   : > { %v91_v27 = vmul.f32 %v89_v26, %v83_v24 }
 0x179   : > { %v99_v28 = vpop.permute.xlu1 %98 }
 0x17a   : > { %v101_v29 = vadd.f32 %v99_v28, %v91_v27 }
 0x17c   : > { %333 = vtanh.f32 %v101_v29  ;;  %109 = vst [vmem:[#allocation1] ss:$2 sm:$0xff] %v101_v29 }
 0x182   : > { %v334_v30 = vpop.eup %333 }
 0x183   : > { %104 = vrot.lane.b32.xlu1 %v334_v30, %s360_s24  ;;  %v110_v31 = vld.sshfl [vmem:[#allocation1] sm:$0xff pattern:$0x75316420] }
 0x184   : > { %111 = vrot.lane.b32.xlu2 %v110_v31, %s362_s26 }
 0x1de   : > { %v112_v32 = vpop.permute.xlu2 %111 }
 0x1df   : > { %114 = vst.msk [vmem:[#allocation3] sm:$0xf] %vm17_vm0, %v112_v32 }
 0x1e0   :  { %131 = vst.msk [vmem:[#allocation3] sm:$0xf] (%p22_p0), %vm17_vm0, %v359_v0 }
 0x1f5   : > { %v105_v33 = vpop.permute.xlu1 %104 }
 0x1f6   : > { %v107_v34 = vmul.f32 %v105_v33, %v83_v24 }
 0x1f8   : > { %116 = vst [vmem:[#allocation1] ss:$2 sm:$0xff] %v107_v34 }
 0x1ff   : > { %v117_v35 = vld.sshfl [vmem:[#allocation1] sm:$0xff pattern:$0x75316420] }
 0x200   : > { %118 = vrot.lane.b32.xlu2 %v117_v35, %s361_s25  ;;  %122 = vst [vmem:[#allocation1] ss:$2 sm:$0xff] %v107_v34 }
 0x207   : > { %v123_v36 = vld.sshfl [vmem:[#allocation1] sm:$0xff pattern:$0x75316420] }
 0x208   : > { %124 = vrot.lane.b32.xlu0 %v123_v36, %s361_s25 }
 0x25a   : > { %v119_v37 = vpop.permute.xlu2 %118 }
 0x25b   : > { %121 = vst.msk [vmem:[#allocation2] sm:$0xf] %vm17_vm0, %v119_v37 }
 0x25c   :  { %130 = vst.msk [vmem:[#allocation2] sm:$0xf] (%p22_p0), %vm17_vm0, %v359_v0 }
 0x277   :  { %24 = sbr.rel (!%p22_p0) target bundleno = 3 (0x3), region = 58 }
 0x27a   : > { %v125_v38 = vpop.permute.xlu0 %124 }
 0x27b   : > { %129 = vst.msk [vmem:[%s128_s30] sm:$0xf] %vm17_vm0, %v125_v38 }
 0x27c LB: > { %v303_v39 = vld [vmem:[%s468_s2 + $0x8] sm:$0xff]  ;;  %v302_v40 = vld [vmem:[%s468_s2] sm:$0xff]  ;;  %s138_s8 = ssub.s32 1, %s357_s5  ;;  %s363_s13 = smov 64   ;;  %s357_s5 = sphi %s431_s5, %s137_s5  }
 0x27d   : > { %171 = vmatpush.bf16.msra.mxu0 %v303_v39  ;;  %v143_v41 = vld [vmem:[#allocation2] sm:$0xf]  ;;  %s301_s9 = sshll.u32 %s138_s8, 3  ;;  %v202_v49 = vld [vmem:[#allocation3] sm:$0xf]  ;;  %s364_s14 = smov 32  }
 0x27e   : > { %v144_v42 = vpack.c.bf16 %v143_v41, %v143_v41  ;;  %s141_s12 = scalar_lea.vmem %s466_s0, %s301_s9  ;;  %s365_s15 = smov 96  }
 0x27f   : > { %v142_v43 = vld [vmem:[%s141_s12] sm:$0xff]  ;;  %s297_s16 = sshll.u32 %s138_s8, 2  ;;  %s137_s5 = sadd.s32 1, %s357_s5  }
 0x280   : > { %v179_v44 = vrot.slane %v142_v43, 4  ;;  %s244_s19 = scalar_lea.vmem %s470_s4, %s297_s16  ;;  %p134_p1 = scmp.ge.s32.totalorder %s137_s5, 2  }
 0x281   : > { %172 = vmatpush.bf16.msra.mxu0 %v302_v40 }
 0x284   : > { %295 = vmatmul.msk.bf16.vlgmr.msra.gmra.mxu0 %vm48_vm1, %v144_v42 }
 0x301   : > { %v174_v45 = vpop.f32.mrf.mxu0 }
 0x302   : > { %v181_v46 = vadd.f32 %v179_v44, %v174_v45 }
 0x304   : > { %335 = vtanh.f32 %v181_v46  ;;  %v296_v50 = vmul.f32 -1.442695, %v181_v46 }
 0x306   : > { %337 = vpow2.f32 %v296_v50 }
 0x309   : > { %v176_v47 = vpop.f32.mrf.mxu0 }
 0x30a   : > { %v336_v48 = vpop.eup %335 }
 0x30b   : > { %209 = vrot.lane.b32.xlu0 %v336_v48, %s363_s13 }
 0x30c   : > { %v338_v51 = vpop.eup %337 }
 0x30d   : > { %v185_v52 = vadd.f32 1.0, %v338_v51 }
 0x30f   : > { %339 = vrcp.f32 %v185_v52  ;;  %v197_v58 = vand.u32 2147483648, %v185_v52  ;;  %vm191_vm7 = vweird.f32 %v185_v52  ;;  %v195_v59 = vand.u32 2147483647, %v185_v52 }
 0x311   : > { %v198_v61 = vor.u32 1.1754944e-38, %v197_v58  ;;  %vm196_vm9 = vcmp.eq.f32.partialorder %v195_v59, 8.507059e+37 }
 0x313   : > { %204 = vrot.lane.b32.xlu0 %v202_v49, %s364_s14 }
 0x315   : > { %v340_v53 = vpop.eup %339 }
 0x316   : > { %v187_v54 = vmul.f32 %v340_v53, %v185_v52  ;;  %vm192_vm6 = vweird.f32 %v340_v53 }
 0x317   : > { %vm193_vm8 = vmor %vm191_vm7, %vm192_vm6 }
 0x318   : > { %v188_v55 = vsub.f32 1.0, %v187_v54 }
 0x31a   : > { %v189_v56 = vmul.f32 %v340_v53, %v188_v55 }
 0x31c   : > { %v190_v57 = vadd.f32 %v340_v53, %v189_v56 }
 0x31e   : > { %v194_v60 = vsel %vm193_vm8, %v340_v53, %v190_v57 }
 0x31f   : > { %v199_v63 = vsel %vm196_vm9, %v198_v61, %v194_v60 }
 0x37d   : > { %v210_v62 = vpop.permute.xlu0 %209 }
 0x37e   : > { %v212_v0 = vmul.f32 %v210_v62, %v199_v63 }
 0x380   : > { %214 = vrot.lane.b32.xlu1 %v212_v0, %s364_s14 }
 0x385   : > { %v205_v1 = vpop.permute.xlu0 %204 }
 0x386   : > { %v207_v2 = vmul.f32 %v205_v1, %v199_v63 }
 0x3f2   : > { %v215_v3 = vpop.permute.xlu1 %214 }
 0x3f3   : > { %v217_v4 = vadd.f32 %v215_v3, %v207_v2 }
 0x3f5   : > { %341 = vtanh.f32 %v217_v4  ;;  %225 = vst [vmem:[#allocation1] ss:$2 sm:$0xff] %v217_v4 }
 0x3fb   : > { %v342_v5 = vpop.eup %341 }
 0x3fc   : > { %220 = vrot.lane.b32.xlu1 %v342_v5, %s363_s13  ;;  %v226_v6 = vld.sshfl [vmem:[#allocation1] sm:$0xff pattern:$0x75316420] }
 0x3fd   : > { %227 = vrot.lane.b32.xlu2 %v226_v6, %s365_s15 }
 0x457   : > { %v228_v7 = vpop.permute.xlu2 %227 }
 0x458   : > { %230 = vst.msk [vmem:[#allocation3] sm:$0xf] %vm17_vm0, %v228_v7 }
 0x46e   : > { %v221_v8 = vpop.permute.xlu1 %220 }
 0x46f   : > { %v223_v9 = vmul.f32 %v221_v8, %v199_v63 }
 0x471   : > { %232 = vst [vmem:[#allocation1] ss:$2 sm:$0xff] %v223_v9 }
 0x478   : > { %v233_v10 = vld.sshfl [vmem:[#allocation1] sm:$0xff pattern:$0x75316420] }
 0x479   : > { %234 = vrot.lane.b32.xlu2 %v233_v10, %s364_s14  ;;  %238 = vst [vmem:[#allocation1] ss:$2 sm:$0xff] %v223_v9 }
 0x480   : > { %v239_v11 = vld.sshfl [vmem:[#allocation1] sm:$0xff pattern:$0x75316420] }
 0x481   : > { %240 = vrot.lane.b32.xlu0 %v239_v11, %s364_s14 }
 0x4d3   : > { %v235_v12 = vpop.permute.xlu2 %234 }
 0x4d4   : > { %237 = vst.msk [vmem:[#allocation2] sm:$0xf] %vm17_vm0, %v235_v12 }
 0x4f0   :  { %136 = sbr.rel (!%p134_p1) target bundleno = 636 (0x27c), region = 69 }
 0x4f3   : > { %v241_v13 = vpop.permute.xlu0 %240 }
 0x4f4   : > { %245 = vst.msk [vmem:[%s244_s19] sm:$0xf] %vm17_vm0, %v241_v13 }

</bundles_post_ra>
